<compile_context>
chip_gen: v7x
topology: tpu7x:2x2x1
jax: 0.10.0
libtpu: 0.0.40
codegen_flags: <defaults>
</compile_context>

<pallas_src>
import functools

import jax
import jax.numpy as jnp
from jax.experimental import pallas as pl
from jax.experimental.pallas import tpu as pltpu

LANE = 128          # output channels padded to a multiple of the lane width
M_TILE_MAX = 256    # rows (N*L_out) per grid step
K_FULL_MAX = 768    # keep K as one block up to this size; block it beyond


def _round_up(x, m):
    return ((x + m - 1) // m) * m


# ----------------------------------------------------------------------------
# Fused conv-as-matmul Pallas kernel (K-blocked accumulator + fused epilogues)
# ----------------------------------------------------------------------------
def _conv_mm_kernel(*refs, epilogue):
    if epilogue == "none":
        a_ref, b_ref, o_ref, acc_ref = refs
        res_ref = scale_ref = shift_ref = None
    elif epilogue == "bn_relu":
        a_ref, b_ref, scale_ref, shift_ref, o_ref, acc_ref = refs
        res_ref = None
    elif epilogue == "add":
        a_ref, b_ref, res_ref, o_ref, acc_ref = refs
        scale_ref = shift_ref = None
    elif epilogue == "add_bn_relu":
        a_ref, b_ref, res_ref, scale_ref, shift_ref, o_ref, acc_ref = refs
    else:
        raise ValueError(epilogue)

    k = pl.program_id(1)

    @pl.when(k == 0)
    def _init():
        acc_ref[...] = jnp.zeros_like(acc_ref)

    # bf16 x bf16 -> f32 accumulate on the MXU (native fast path).
    acc_ref[...] += jnp.dot(a_ref[...], b_ref[...],
                            preferred_element_type=jnp.float32)

    @pl.when(k == pl.num_programs(1) - 1)
    def _finalize():
        acc = acc_ref[...]
        if epilogue in ("add", "add_bn_relu"):
            acc = acc + res_ref[...]
        if epilogue in ("bn_relu", "add_bn_relu"):
            acc = jnp.maximum(acc * scale_ref[...] + shift_ref[...], 0.0)
        o_ref[...] = acc


def _m_tiling(M):
    mp = _round_up(M, 16)            # bf16 sublane packing friendly
    if mp <= M_TILE_MAX:
        return mp, mp                # single M block
    return _round_up(M, M_TILE_MAX), M_TILE_MAX


def _k_tiling(K):
    kp = _round_up(K, 16)
    if kp <= K_FULL_MAX:
        return kp, kp                # single K block (full dim)
    kp = _round_up(K, 128)
    for tk in (512, 384, 256):       # tk must be a multiple of 128
        if kp % tk == 0:
            return kp, tk
    return kp, 128


def _matmul_epilogue_ref(acc, *, epilogue, scale, shift, residual):
    # pure-JAX epilogue mirror (used by the precision-matched reference path)
    if epilogue in ("add", "add_bn_relu"):
        acc = acc + residual
    if epilogue in ("bn_relu", "add_bn_relu"):
        acc = jnp.maximum(acc * scale[None, :] + shift[None, :], 0.0)
    return acc


def matmul_fused(a_bf16, b_bf16, *, epilogue="none",
                 scale=None, shift=None, residual=None):
    """(M, K) @ (K, Np) -> (M, Np) f32 with a fused epilogue.  Np % 128 == 0."""
    M, K = a_bf16.shape
    K2, Np = b_bf16.shape
    assert K2 == K and Np % LANE == 0

    Mp, TM = _m_tiling(M)
    Kp, TK = _k_tiling(K)
    grid = (Mp // TM, Kp // TK)

    a = a_bf16
    if (Mp, Kp) != (M, K):
        a = jnp.pad(a, ((0, Mp - M), (0, Kp - K)))
    b = b_bf16
    if Kp != K:
        b = jnp.pad(b, ((0, Kp - K), (0, 0)))

    in_specs = [
        pl.BlockSpec((TM, TK), lambda i, k: (i, k)),   # im2col activations
        pl.BlockSpec((TK, Np), lambda i, k: (k, 0)),   # flattened weights
    ]
    args = [a, b]
    if epilogue in ("add", "add_bn_relu"):
        res = residual.astype(jnp.float32)
        if res.shape[0] != Mp:
            res = jnp.pad(res, ((0, Mp - res.shape[0]), (0, 0)))
        in_specs.append(pl.BlockSpec((TM, Np), lambda i, k: (i, 0)))
        args.append(res)
    if epilogue in ("bn_relu", "add_bn_relu"):
        in_specs += [pl.BlockSpec((1, Np), lambda i, k: (0, 0)),
                     pl.BlockSpec((1, Np), lambda i, k: (0, 0))]
        args += [scale.reshape(1, Np).astype(jnp.float32),
                 shift.reshape(1, Np).astype(jnp.float32)]

    bytes_accessed = sum(int(x.size) * x.dtype.itemsize for x in args) + Mp * Np * 4
    cost = pl.CostEstimate(flops=2 * Mp * Kp * Np, transcendentals=0,
                           bytes_accessed=int(bytes_accessed))

    out = pl.pallas_call(
        functools.partial(_conv_mm_kernel, epilogue=epilogue),
        grid=grid,
        in_specs=in_specs,
        out_specs=pl.BlockSpec((TM, Np), lambda i, k: (i, 0)),
        out_shape=jax.ShapeDtypeStruct((Mp, Np), jnp.float32),
        scratch_shapes=[pltpu.VMEM((TM, Np), jnp.float32)],
        compiler_params=pltpu.CompilerParams(
            dimension_semantics=("parallel", "arbitrary"),
            vmem_limit_bytes=48 * 1024 * 1024),
        cost_estimate=cost,
    )(*args)
    return out[:M]


# ----------------------------------------------------------------------------
# Conv1d via im2col (layout glue) + fused Pallas matmul
# ----------------------------------------------------------------------------
def _im2col_1d(x_nlc, ksize, stride, pad):
    N, L, C = x_nlc.shape
    xp = jnp.pad(x_nlc, ((0, 0), (pad, pad), (0, 0)))
    L_out = (L + 2 * pad - ksize) // stride + 1
    cols = [xp[:, t:t + stride * (L_out - 1) + 1:stride, :] for t in range(ksize)]
    col = jnp.concatenate(cols, axis=-1)            # (N, L_out, K*C), tap-major
    return col.reshape(N * L_out, ksize * C), L_out


def conv1d_nlc(x_nlc, w_oik, stride, pad, *, epilogue="none",
               scale=None, shift=None, residual=None, use_pallas=True):
    """x: (N, L, C_in) real channels; w: (C_out, C_in, K) torch layout.
    Returns (N, L_out, C_out_pad) f32 with channels >= C_out zero-filled."""
    N = x_nlc.shape[0]
    C_out, C_in, K = w_oik.shape
    c_pad = _round_up(C_out, LANE)

    cols, L_out = _im2col_1d(x_nlc.astype(jnp.bfloat16), K, stride, pad)
    # column index = t*C_in + ci  ->  flat weight[t*C_in + ci, co] = w[co, ci, t]
    wf = jnp.transpose(w_oik, (2, 1, 0)).reshape(K * C_in, C_out)
    wf = jnp.pad(wf, ((0, 0), (0, c_pad - C_out))).astype(jnp.bfloat16)
    if scale is not None:
        scale = jnp.pad(scale, (0, c_pad - C_out))
        shift = jnp.pad(shift, (0, c_pad - C_out))
    if residual is not None:
        residual = residual.reshape(N * L_out, c_pad)

    if use_pallas:
        out = matmul_fused(cols, wf, epilogue=epilogue,
                           scale=scale, shift=shift, residual=residual)
    else:  # precision-matched pure-JAX reference path (same bf16 quantization)
        acc = jnp.dot(cols, wf, preferred_element_type=jnp.float32)
        out = _matmul_epilogue_ref(acc, epilogue=epilogue, scale=scale,
                                   shift=shift, residual=residual)
    return out.reshape(N, L_out, c_pad)


# ----------------------------------------------------------------------------
# WideResNet forward (channels-last + channel-padded internally)
# ----------------------------------------------------------------------------
def basic_block(x_pad, p, *, final_bn=None, use_pallas=True):
    """x_pad: (N, L, round_up(C_in,128)) with channels >= C_in zero-filled."""
    c_out, c_in, _ = p["conv1"].shape
    s1, b1 = p["bn1"]
    x_real = x_pad[:, :, :c_in]
    # bn1 + ReLU: plain-JAX elementwise, fused by XLA into the im2col gather of
    # its consumer conv(s) -- no standalone memory-bound pallas_call.
    a = jnp.maximum(x_real * s1[None, None, :] + b1[None, None, :], 0.0)

    s2, b2 = p["bn2"]
    h = conv1d_nlc(a, p["conv1"], stride=p["stride"], pad=4,
                   epilogue="bn_relu", scale=s2, shift=b2, use_pallas=use_pallas)

    if p["equal"]:
        shortcut = x_pad                       # identity (padded lanes are zero)
    else:
        shortcut = conv1d_nlc(a, p["conv_sc"], stride=p["stride"], pad=0,
                              use_pallas=use_pallas)

    # TODO(synk): F.dropout for dropRate > 0 not implemented (default dropRate=0).
    if final_bn is None:
        epi, fs, fb = "add", None, None
    else:                                      # fold network-final BN+ReLU in
        epi, (fs, fb) = "add_bn_relu", final_bn
    return conv1d_nlc(h[:, :, :c_out], p["conv2"], stride=1, pad=4,
                      epilogue=epi, scale=fs, shift=fb, residual=shortcut,
                      use_pallas=use_pallas)


def wideresnet_forward(x_ncl, params, use_pallas=True):
    x = jnp.transpose(x_ncl, (0, 2, 1))                  # NCL -> NLC
    out = conv1d_nlc(x, params["conv1"], stride=1, pad=4, use_pallas=use_pallas)
    groups = params["blocks"]
    for gi, layers in enumerate(groups):
        for li, lyr in enumerate(layers):
            is_last = (gi == len(groups) - 1) and (li == len(layers) - 1)
            out = basic_block(out, lyr,
                              final_bn=params["bn_final"] if is_last else None,
                              use_pallas=use_pallas)
    c_final = params["bn_final"][0].shape[0]
    f = out[:, :, :c_final]                              # drop lane padding
    return jnp.transpose(f, (0, 2, 1))                   # NLC -> NCL
    # NOTE: projection_layer (MLP) is unused in WideResNet.forward -> not built.


# ----------------------------------------------------------------------------
# Deterministic parameter initialization (synthetic, eval-mode BN folded)
# ----------------------------------------------------------------------------
def init_params(key, depth=16, widen_factor=2, in_channel=3):
    assert (depth - 4) % 6 == 0
    n = (depth - 4) // 6
    nCh = [16, 16 * widen_factor, 32 * widen_factor, 64 * widen_factor]
    keys = iter(jax.random.split(key, 512))

    def conv_w(co, ci, k):
        std = (2.0 / (k * ci)) ** 0.5
        return std * jax.random.normal(next(keys), (co, ci, k), jnp.float32)

    def bn(c):
        gamma = 1.0 + 0.1 * jax.random.normal(next(keys), (c,), jnp.float32)
        beta = 0.1 * jax.random.normal(next(keys), (c,), jnp.float32)
        mean = 0.1 * jax.random.normal(next(keys), (c,), jnp.float32)
        var = 1.0 + jax.random.uniform(next(keys), (c,), jnp.float32)
        scale = gamma / jnp.sqrt(var + 1e-5)
        shift = beta - mean * scale
        return scale, shift

    params = {"conv1": conv_w(nCh[0], in_channel, 9), "blocks": []}
    in_p = nCh[0]
    for out_p in nCh[1:]:
        layers = []
        for li in range(n):
            cin = in_p if li == 0 else out_p
            stride = 2 if li == 0 else 1
            equal = (cin == out_p)
            lyr = {
                "bn1": bn(cin),
                "conv1": conv_w(out_p, cin, 9),
                "bn2": bn(out_p),
                "conv2": conv_w(out_p, out_p, 9),
                "stride": stride,
                "equal": equal,
            }
            if not equal:
                lyr["conv_sc"] = conv_w(out_p, cin, 1)
            layers.append(lyr)
        params["blocks"].append(layers)
        in_p = out_p
    params["bn_final"] = bn(nCh[3])
    return params


# ----------------------------------------------------------------------------
# Pure-JAX f32 reference (NCL, lax.conv) for semantic correctness check
# ----------------------------------------------------------------------------
def ref_forward(x_ncl, params):
    def conv(x, w, stride, pad):
        return jax.lax.conv_general_dilated(
            x, w, (stride,), [(pad, pad)],
            dimension_numbers=("NCH", "OIH", "NCH"),
            precision=jax.lax.Precision.HIGHEST)

    def bnrelu(x, sb):
        s, b = sb
        return jnp.maximum(x * s[None, :, None] + b[None, :, None], 0.0)

    out = conv(x_ncl, params["conv1"], 1, 4)
    for layers in params["blocks"]:
        for p in layers:
            x = out
            a = bnrelu(x, p["bn1"])
            h = bnrelu(conv(a, p["conv1"], p["stride"], 4), p["bn2"])
            o = conv(h, p["conv2"], 1, 4)
            sc = x if p["equal"] else conv(a, p["conv_sc"], p["stride"], 0)
            out = sc + o
    return bnrelu(out, params["bn_final"])


if __name__ == "__main__":
    key = jax.random.PRNGKey(0)
    kx, kp = jax.random.split(key)
    # small shapes: batch=2, in_channel=3, length=32; depth=16, widen_factor=2
    x = jax.random.normal(kx, (2, 3, 32), jnp.float32)
    params = init_params(kp, depth=16, widen_factor=2, in_channel=3)

    fwd = jax.jit(functools.partial(wideresnet_forward, params=params))
    out = jax.block_until_ready(fwd(x))

    # 1) precision-matched pure-JAX reference (same bf16-quantized matmul path)
    ref_match = wideresnet_forward(x, params, use_pallas=False)
    # 2) full-f32 lax.conv reference (original module semantics)
    ref_f32 = ref_forward(x, params)

    assert out.shape == ref_f32.shape == (2, 128, 4), out.shape
    err_match = float(jnp.max(jnp.abs(out - ref_match)))
    assert jnp.allclose(out, ref_match, atol=1e-2, rtol=1e-2), err_match
    err_f32 = float(jnp.max(jnp.abs(out - ref_f32)))
    assert jnp.allclose(out, ref_f32, atol=5e-1, rtol=1e-1), err_f32
    print("KERNEL_OK")
</pallas_src>

<mosaic_0001>
module attributes {stable_mosaic.version = 11 : i64} {
  func.func @_conv_mm_kernel(%arg0: i32, %arg1: i32, %arg2: memref<64x32xbf16, #tpu.memory_space<vmem>>, %arg3: memref<32x128xbf16, #tpu.memory_space<vmem>>, %arg4: memref<64x128xf32, #tpu.memory_space<vmem>>, %arg5: memref<64x128xf32, #tpu.memory_space<vmem>>) attributes {dimension_semantics = [#tpu.dimension_semantics<parallel>, #tpu.dimension_semantics<arbitrary>], iteration_bounds = array<i64: 1, 1>, scalar_prefetch = 0 : i64, scratch_operands = 1 : i64, tpu.core_type = #tpu.core_type<tc>, window_params = [{transform_indices = @transform_0, window_bounds = array<i64: 64, 32>}, {transform_indices = @transform_1, window_bounds = array<i64: 32, 128>}, {transform_indices = @transform_2, window_bounds = array<i64: 64, 128>}]} {
    %c0_i32 = arith.constant 0 : i32
    %0 = arith.cmpi eq, %arg1, %c0_i32 : i32
    %1 = arith.extui %0 : i1 to i32
    %c0_i32_0 = arith.constant 0 : i32
    %2 = arith.cmpi ne, %1, %c0_i32_0 : i32
    scf.if %2 {
      %cst_10 = arith.constant 0.000000e+00 : f32
      %12 = vector.broadcast %cst_10 : f32 to vector<64x128xf32>
      %c0_11 = arith.constant 0 : index
      %c0_12 = arith.constant 0 : index
      %13 = vector.load %arg5[%c0_11, %c0_12] : memref<64x128xf32, #tpu.memory_space<vmem>>, vector<64x128xf32>
      tpu.vector_store %arg5[%c0_11, %c0_12], %12 {strides = array<i32>} : memref<64x128xf32, #tpu.memory_space<vmem>>, vector<64x128xf32>,
    } else {
    }
    %c0 = arith.constant 0 : index
    %c0_1 = arith.constant 0 : index
    %3 = vector.load %arg5[%c0, %c0_1] : memref<64x128xf32, #tpu.memory_space<vmem>>, vector<64x128xf32>
    %c0_2 = arith.constant 0 : index
    %c0_3 = arith.constant 0 : index
    %4 = vector.load %arg2[%c0_2, %c0_3] : memref<64x32xbf16, #tpu.memory_space<vmem>>, vector<64x32xbf16>
    %c0_4 = arith.constant 0 : index
    %c0_5 = arith.constant 0 : index
    %5 = vector.load %arg3[%c0_4, %c0_5] : memref<32x128xbf16, #tpu.memory_space<vmem>>, vector<32x128xbf16>
    %cst = arith.constant dense<0.000000e+00> : vector<64x128xf32>
    %6 = tpu.matmul %4, %5, %cst {dimension_numbers = #tpu.dot_dimension_numbers<[1], [0], [0], [1], [0, 0, 1, 1], [], []>} : vector<64x32xbf16>, vector<32x128xbf16>, vector<64x128xf32> -> vector<64x128xf32>
    %7 = arith.addf %3, %6 : vector<64x128xf32>
    %c0_6 = arith.constant 0 : index
    %c0_7 = arith.constant 0 : index
    %8 = vector.load %arg5[%c0_6, %c0_7] : memref<64x128xf32, #tpu.memory_space<vmem>>, vector<64x128xf32>
    tpu.vector_store %arg5[%c0_6, %c0_7], %7 {strides = array<i32>} : memref<64x128xf32, #tpu.memory_space<vmem>>, vector<64x128xf32>,
    %c0_i32_8 = arith.constant 0 : i32
    %9 = arith.cmpi eq, %arg1, %c0_i32_8 : i32
    %10 = arith.extui %9 : i1 to i32
    %c0_i32_9 = arith.constant 0 : i32
    %11 = arith.cmpi ne, %10, %c0_i32_9 : i32
    scf.if %11 {
      %c0_10 = arith.constant 0 : index
      %c0_11 = arith.constant 0 : index
      %12 = vector.load %arg5[%c0_10, %c0_11] : memref<64x128xf32, #tpu.memory_space<vmem>>, vector<64x128xf32>
      %c0_12 = arith.constant 0 : index
      %c0_13 = arith.constant 0 : index
      %13 = vector.load %arg4[%c0_12, %c0_13] : memref<64x128xf32, #tpu.memory_space<vmem>>, vector<64x128xf32>
      tpu.vector_store %arg4[%c0_12, %c0_13], %12 {strides = array<i32>} : memref<64x128xf32, #tpu.memory_space<vmem>>, vector<64x128xf32>,
    } else {
    }
    return
  }
  func.func @transform_0(%arg0: i32, %arg1: i32) -> (i32, i32) {
    %c0_i32 = arith.constant 0 : i32
    return %arg0, %arg1 : i32, i32
  }
  func.func @transform_1(%arg0: i32, %arg1: i32) -> (i32, i32) {
    %c0_i32 = arith.constant 0 : i32
    %c0_i32_0 = arith.constant 0 : i32
    return %arg1, %c0_i32 : i32, i32
  }
  func.func @transform_2(%arg0: i32, %arg1: i32) -> (i32, i32) {
    %c0_i32 = arith.constant 0 : i32
    %c0_i32_0 = arith.constant 0 : i32
    return %arg0, %c0_i32 : i32, i32
  }
}

module attributes {stable_mosaic.version = 11 : i64} {
  func.func @_conv_mm_kernel(%arg0: i32, %arg1: i32, %arg2: memref<32x144xbf16, #tpu.memory_space<vmem>>, %arg3: memref<144x128xbf16, #tpu.memory_space<vmem>>, %arg4: memref<1x128xf32, #tpu.memory_space<vmem>>, %arg5: memref<1x128xf32, #tpu.memory_space<vmem>>, %arg6: memref<32x128xf32, #tpu.memory_space<vmem>>, %arg7: memref<32x128xf32, #tpu.memory_space<vmem>>) attributes {dimension_semantics = [#tpu.dimension_semantics<parallel>, #tpu.dimension_semantics<arbitrary>], iteration_bounds = array<i64: 1, 1>, scalar_prefetch = 0 : i64, scratch_operands = 1 : i64, tpu.core_type = #tpu.core_type<tc>, window_params = [{transform_indices = @transform_0, window_bounds = array<i64: 32, 144>}, {transform_indices = @transform_1, window_bounds = array<i64: 144, 128>}, {pipeline_mode = #tpu.pipeline_mode<synchronous>, transform_indices = @transform_2, window_bounds = array<i64: 1, 128>}, {pipeline_mode = #tpu.pipeline_mode<synchronous>, transform_indices = @transform_3, window_bounds = array<i64: 1, 128>}, {transform_indices = @transform_4, window_bounds = array<i64: 32, 128>}]} {
    %c0_i32 = arith.constant 0 : i32
    %0 = arith.cmpi eq, %arg1, %c0_i32 : i32
    %1 = arith.extui %0 : i1 to i32
    %c0_i32_0 = arith.constant 0 : i32
    %2 = arith.cmpi ne, %1, %c0_i32_0 : i32
    scf.if %2 {
      %cst_10 = arith.constant 0.000000e+00 : f32
      %12 = vector.broadcast %cst_10 : f32 to vector<32x128xf32>
      %c0_11 = arith.constant 0 : index
      %c0_12 = arith.constant 0 : index
      %13 = vector.load %arg7[%c0_11, %c0_12] : memref<32x128xf32, #tpu.memory_space<vmem>>, vector<32x128xf32>
      tpu.vector_store %arg7[%c0_11, %c0_12], %12 {strides = array<i32>} : memref<32x128xf32, #tpu.memory_space<vmem>>, vector<32x128xf32>,
    } else {
    }
    %c0 = arith.constant 0 : index
    %c0_1 = arith.constant 0 : index
    %3 = vector.load %arg7[%c0, %c0_1] : memref<32x128xf32, #tpu.memory_space<vmem>>, vector<32x128xf32>
    %c0_2 = arith.constant 0 : index
    %c0_3 = arith.constant 0 : index
    %4 = vector.load %arg2[%c0_2, %c0_3] : memref<32x144xbf16, #tpu.memory_space<vmem>>, vector<32x144xbf16>
    %c0_4 = arith.constant 0 : index
    %c0_5 = arith.constant 0 : index
    %5 = vector.load %arg3[%c0_4, %c0_5] : memref<144x128xbf16, #tpu.memory_space<vmem>>, vector<144x128xbf16>
    %cst = arith.constant dense<0.000000e+00> : vector<32x128xf32>
    %6 = tpu.matmul %4, %5, %cst {dimension_numbers = #tpu.dot_dimension_numbers<[1], [0], [0], [1], [0, 0, 1, 1], [], []>} : vector<32x144xbf16>, vector<144x128xbf16>, vector<32x128xf32> -> vector<32x128xf32>
    %7 = arith.addf %3, %6 : vector<32x128xf32>
    %c0_6 = arith.constant 0 : index
    %c0_7 = arith.constant 0 : index
    %8 = vector.load %arg7[%c0_6, %c0_7] : memref<32x128xf32, #tpu.memory_space<vmem>>, vector<32x128xf32>
    tpu.vector_store %arg7[%c0_6, %c0_7], %7 {strides = array<i32>} : memref<32x128xf32, #tpu.memory_space<vmem>>, vector<32x128xf32>,
    %c0_i32_8 = arith.constant 0 : i32
    %9 = arith.cmpi eq, %arg1, %c0_i32_8 : i32
    %10 = arith.extui %9 : i1 to i32
    %c0_i32_9 = arith.constant 0 : i32
    %11 = arith.cmpi ne, %10, %c0_i32_9 : i32
    scf.if %11 {
      %c0_10 = arith.constant 0 : index
      %c0_11 = arith.constant 0 : index
      %12 = vector.load %arg7[%c0_10, %c0_11] : memref<32x128xf32, #tpu.memory_space<vmem>>, vector<32x128xf32>
      %c0_12 = arith.constant 0 : index
      %c0_13 = arith.constant 0 : index
      %13 = vector.load %arg4[%c0_12, %c0_13] : memref<1x128xf32, #tpu.memory_space<vmem>>, vector<1x128xf32>
      %14 = vector.broadcast %13 : vector<1x128xf32> to vector<32x128xf32>
      %15 = arith.mulf %12, %14 : vector<32x128xf32>
      %c0_14 = arith.constant 0 : index
      %c0_15 = arith.constant 0 : index
      %16 = vector.load %arg5[%c0_14, %c0_15] : memref<1x128xf32, #tpu.memory_space<vmem>>, vector<1x128xf32>
      %17 = vector.broadcast %16 : vector<1x128xf32> to vector<32x128xf32>
      %18 = arith.addf %15, %17 : vector<32x128xf32>
      %cst_16 = arith.constant 0.000000e+00 : f32
      %19 = vector.broadcast %cst_16 : f32 to vector<32x128xf32>
      %20 = arith.maximumf %18, %19 : vector<32x128xf32>
      %c0_17 = arith.constant 0 : index
      %c0_18 = arith.constant 0 : index
      %21 = vector.load %arg6[%c0_17, %c0_18] : memref<32x128xf32, #tpu.memory_space<vmem>>, vector<32x128xf32>
      tpu.vector_store %arg6[%c0_17, %c0_18], %20 {strides = array<i32>} : memref<32x128xf32, #tpu.memory_space<vmem>>, vector<32x128xf32>,
    } else {
    }
    return
  }
  func.func @transform_0(%arg0: i32, %arg1: i32) -> (i32, i32) {
    %c0_i32 = arith.constant 0 : i32
    return %arg0, %arg1 : i32, i32
  }
  func.func @transform_1(%arg0: i32, %arg1: i32) -> (i32, i32) {
    %c0_i32 = arith.constant 0 : i32
    %c0_i32_0 = arith.constant 0 : i32
    return %arg1, %c0_i32 : i32, i32
  }
  func.func @transform_2(%arg0: i32, %arg1: i32) -> (i32, i32) {
    %c0_i32 = arith.constant 0 : i32
    %c0_i32_0 = arith.constant 0 : i32
    %c0_i32_1 = arith.constant 0 : i32
    return %c0_i32, %c0_i32_0 : i32, i32
  }
  func.func @transform_3(%arg0: i32, %arg1: i32) -> (i32, i32) {
    %c0_i32 = arith.constant 0 : i32
    %c0_i32_0 = arith.constant 0 : i32
    %c0_i32_1 = arith.constant 0 : i32
    return %c0_i32, %c0_i32_0 : i32, i32
  }
  func.func @transform_4(%arg0: i32, %arg1: i32) -> (i32, i32) {
    %c0_i32 = arith.constant 0 : i32
    %c0_i32_0 = arith.constant 0 : i32
    return %arg0, %c0_i32 : i32, i32
  }
}

module attributes {stable_mosaic.version = 11 : i64} {
  func.func @_conv_mm_kernel(%arg0: i32, %arg1: i32, %arg2: memref<32x288xbf16, #tpu.memory_space<vmem>>, %arg3: memref<288x128xbf16, #tpu.memory_space<vmem>>, %arg4: memref<32x128xf32, #tpu.memory_space<vmem>>, %arg5: memref<32x128xf32, #tpu.memory_space<vmem>>, %arg6: memref<32x128xf32, #tpu.memory_space<vmem>>) attributes {dimension_semantics = [#tpu.dimension_semantics<parallel>, #tpu.dimension_semantics<arbitrary>], iteration_bounds = array<i64: 1, 1>, scalar_prefetch = 0 : i64, scratch_operands = 1 : i64, tpu.core_type = #tpu.core_type<tc>, window_params = [{transform_indices = @transform_0, window_bounds = array<i64: 32, 288>}, {transform_indices = @transform_1, window_bounds = array<i64: 288, 128>}, {transform_indices = @transform_2, window_bounds = array<i64: 32, 128>}, {transform_indices = @transform_3, window_bounds = array<i64: 32, 128>}]} {
    %c0_i32 = arith.constant 0 : i32
    %0 = arith.cmpi eq, %arg1, %c0_i32 : i32
    %1 = arith.extui %0 : i1 to i32
    %c0_i32_0 = arith.constant 0 : i32
    %2 = arith.cmpi ne, %1, %c0_i32_0 : i32
    scf.if %2 {
      %cst_10 = arith.constant 0.000000e+00 : f32
      %12 = vector.broadcast %cst_10 : f32 to vector<32x128xf32>
      %c0_11 = arith.constant 0 : index
      %c0_12 = arith.constant 0 : index
      %13 = vector.load %arg6[%c0_11, %c0_12] : memref<32x128xf32, #tpu.memory_space<vmem>>, vector<32x128xf32>
      tpu.vector_store %arg6[%c0_11, %c0_12], %12 {strides = array<i32>} : memref<32x128xf32, #tpu.memory_space<vmem>>, vector<32x128xf32>,
    } else {
    }
    %c0 = arith.constant 0 : index
    %c0_1 = arith.constant 0 : index
    %3 = vector.load %arg6[%c0, %c0_1] : memref<32x128xf32, #tpu.memory_space<vmem>>, vector<32x128xf32>
    %c0_2 = arith.constant 0 : index
    %c0_3 = arith.constant 0 : index
    %4 = vector.load %arg2[%c0_2, %c0_3] : memref<32x288xbf16, #tpu.memory_space<vmem>>, vector<32x288xbf16>
    %c0_4 = arith.constant 0 : index
    %c0_5 = arith.constant 0 : index
    %5 = vector.load %arg3[%c0_4, %c0_5] : memref<288x128xbf16, #tpu.memory_space<vmem>>, vector<288x128xbf16>
    %cst = arith.constant dense<0.000000e+00> : vector<32x128xf32>
    %6 = tpu.matmul %4, %5, %cst {dimension_numbers = #tpu.dot_dimension_numbers<[1], [0], [0], [1], [0, 0, 1, 1], [], []>} : vector<32x288xbf16>, vector<288x128xbf16>, vector<32x128xf32> -> vector<32x128xf32>
    %7 = arith.addf %3, %6 : vector<32x128xf32>
    %c0_6 = arith.constant 0 : index
    %c0_7 = arith.constant 0 : index
    %8 = vector.load %arg6[%c0_6, %c0_7] : memref<32x128xf32, #tpu.memory_space<vmem>>, vector<32x128xf32>
    tpu.vector_store %arg6[%c0_6, %c0_7], %7 {strides = array<i32>} : memref<32x128xf32, #tpu.memory_space<vmem>>, vector<32x128xf32>,
    %c0_i32_8 = arith.constant 0 : i32
    %9 = arith.cmpi eq, %arg1, %c0_i32_8 : i32
    %10 = arith.extui %9 : i1 to i32
    %c0_i32_9 = arith.constant 0 : i32
    %11 = arith.cmpi ne, %10, %c0_i32_9 : i32
    scf.if %11 {
      %c0_10 = arith.constant 0 : index
      %c0_11 = arith.constant 0 : index
      %12 = vector.load %arg6[%c0_10, %c0_11] : memref<32x128xf32, #tpu.memory_space<vmem>>, vector<32x128xf32>
      %c0_12 = arith.constant 0 : index
      %c0_13 = arith.constant 0 : index
      %13 = vector.load %arg4[%c0_12, %c0_13] : memref<32x128xf32, #tpu.memory_space<vmem>>, vector<32x128xf32>
      %14 = arith.addf %12, %13 : vector<32x128xf32>
      %c0_14 = arith.constant 0 : index
      %c0_15 = arith.constant 0 : index
      %15 = vector.load %arg5[%c0_14, %c0_15] : memref<32x128xf32, #tpu.memory_space<vmem>>, vector<32x128xf32>
      tpu.vector_store %arg5[%c0_14, %c0_15], %14 {strides = array<i32>} : memref<32x128xf32, #tpu.memory_space<vmem>>, vector<32x128xf32>,
    } else {
    }
    return
  }
  func.func @transform_0(%arg0: i32, %arg1: i32) -> (i32, i32) {
    %c0_i32 = arith.constant 0 : i32
    return %arg0, %arg1 : i32, i32
  }
  func.func @transform_1(%arg0: i32, %arg1: i32) -> (i32, i32) {
    %c0_i32 = arith.constant 0 : i32
    %c0_i32_0 = arith.constant 0 : i32
    return %arg1, %c0_i32 : i32, i32
  }
  func.func @transform_2(%arg0: i32, %arg1: i32) -> (i32, i32) {
    %c0_i32 = arith.constant 0 : i32
    %c0_i32_0 = arith.constant 0 : i32
    return %arg0, %c0_i32 : i32, i32
  }
  func.func @transform_3(%arg0: i32, %arg1: i32) -> (i32, i32) {
    %c0_i32 = arith.constant 0 : i32
    %c0_i32_0 = arith.constant 0 : i32
    return %arg0, %c0_i32 : i32, i32
  }
}

module attributes {stable_mosaic.version = 11 : i64} {
  func.func @_conv_mm_kernel(%arg0: i32, %arg1: i32, %arg2: memref<32x16xbf16, #tpu.memory_space<vmem>>, %arg3: memref<16x128xbf16, #tpu.memory_space<vmem>>, %arg4: memref<32x128xf32, #tpu.memory_space<vmem>>, %arg5: memref<32x128xf32, #tpu.memory_space<vmem>>) attributes {dimension_semantics = [#tpu.dimension_semantics<parallel>, #tpu.dimension_semantics<arbitrary>], iteration_bounds = array<i64: 1, 1>, scalar_prefetch = 0 : i64, scratch_operands = 1 : i64, tpu.core_type = #tpu.core_type<tc>, window_params = [{transform_indices = @transform_0, window_bounds = array<i64: 32, 16>}, {transform_indices = @transform_1, window_bounds = array<i64: 16, 128>}, {transform_indices = @transform_2, window_bounds = array<i64: 32, 128>}]} {
    %c0_i32 = arith.constant 0 : i32
    %0 = arith.cmpi eq, %arg1, %c0_i32 : i32
    %1 = arith.extui %0 : i1 to i32
    %c0_i32_0 = arith.constant 0 : i32
    %2 = arith.cmpi ne, %1, %c0_i32_0 : i32
    scf.if %2 {
      %cst_10 = arith.constant 0.000000e+00 : f32
      %12 = vector.broadcast %cst_10 : f32 to vector<32x128xf32>
      %c0_11 = arith.constant 0 : index
      %c0_12 = arith.constant 0 : index
      %13 = vector.load %arg5[%c0_11, %c0_12] : memref<32x128xf32, #tpu.memory_space<vmem>>, vector<32x128xf32>
      tpu.vector_store %arg5[%c0_11, %c0_12], %12 {strides = array<i32>} : memref<32x128xf32, #tpu.memory_space<vmem>>, vector<32x128xf32>,
    } else {
    }
    %c0 = arith.constant 0 : index
    %c0_1 = arith.constant 0 : index
    %3 = vector.load %arg5[%c0, %c0_1] : memref<32x128xf32, #tpu.memory_space<vmem>>, vector<32x128xf32>
    %c0_2 = arith.constant 0 : index
    %c0_3 = arith.constant 0 : index
    %4 = vector.load %arg2[%c0_2, %c0_3] : memref<32x16xbf16, #tpu.memory_space<vmem>>, vector<32x16xbf16>
    %c0_4 = arith.constant 0 : index
    %c0_5 = arith.constant 0 : index
    %5 = vector.load %arg3[%c0_4, %c0_5] : memref<16x128xbf16, #tpu.memory_space<vmem>>, vector<16x128xbf16>
    %cst = arith.constant dense<0.000000e+00> : vector<32x128xf32>
    %6 = tpu.matmul %4, %5, %cst {dimension_numbers = #tpu.dot_dimension_numbers<[1], [0], [0], [1], [0, 0, 1, 1], [], []>} : vector<32x16xbf16>, vector<16x128xbf16>, vector<32x128xf32> -> vector<32x128xf32>
    %7 = arith.addf %3, %6 : vector<32x128xf32>
    %c0_6 = arith.constant 0 : index
    %c0_7 = arith.constant 0 : index
    %8 = vector.load %arg5[%c0_6, %c0_7] : memref<32x128xf32, #tpu.memory_space<vmem>>, vector<32x128xf32>
    tpu.vector_store %arg5[%c0_6, %c0_7], %7 {strides = array<i32>} : memref<32x128xf32, #tpu.memory_space<vmem>>, vector<32x128xf32>,
    %c0_i32_8 = arith.constant 0 : i32
    %9 = arith.cmpi eq, %arg1, %c0_i32_8 : i32
    %10 = arith.extui %9 : i1 to i32
    %c0_i32_9 = arith.constant 0 : i32
    %11 = arith.cmpi ne, %10, %c0_i32_9 : i32
    scf.if %11 {
      %c0_10 = arith.constant 0 : index
      %c0_11 = arith.constant 0 : index
      %12 = vector.load %arg5[%c0_10, %c0_11] : memref<32x128xf32, #tpu.memory_space<vmem>>, vector<32x128xf32>
      %c0_12 = arith.constant 0 : index
      %c0_13 = arith.constant 0 : index
      %13 = vector.load %arg4[%c0_12, %c0_13] : memref<32x128xf32, #tpu.memory_space<vmem>>, vector<32x128xf32>
      tpu.vector_store %arg4[%c0_12, %c0_13], %12 {strides = array<i32>} : memref<32x128xf32, #tpu.memory_space<vmem>>, vector<32x128xf32>,
    } else {
    }
    return
  }
  func.func @transform_0(%arg0: i32, %arg1: i32) -> (i32, i32) {
    %c0_i32 = arith.constant 0 : i32
    return %arg0, %arg1 : i32, i32
  }
  func.func @transform_1(%arg0: i32, %arg1: i32) -> (i32, i32) {
    %c0_i32 = arith.constant 0 : i32
    %c0_i32_0 = arith.constant 0 : i32
    return %arg1, %c0_i32 : i32, i32
  }
  func.func @transform_2(%arg0: i32, %arg1: i32) -> (i32, i32) {
    %c0_i32 = arith.constant 0 : i32
    %c0_i32_0 = arith.constant 0 : i32
    return %arg0, %c0_i32 : i32, i32
  }
}

module attributes {stable_mosaic.version = 11 : i64} {
  func.func @_conv_mm_kernel(%arg0: i32, %arg1: i32, %arg2: memref<32x288xbf16, #tpu.memory_space<vmem>>, %arg3: memref<288x128xbf16, #tpu.memory_space<vmem>>, %arg4: memref<1x128xf32, #tpu.memory_space<vmem>>, %arg5: memref<1x128xf32, #tpu.memory_space<vmem>>, %arg6: memref<32x128xf32, #tpu.memory_space<vmem>>, %arg7: memref<32x128xf32, #tpu.memory_space<vmem>>) attributes {dimension_semantics = [#tpu.dimension_semantics<parallel>, #tpu.dimension_semantics<arbitrary>], iteration_bounds = array<i64: 1, 1>, scalar_prefetch = 0 : i64, scratch_operands = 1 : i64, tpu.core_type = #tpu.core_type<tc>, window_params = [{transform_indices = @transform_0, window_bounds = array<i64: 32, 288>}, {transform_indices = @transform_1, window_bounds = array<i64: 288, 128>}, {pipeline_mode = #tpu.pipeline_mode<synchronous>, transform_indices = @transform_2, window_bounds = array<i64: 1, 128>}, {pipeline_mode = #tpu.pipeline_mode<synchronous>, transform_indices = @transform_3, window_bounds = array<i64: 1, 128>}, {transform_indices = @transform_4, window_bounds = array<i64: 32, 128>}]} {
    %c0_i32 = arith.constant 0 : i32
    %0 = arith.cmpi eq, %arg1, %c0_i32 : i32
    %1 = arith.extui %0 : i1 to i32
    %c0_i32_0 = arith.constant 0 : i32
    %2 = arith.cmpi ne, %1, %c0_i32_0 : i32
    scf.if %2 {
      %cst_10 = arith.constant 0.000000e+00 : f32
      %12 = vector.broadcast %cst_10 : f32 to vector<32x128xf32>
      %c0_11 = arith.constant 0 : index
      %c0_12 = arith.constant 0 : index
      %13 = vector.load %arg7[%c0_11, %c0_12] : memref<32x128xf32, #tpu.memory_space<vmem>>, vector<32x128xf32>
      tpu.vector_store %arg7[%c0_11, %c0_12], %12 {strides = array<i32>} : memref<32x128xf32, #tpu.memory_space<vmem>>, vector<32x128xf32>,
    } else {
    }
    %c0 = arith.constant 0 : index
    %c0_1 = arith.constant 0 : index
    %3 = vector.load %arg7[%c0, %c0_1] : memref<32x128xf32, #tpu.memory_space<vmem>>, vector<32x128xf32>
    %c0_2 = arith.constant 0 : index
    %c0_3 = arith.constant 0 : index
    %4 = vector.load %arg2[%c0_2, %c0_3] : memref<32x288xbf16, #tpu.memory_space<vmem>>, vector<32x288xbf16>
    %c0_4 = arith.constant 0 : index
    %c0_5 = arith.constant 0 : index
    %5 = vector.load %arg3[%c0_4, %c0_5] : memref<288x128xbf16, #tpu.memory_space<vmem>>, vector<288x128xbf16>
    %cst = arith.constant dense<0.000000e+00> : vector<32x128xf32>
    %6 = tpu.matmul %4, %5, %cst {dimension_numbers = #tpu.dot_dimension_numbers<[1], [0], [0], [1], [0, 0, 1, 1], [], []>} : vector<32x288xbf16>, vector<288x128xbf16>, vector<32x128xf32> -> vector<32x128xf32>
    %7 = arith.addf %3, %6 : vector<32x128xf32>
    %c0_6 = arith.constant 0 : index
    %c0_7 = arith.constant 0 : index
    %8 = vector.load %arg7[%c0_6, %c0_7] : memref<32x128xf32, #tpu.memory_space<vmem>>, vector<32x128xf32>
    tpu.vector_store %arg7[%c0_6, %c0_7], %7 {strides = array<i32>} : memref<32x128xf32, #tpu.memory_space<vmem>>, vector<32x128xf32>,
    %c0_i32_8 = arith.constant 0 : i32
    %9 = arith.cmpi eq, %arg1, %c0_i32_8 : i32
    %10 = arith.extui %9 : i1 to i32
    %c0_i32_9 = arith.constant 0 : i32
    %11 = arith.cmpi ne, %10, %c0_i32_9 : i32
    scf.if %11 {
      %c0_10 = arith.constant 0 : index
      %c0_11 = arith.constant 0 : index
      %12 = vector.load %arg7[%c0_10, %c0_11] : memref<32x128xf32, #tpu.memory_space<vmem>>, vector<32x128xf32>
      %c0_12 = arith.constant 0 : index
      %c0_13 = arith.constant 0 : index
      %13 = vector.load %arg4[%c0_12, %c0_13] : memref<1x128xf32, #tpu.memory_space<vmem>>, vector<1x128xf32>
      %14 = vector.broadcast %13 : vector<1x128xf32> to vector<32x128xf32>
      %15 = arith.mulf %12, %14 : vector<32x128xf32>
      %c0_14 = arith.constant 0 : index
      %c0_15 = arith.constant 0 : index
      %16 = vector.load %arg5[%c0_14, %c0_15] : memref<1x128xf32, #tpu.memory_space<vmem>>, vector<1x128xf32>
      %17 = vector.broadcast %16 : vector<1x128xf32> to vector<32x128xf32>
      %18 = arith.addf %15, %17 : vector<32x128xf32>
      %cst_16 = arith.constant 0.000000e+00 : f32
      %19 = vector.broadcast %cst_16 : f32 to vector<32x128xf32>
      %20 = arith.maximumf %18, %19 : vector<32x128xf32>
      %c0_17 = arith.constant 0 : index
      %c0_18 = arith.constant 0 : index
      %21 = vector.load %arg6[%c0_17, %c0_18] : memref<32x128xf32, #tpu.memory_space<vmem>>, vector<32x128xf32>
      tpu.vector_store %arg6[%c0_17, %c0_18], %20 {strides = array<i32>} : memref<32x128xf32, #tpu.memory_space<vmem>>, vector<32x128xf32>,
    } else {
    }
    return
  }
  func.func @transform_0(%arg0: i32, %arg1: i32) -> (i32, i32) {
    %c0_i32 = arith.constant 0 : i32
    return %arg0, %arg1 : i32, i32
  }
  func.func @transform_1(%arg0: i32, %arg1: i32) -> (i32, i32) {
    %c0_i32 = arith.constant 0 : i32
    %c0_i32_0 = arith.constant 0 : i32
    return %arg1, %c0_i32 : i32, i32
  }
  func.func @transform_2(%arg0: i32, %arg1: i32) -> (i32, i32) {
    %c0_i32 = arith.constant 0 : i32
    %c0_i32_0 = arith.constant 0 : i32
    %c0_i32_1 = arith.constant 0 : i32
    return %c0_i32, %c0_i32_0 : i32, i32
  }
  func.func @transform_3(%arg0: i32, %arg1: i32) -> (i32, i32) {
    %c0_i32 = arith.constant 0 : i32
    %c0_i32_0 = arith.constant 0 : i32
    %c0_i32_1 = arith.constant 0 : i32
    return %c0_i32, %c0_i32_0 : i32, i32
  }
  func.func @transform_4(%arg0: i32, %arg1: i32) -> (i32, i32) {
    %c0_i32 = arith.constant 0 : i32
    %c0_i32_0 = arith.constant 0 : i32
    return %arg0, %c0_i32 : i32, i32
  }
}

module attributes {stable_mosaic.version = 11 : i64} {
  func.func @_conv_mm_kernel(%arg0: i32, %arg1: i32, %arg2: memref<16x576xbf16, #tpu.memory_space<vmem>>, %arg3: memref<576x128xbf16, #tpu.memory_space<vmem>>, %arg4: memref<16x128xf32, #tpu.memory_space<vmem>>, %arg5: memref<16x128xf32, #tpu.memory_space<vmem>>, %arg6: memref<16x128xf32, #tpu.memory_space<vmem>>) attributes {dimension_semantics = [#tpu.dimension_semantics<parallel>, #tpu.dimension_semantics<arbitrary>], iteration_bounds = array<i64: 1, 1>, scalar_prefetch = 0 : i64, scratch_operands = 1 : i64, tpu.core_type = #tpu.core_type<tc>, window_params = [{transform_indices = @transform_0, window_bounds = array<i64: 16, 576>}, {transform_indices = @transform_1, window_bounds = array<i64: 576, 128>}, {transform_indices = @transform_2, window_bounds = array<i64: 16, 128>}, {transform_indices = @transform_3, window_bounds = array<i64: 16, 128>}]} {
    %c0_i32 = arith.constant 0 : i32
    %0 = arith.cmpi eq, %arg1, %c0_i32 : i32
    %1 = arith.extui %0 : i1 to i32
    %c0_i32_0 = arith.constant 0 : i32
    %2 = arith.cmpi ne, %1, %c0_i32_0 : i32
    scf.if %2 {
      %cst_10 = arith.constant 0.000000e+00 : f32
      %12 = vector.broadcast %cst_10 : f32 to vector<16x128xf32>
      %c0_11 = arith.constant 0 : index
      %c0_12 = arith.constant 0 : index
      %13 = vector.load %arg6[%c0_11, %c0_12] : memref<16x128xf32, #tpu.memory_space<vmem>>, vector<16x128xf32>
      tpu.vector_store %arg6[%c0_11, %c0_12], %12 {strides = array<i32>} : memref<16x128xf32, #tpu.memory_space<vmem>>, vector<16x128xf32>,
    } else {
    }
    %c0 = arith.constant 0 : index
    %c0_1 = arith.constant 0 : index
    %3 = vector.load %arg6[%c0, %c0_1] : memref<16x128xf32, #tpu.memory_space<vmem>>, vector<16x128xf32>
    %c0_2 = arith.constant 0 : index
    %c0_3 = arith.constant 0 : index
    %4 = vector.load %arg2[%c0_2, %c0_3] : memref<16x576xbf16, #tpu.memory_space<vmem>>, vector<16x576xbf16>
    %c0_4 = arith.constant 0 : index
    %c0_5 = arith.constant 0 : index
    %5 = vector.load %arg3[%c0_4, %c0_5] : memref<576x128xbf16, #tpu.memory_space<vmem>>, vector<576x128xbf16>
    %cst = arith.constant dense<0.000000e+00> : vector<16x128xf32>
    %6 = tpu.matmul %4, %5, %cst {dimension_numbers = #tpu.dot_dimension_numbers<[1], [0], [0], [1], [0, 0, 1, 1], [], []>} : vector<16x576xbf16>, vector<576x128xbf16>, vector<16x128xf32> -> vector<16x128xf32>
    %7 = arith.addf %3, %6 : vector<16x128xf32>
    %c0_6 = arith.constant 0 : index
    %c0_7 = arith.constant 0 : index
    %8 = vector.load %arg6[%c0_6, %c0_7] : memref<16x128xf32, #tpu.memory_space<vmem>>, vector<16x128xf32>
    tpu.vector_store %arg6[%c0_6, %c0_7], %7 {strides = array<i32>} : memref<16x128xf32, #tpu.memory_space<vmem>>, vector<16x128xf32>,
    %c0_i32_8 = arith.constant 0 : i32
    %9 = arith.cmpi eq, %arg1, %c0_i32_8 : i32
    %10 = arith.extui %9 : i1 to i32
    %c0_i32_9 = arith.constant 0 : i32
    %11 = arith.cmpi ne, %10, %c0_i32_9 : i32
    scf.if %11 {
      %c0_10 = arith.constant 0 : index
      %c0_11 = arith.constant 0 : index
      %12 = vector.load %arg6[%c0_10, %c0_11] : memref<16x128xf32, #tpu.memory_space<vmem>>, vector<16x128xf32>
      %c0_12 = arith.constant 0 : index
      %c0_13 = arith.constant 0 : index
      %13 = vector.load %arg4[%c0_12, %c0_13] : memref<16x128xf32, #tpu.memory_space<vmem>>, vector<16x128xf32>
      %14 = arith.addf %12, %13 : vector<16x128xf32>
      %c0_14 = arith.constant 0 : index
      %c0_15 = arith.constant 0 : index
      %15 = vector.load %arg5[%c0_14, %c0_15] : memref<16x128xf32, #tpu.memory_space<vmem>>, vector<16x128xf32>
      tpu.vector_store %arg5[%c0_14, %c0_15], %14 {strides = array<i32>} : memref<16x128xf32, #tpu.memory_space<vmem>>, vector<16x128xf32>,
    } else {
    }
    return
  }
  func.func @transform_0(%arg0: i32, %arg1: i32) -> (i32, i32) {
    %c0_i32 = arith.constant 0 : i32
    return %arg0, %arg1 : i32, i32
  }
  func.func @transform_1(%arg0: i32, %arg1: i32) -> (i32, i32) {
    %c0_i32 = arith.constant 0 : i32
    %c0_i32_0 = arith.constant 0 : i32
    return %arg1, %c0_i32 : i32, i32
  }
  func.func @transform_2(%arg0: i32, %arg1: i32) -> (i32, i32) {
    %c0_i32 = arith.constant 0 : i32
    %c0_i32_0 = arith.constant 0 : i32
    return %arg0, %c0_i32 : i32, i32
  }
  func.func @transform_3(%arg0: i32, %arg1: i32) -> (i32, i32) {
    %c0_i32 = arith.constant 0 : i32
    %c0_i32_0 = arith.constant 0 : i32
    return %arg0, %c0_i32 : i32, i32
  }
}

module attributes {stable_mosaic.version = 11 : i64} {
  func.func @_conv_mm_kernel(%arg0: i32, %arg1: i32, %arg2: memref<16x288xbf16, #tpu.memory_space<vmem>>, %arg3: memref<288x128xbf16, #tpu.memory_space<vmem>>, %arg4: memref<1x128xf32, #tpu.memory_space<vmem>>, %arg5: memref<1x128xf32, #tpu.memory_space<vmem>>, %arg6: memref<16x128xf32, #tpu.memory_space<vmem>>, %arg7: memref<16x128xf32, #tpu.memory_space<vmem>>) attributes {dimension_semantics = [#tpu.dimension_semantics<parallel>, #tpu.dimension_semantics<arbitrary>], iteration_bounds = array<i64: 1, 1>, scalar_prefetch = 0 : i64, scratch_operands = 1 : i64, tpu.core_type = #tpu.core_type<tc>, window_params = [{transform_indices = @transform_0, window_bounds = array<i64: 16, 288>}, {transform_indices = @transform_1, window_bounds = array<i64: 288, 128>}, {pipeline_mode = #tpu.pipeline_mode<synchronous>, transform_indices = @transform_2, window_bounds = array<i64: 1, 128>}, {pipeline_mode = #tpu.pipeline_mode<synchronous>, transform_indices = @transform_3, window_bounds = array<i64: 1, 128>}, {transform_indices = @transform_4, window_bounds = array<i64: 16, 128>}]} {
    %c0_i32 = arith.constant 0 : i32
    %0 = arith.cmpi eq, %arg1, %c0_i32 : i32
    %1 = arith.extui %0 : i1 to i32
    %c0_i32_0 = arith.constant 0 : i32
    %2 = arith.cmpi ne, %1, %c0_i32_0 : i32
    scf.if %2 {
      %cst_10 = arith.constant 0.000000e+00 : f32
      %12 = vector.broadcast %cst_10 : f32 to vector<16x128xf32>
      %c0_11 = arith.constant 0 : index
      %c0_12 = arith.constant 0 : index
      %13 = vector.load %arg7[%c0_11, %c0_12] : memref<16x128xf32, #tpu.memory_space<vmem>>, vector<16x128xf32>
      tpu.vector_store %arg7[%c0_11, %c0_12], %12 {strides = array<i32>} : memref<16x128xf32, #tpu.memory_space<vmem>>, vector<16x128xf32>,
    } else {
    }
    %c0 = arith.constant 0 : index
    %c0_1 = arith.constant 0 : index
    %3 = vector.load %arg7[%c0, %c0_1] : memref<16x128xf32, #tpu.memory_space<vmem>>, vector<16x128xf32>
    %c0_2 = arith.constant 0 : index
    %c0_3 = arith.constant 0 : index
    %4 = vector.load %arg2[%c0_2, %c0_3] : memref<16x288xbf16, #tpu.memory_space<vmem>>, vector<16x288xbf16>
    %c0_4 = arith.constant 0 : index
    %c0_5 = arith.constant 0 : index
    %5 = vector.load %arg3[%c0_4, %c0_5] : memref<288x128xbf16, #tpu.memory_space<vmem>>, vector<288x128xbf16>
    %cst = arith.constant dense<0.000000e+00> : vector<16x128xf32>
    %6 = tpu.matmul %4, %5, %cst {dimension_numbers = #tpu.dot_dimension_numbers<[1], [0], [0], [1], [0, 0, 1, 1], [], []>} : vector<16x288xbf16>, vector<288x128xbf16>, vector<16x128xf32> -> vector<16x128xf32>
    %7 = arith.addf %3, %6 : vector<16x128xf32>
    %c0_6 = arith.constant 0 : index
    %c0_7 = arith.constant 0 : index
    %8 = vector.load %arg7[%c0_6, %c0_7] : memref<16x128xf32, #tpu.memory_space<vmem>>, vector<16x128xf32>
    tpu.vector_store %arg7[%c0_6, %c0_7], %7 {strides = array<i32>} : memref<16x128xf32, #tpu.memory_space<vmem>>, vector<16x128xf32>,
    %c0_i32_8 = arith.constant 0 : i32
    %9 = arith.cmpi eq, %arg1, %c0_i32_8 : i32
    %10 = arith.extui %9 : i1 to i32
    %c0_i32_9 = arith.constant 0 : i32
    %11 = arith.cmpi ne, %10, %c0_i32_9 : i32
    scf.if %11 {
      %c0_10 = arith.constant 0 : index
      %c0_11 = arith.constant 0 : index
      %12 = vector.load %arg7[%c0_10, %c0_11] : memref<16x128xf32, #tpu.memory_space<vmem>>, vector<16x128xf32>
      %c0_12 = arith.constant 0 : index
      %c0_13 = arith.constant 0 : index
      %13 = vector.load %arg4[%c0_12, %c0_13] : memref<1x128xf32, #tpu.memory_space<vmem>>, vector<1x128xf32>
      %14 = vector.broadcast %13 : vector<1x128xf32> to vector<16x128xf32>
      %15 = arith.mulf %12, %14 : vector<16x128xf32>
      %c0_14 = arith.constant 0 : index
      %c0_15 = arith.constant 0 : index
      %16 = vector.load %arg5[%c0_14, %c0_15] : memref<1x128xf32, #tpu.memory_space<vmem>>, vector<1x128xf32>
      %17 = vector.broadcast %16 : vector<1x128xf32> to vector<16x128xf32>
      %18 = arith.addf %15, %17 : vector<16x128xf32>
      %cst_16 = arith.constant 0.000000e+00 : f32
      %19 = vector.broadcast %cst_16 : f32 to vector<16x128xf32>
      %20 = arith.maximumf %18, %19 : vector<16x128xf32>
      %c0_17 = arith.constant 0 : index
      %c0_18 = arith.constant 0 : index
      %21 = vector.load %arg6[%c0_17, %c0_18] : memref<16x128xf32, #tpu.memory_space<vmem>>, vector<16x128xf32>
      tpu.vector_store %arg6[%c0_17, %c0_18], %20 {strides = array<i32>} : memref<16x128xf32, #tpu.memory_space<vmem>>, vector<16x128xf32>,
    } else {
    }
    return
  }
  func.func @transform_0(%arg0: i32, %arg1: i32) -> (i32, i32) {
    %c0_i32 = arith.constant 0 : i32
    return %arg0, %arg1 : i32, i32
  }
  func.func @transform_1(%arg0: i32, %arg1: i32) -> (i32, i32) {
    %c0_i32 = arith.constant 0 : i32
    %c0_i32_0 = arith.constant 0 : i32
    return %arg1, %c0_i32 : i32, i32
  }
  func.func @transform_2(%arg0: i32, %arg1: i32) -> (i32, i32) {
    %c0_i32 = arith.constant 0 : i32
    %c0_i32_0 = arith.constant 0 : i32
    %c0_i32_1 = arith.constant 0 : i32
    return %c0_i32, %c0_i32_0 : i32, i32
  }
  func.func @transform_3(%arg0: i32, %arg1: i32) -> (i32, i32) {
    %c0_i32 = arith.constant 0 : i32
    %c0_i32_0 = arith.constant 0 : i32
    %c0_i32_1 = arith.constant 0 : i32
    return %c0_i32, %c0_i32_0 : i32, i32
  }
  func.func @transform_4(%arg0: i32, %arg1: i32) -> (i32, i32) {
    %c0_i32 = arith.constant 0 : i32
    %c0_i32_0 = arith.constant 0 : i32
    return %arg0, %c0_i32 : i32, i32
  }
}

module attributes {stable_mosaic.version = 11 : i64} {
  func.func @_conv_mm_kernel(%arg0: i32, %arg1: i32, %arg2: memref<16x32xbf16, #tpu.memory_space<vmem>>, %arg3: memref<32x128xbf16, #tpu.memory_space<vmem>>, %arg4: memref<16x128xf32, #tpu.memory_space<vmem>>, %arg5: memref<16x128xf32, #tpu.memory_space<vmem>>) attributes {dimension_semantics = [#tpu.dimension_semantics<parallel>, #tpu.dimension_semantics<arbitrary>], iteration_bounds = array<i64: 1, 1>, scalar_prefetch = 0 : i64, scratch_operands = 1 : i64, tpu.core_type = #tpu.core_type<tc>, window_params = [{transform_indices = @transform_0, window_bounds = array<i64: 16, 32>}, {transform_indices = @transform_1, window_bounds = array<i64: 32, 128>}, {transform_indices = @transform_2, window_bounds = array<i64: 16, 128>}]} {
    %c0_i32 = arith.constant 0 : i32
    %0 = arith.cmpi eq, %arg1, %c0_i32 : i32
    %1 = arith.extui %0 : i1 to i32
    %c0_i32_0 = arith.constant 0 : i32
    %2 = arith.cmpi ne, %1, %c0_i32_0 : i32
    scf.if %2 {
      %cst_10 = arith.constant 0.000000e+00 : f32
      %12 = vector.broadcast %cst_10 : f32 to vector<16x128xf32>
      %c0_11 = arith.constant 0 : index
      %c0_12 = arith.constant 0 : index
      %13 = vector.load %arg5[%c0_11, %c0_12] : memref<16x128xf32, #tpu.memory_space<vmem>>, vector<16x128xf32>
      tpu.vector_store %arg5[%c0_11, %c0_12], %12 {strides = array<i32>} : memref<16x128xf32, #tpu.memory_space<vmem>>, vector<16x128xf32>,
    } else {
    }
    %c0 = arith.constant 0 : index
    %c0_1 = arith.constant 0 : index
    %3 = vector.load %arg5[%c0, %c0_1] : memref<16x128xf32, #tpu.memory_space<vmem>>, vector<16x128xf32>
    %c0_2 = arith.constant 0 : index
    %c0_3 = arith.constant 0 : index
    %4 = vector.load %arg2[%c0_2, %c0_3] : memref<16x32xbf16, #tpu.memory_space<vmem>>, vector<16x32xbf16>
    %c0_4 = arith.constant 0 : index
    %c0_5 = arith.constant 0 : index
    %5 = vector.load %arg3[%c0_4, %c0_5] : memref<32x128xbf16, #tpu.memory_space<vmem>>, vector<32x128xbf16>
    %cst = arith.constant dense<0.000000e+00> : vector<16x128xf32>
    %6 = tpu.matmul %4, %5, %cst {dimension_numbers = #tpu.dot_dimension_numbers<[1], [0], [0], [1], [0, 0, 1, 1], [], []>} : vector<16x32xbf16>, vector<32x128xbf16>, vector<16x128xf32> -> vector<16x128xf32>
    %7 = arith.addf %3, %6 : vector<16x128xf32>
    %c0_6 = arith.constant 0 : index
    %c0_7 = arith.constant 0 : index
    %8 = vector.load %arg5[%c0_6, %c0_7] : memref<16x128xf32, #tpu.memory_space<vmem>>, vector<16x128xf32>
    tpu.vector_store %arg5[%c0_6, %c0_7], %7 {strides = array<i32>} : memref<16x128xf32, #tpu.memory_space<vmem>>, vector<16x128xf32>,
    %c0_i32_8 = arith.constant 0 : i32
    %9 = arith.cmpi eq, %arg1, %c0_i32_8 : i32
    %10 = arith.extui %9 : i1 to i32
    %c0_i32_9 = arith.constant 0 : i32
    %11 = arith.cmpi ne, %10, %c0_i32_9 : i32
    scf.if %11 {
      %c0_10 = arith.constant 0 : index
      %c0_11 = arith.constant 0 : index
      %12 = vector.load %arg5[%c0_10, %c0_11] : memref<16x128xf32, #tpu.memory_space<vmem>>, vector<16x128xf32>
      %c0_12 = arith.constant 0 : index
      %c0_13 = arith.constant 0 : index
      %13 = vector.load %arg4[%c0_12, %c0_13] : memref<16x128xf32, #tpu.memory_space<vmem>>, vector<16x128xf32>
      tpu.vector_store %arg4[%c0_12, %c0_13], %12 {strides = array<i32>} : memref<16x128xf32, #tpu.memory_space<vmem>>, vector<16x128xf32>,
    } else {
    }
    return
  }
  func.func @transform_0(%arg0: i32, %arg1: i32) -> (i32, i32) {
    %c0_i32 = arith.constant 0 : i32
    return %arg0, %arg1 : i32, i32
  }
  func.func @transform_1(%arg0: i32, %arg1: i32) -> (i32, i32) {
    %c0_i32 = arith.constant 0 : i32
    %c0_i32_0 = arith.constant 0 : i32
    return %arg1, %c0_i32 : i32, i32
  }
  func.func @transform_2(%arg0: i32, %arg1: i32) -> (i32, i32) {
    %c0_i32 = arith.constant 0 : i32
    %c0_i32_0 = arith.constant 0 : i32
    return %arg0, %c0_i32 : i32, i32
  }
}

module attributes {stable_mosaic.version = 11 : i64} {
  func.func @_conv_mm_kernel(%arg0: i32, %arg1: i32, %arg2: memref<16x576xbf16, #tpu.memory_space<vmem>>, %arg3: memref<576x128xbf16, #tpu.memory_space<vmem>>, %arg4: memref<1x128xf32, #tpu.memory_space<vmem>>, %arg5: memref<1x128xf32, #tpu.memory_space<vmem>>, %arg6: memref<16x128xf32, #tpu.memory_space<vmem>>, %arg7: memref<16x128xf32, #tpu.memory_space<vmem>>) attributes {dimension_semantics = [#tpu.dimension_semantics<parallel>, #tpu.dimension_semantics<arbitrary>], iteration_bounds = array<i64: 1, 1>, scalar_prefetch = 0 : i64, scratch_operands = 1 : i64, tpu.core_type = #tpu.core_type<tc>, window_params = [{transform_indices = @transform_0, window_bounds = array<i64: 16, 576>}, {transform_indices = @transform_1, window_bounds = array<i64: 576, 128>}, {pipeline_mode = #tpu.pipeline_mode<synchronous>, transform_indices = @transform_2, window_bounds = array<i64: 1, 128>}, {pipeline_mode = #tpu.pipeline_mode<synchronous>, transform_indices = @transform_3, window_bounds = array<i64: 1, 128>}, {transform_indices = @transform_4, window_bounds = array<i64: 16, 128>}]} {
    %c0_i32 = arith.constant 0 : i32
    %0 = arith.cmpi eq, %arg1, %c0_i32 : i32
    %1 = arith.extui %0 : i1 to i32
    %c0_i32_0 = arith.constant 0 : i32
    %2 = arith.cmpi ne, %1, %c0_i32_0 : i32
    scf.if %2 {
      %cst_10 = arith.constant 0.000000e+00 : f32
      %12 = vector.broadcast %cst_10 : f32 to vector<16x128xf32>
      %c0_11 = arith.constant 0 : index
      %c0_12 = arith.constant 0 : index
      %13 = vector.load %arg7[%c0_11, %c0_12] : memref<16x128xf32, #tpu.memory_space<vmem>>, vector<16x128xf32>
      tpu.vector_store %arg7[%c0_11, %c0_12], %12 {strides = array<i32>} : memref<16x128xf32, #tpu.memory_space<vmem>>, vector<16x128xf32>,
    } else {
    }
    %c0 = arith.constant 0 : index
    %c0_1 = arith.constant 0 : index
    %3 = vector.load %arg7[%c0, %c0_1] : memref<16x128xf32, #tpu.memory_space<vmem>>, vector<16x128xf32>
    %c0_2 = arith.constant 0 : index
    %c0_3 = arith.constant 0 : index
    %4 = vector.load %arg2[%c0_2, %c0_3] : memref<16x576xbf16, #tpu.memory_space<vmem>>, vector<16x576xbf16>
    %c0_4 = arith.constant 0 : index
    %c0_5 = arith.constant 0 : index
    %5 = vector.load %arg3[%c0_4, %c0_5] : memref<576x128xbf16, #tpu.memory_space<vmem>>, vector<576x128xbf16>
    %cst = arith.constant dense<0.000000e+00> : vector<16x128xf32>
    %6 = tpu.matmul %4, %5, %cst {dimension_numbers = #tpu.dot_dimension_numbers<[1], [0], [0], [1], [0, 0, 1, 1], [], []>} : vector<16x576xbf16>, vector<576x128xbf16>, vector<16x128xf32> -> vector<16x128xf32>
    %7 = arith.addf %3, %6 : vector<16x128xf32>
    %c0_6 = arith.constant 0 : index
    %c0_7 = arith.constant 0 : index
    %8 = vector.load %arg7[%c0_6, %c0_7] : memref<16x128xf32, #tpu.memory_space<vmem>>, vector<16x128xf32>
    tpu.vector_store %arg7[%c0_6, %c0_7], %7 {strides = array<i32>} : memref<16x128xf32, #tpu.memory_space<vmem>>, vector<16x128xf32>,
    %c0_i32_8 = arith.constant 0 : i32
    %9 = arith.cmpi eq, %arg1, %c0_i32_8 : i32
    %10 = arith.extui %9 : i1 to i32
    %c0_i32_9 = arith.constant 0 : i32
    %11 = arith.cmpi ne, %10, %c0_i32_9 : i32
    scf.if %11 {
      %c0_10 = arith.constant 0 : index
      %c0_11 = arith.constant 0 : index
      %12 = vector.load %arg7[%c0_10, %c0_11] : memref<16x128xf32, #tpu.memory_space<vmem>>, vector<16x128xf32>
      %c0_12 = arith.constant 0 : index
      %c0_13 = arith.constant 0 : index
      %13 = vector.load %arg4[%c0_12, %c0_13] : memref<1x128xf32, #tpu.memory_space<vmem>>, vector<1x128xf32>
      %14 = vector.broadcast %13 : vector<1x128xf32> to vector<16x128xf32>
      %15 = arith.mulf %12, %14 : vector<16x128xf32>
      %c0_14 = arith.constant 0 : index
      %c0_15 = arith.constant 0 : index
      %16 = vector.load %arg5[%c0_14, %c0_15] : memref<1x128xf32, #tpu.memory_space<vmem>>, vector<1x128xf32>
      %17 = vector.broadcast %16 : vector<1x128xf32> to vector<16x128xf32>
      %18 = arith.addf %15, %17 : vector<16x128xf32>
      %cst_16 = arith.constant 0.000000e+00 : f32
      %19 = vector.broadcast %cst_16 : f32 to vector<16x128xf32>
      %20 = arith.maximumf %18, %19 : vector<16x128xf32>
      %c0_17 = arith.constant 0 : index
      %c0_18 = arith.constant 0 : index
      %21 = vector.load %arg6[%c0_17, %c0_18] : memref<16x128xf32, #tpu.memory_space<vmem>>, vector<16x128xf32>
      tpu.vector_store %arg6[%c0_17, %c0_18], %20 {strides = array<i32>} : memref<16x128xf32, #tpu.memory_space<vmem>>, vector<16x128xf32>,
    } else {
    }
    return
  }
  func.func @transform_0(%arg0: i32, %arg1: i32) -> (i32, i32) {
    %c0_i32 = arith.constant 0 : i32
    return %arg0, %arg1 : i32, i32
  }
  func.func @transform_1(%arg0: i32, %arg1: i32) -> (i32, i32) {
    %c0_i32 = arith.constant 0 : i32
    %c0_i32_0 = arith.constant 0 : i32
    return %arg1, %c0_i32 : i32, i32
  }
  func.func @transform_2(%arg0: i32, %arg1: i32) -> (i32, i32) {
    %c0_i32 = arith.constant 0 : i32
    %c0_i32_0 = arith.constant 0 : i32
    %c0_i32_1 = arith.constant 0 : i32
    return %c0_i32, %c0_i32_0 : i32, i32
  }
  func.func @transform_3(%arg0: i32, %arg1: i32) -> (i32, i32) {
    %c0_i32 = arith.constant 0 : i32
    %c0_i32_0 = arith.constant 0 : i32
    %c0_i32_1 = arith.constant 0 : i32
    return %c0_i32, %c0_i32_0 : i32, i32
  }
  func.func @transform_4(%arg0: i32, %arg1: i32) -> (i32, i32) {
    %c0_i32 = arith.constant 0 : i32
    %c0_i32_0 = arith.constant 0 : i32
    return %arg0, %c0_i32 : i32, i32
  }
}

module attributes {stable_mosaic.version = 11 : i64} {
  func.func @_conv_mm_kernel(%arg0: i32, %arg1: i32, %arg2: memref<16x384xbf16, #tpu.memory_space<vmem>>, %arg3: memref<384x128xbf16, #tpu.memory_space<vmem>>, %arg4: memref<16x128xf32, #tpu.memory_space<vmem>>, %arg5: memref<1x128xf32, #tpu.memory_space<vmem>>, %arg6: memref<1x128xf32, #tpu.memory_space<vmem>>, %arg7: memref<16x128xf32, #tpu.memory_space<vmem>>, %arg8: memref<16x128xf32, #tpu.memory_space<vmem>>) attributes {dimension_semantics = [#tpu.dimension_semantics<parallel>, #tpu.dimension_semantics<arbitrary>], iteration_bounds = array<i64: 1, 3>, scalar_prefetch = 0 : i64, scratch_operands = 1 : i64, tpu.core_type = #tpu.core_type<tc>, window_params = [{transform_indices = @transform_0, window_bounds = array<i64: 16, 384>}, {transform_indices = @transform_1, window_bounds = array<i64: 384, 128>}, {transform_indices = @transform_2, window_bounds = array<i64: 16, 128>}, {pipeline_mode = #tpu.pipeline_mode<synchronous>, transform_indices = @transform_3, window_bounds = array<i64: 1, 128>}, {pipeline_mode = #tpu.pipeline_mode<synchronous>, transform_indices = @transform_4, window_bounds = array<i64: 1, 128>}, {transform_indices = @transform_5, window_bounds = array<i64: 16, 128>}]} {
    %c0_i32 = arith.constant 0 : i32
    %0 = arith.cmpi eq, %arg1, %c0_i32 : i32
    %1 = arith.extui %0 : i1 to i32
    %c0_i32_0 = arith.constant 0 : i32
    %2 = arith.cmpi ne, %1, %c0_i32_0 : i32
    scf.if %2 {
      %cst_9 = arith.constant 0.000000e+00 : f32
      %12 = vector.broadcast %cst_9 : f32 to vector<16x128xf32>
      %c0_10 = arith.constant 0 : index
      %c0_11 = arith.constant 0 : index
      %13 = vector.load %arg8[%c0_10, %c0_11] : memref<16x128xf32, #tpu.memory_space<vmem>>, vector<16x128xf32>
      tpu.vector_store %arg8[%c0_10, %c0_11], %12 {strides = array<i32>} : memref<16x128xf32, #tpu.memory_space<vmem>>, vector<16x128xf32>,
    } else {
    }
    %c0 = arith.constant 0 : index
    %c0_1 = arith.constant 0 : index
    %3 = vector.load %arg8[%c0, %c0_1] : memref<16x128xf32, #tpu.memory_space<vmem>>, vector<16x128xf32>
    %c0_2 = arith.constant 0 : index
    %c0_3 = arith.constant 0 : index
    %4 = vector.load %arg2[%c0_2, %c0_3] : memref<16x384xbf16, #tpu.memory_space<vmem>>, vector<16x384xbf16>
    %c0_4 = arith.constant 0 : index
    %c0_5 = arith.constant 0 : index
    %5 = vector.load %arg3[%c0_4, %c0_5] : memref<384x128xbf16, #tpu.memory_space<vmem>>, vector<384x128xbf16>
    %cst = arith.constant dense<0.000000e+00> : vector<16x128xf32>
    %6 = tpu.matmul %4, %5, %cst {dimension_numbers = #tpu.dot_dimension_numbers<[1], [0], [0], [1], [0, 0, 1, 1], [], []>} : vector<16x384xbf16>, vector<384x128xbf16>, vector<16x128xf32> -> vector<16x128xf32>
    %7 = arith.addf %3, %6 : vector<16x128xf32>
    %c0_6 = arith.constant 0 : index
    %c0_7 = arith.constant 0 : index
    %8 = vector.load %arg8[%c0_6, %c0_7] : memref<16x128xf32, #tpu.memory_space<vmem>>, vector<16x128xf32>
    tpu.vector_store %arg8[%c0_6, %c0_7], %7 {strides = array<i32>} : memref<16x128xf32, #tpu.memory_space<vmem>>, vector<16x128xf32>,
    %c2_i32 = arith.constant 2 : i32
    %9 = arith.cmpi eq, %arg1, %c2_i32 : i32
    %10 = arith.extui %9 : i1 to i32
    %c0_i32_8 = arith.constant 0 : i32
    %11 = arith.cmpi ne, %10, %c0_i32_8 : i32
    scf.if %11 {
      %c0_9 = arith.constant 0 : index
      %c0_10 = arith.constant 0 : index
      %12 = vector.load %arg8[%c0_9, %c0_10] : memref<16x128xf32, #tpu.memory_space<vmem>>, vector<16x128xf32>
      %c0_11 = arith.constant 0 : index
      %c0_12 = arith.constant 0 : index
      %13 = vector.load %arg4[%c0_11, %c0_12] : memref<16x128xf32, #tpu.memory_space<vmem>>, vector<16x128xf32>
      %14 = arith.addf %12, %13 : vector<16x128xf32>
      %c0_13 = arith.constant 0 : index
      %c0_14 = arith.constant 0 : index
      %15 = vector.load %arg5[%c0_13, %c0_14] : memref<1x128xf32, #tpu.memory_space<vmem>>, vector<1x128xf32>
      %16 = vector.broadcast %15 : vector<1x128xf32> to vector<16x128xf32>
      %17 = arith.mulf %14, %16 : vector<16x128xf32>
      %c0_15 = arith.constant 0 : index
      %c0_16 = arith.constant 0 : index
      %18 = vector.load %arg6[%c0_15, %c0_16] : memref<1x128xf32, #tpu.memory_space<vmem>>, vector<1x128xf32>
      %19 = vector.broadcast %18 : vector<1x128xf32> to vector<16x128xf32>
      %20 = arith.addf %17, %19 : vector<16x128xf32>
      %cst_17 = arith.constant 0.000000e+00 : f32
      %21 = vector.broadcast %cst_17 : f32 to vector<16x128xf32>
      %22 = arith.maximumf %20, %21 : vector<16x128xf32>
      %c0_18 = arith.constant 0 : index
      %c0_19 = arith.constant 0 : index
      %23 = vector.load %arg7[%c0_18, %c0_19] : memref<16x128xf32, #tpu.memory_space<vmem>>, vector<16x128xf32>
      tpu.vector_store %arg7[%c0_18, %c0_19], %22 {strides = array<i32>} : memref<16x128xf32, #tpu.memory_space<vmem>>, vector<16x128xf32>,
    } else {
    }
    return
  }
  func.func @transform_0(%arg0: i32, %arg1: i32) -> (i32, i32) {
    %c0_i32 = arith.constant 0 : i32
    return %arg0, %arg1 : i32, i32
  }
  func.func @transform_1(%arg0: i32, %arg1: i32) -> (i32, i32) {
    %c0_i32 = arith.constant 0 : i32
    %c0_i32_0 = arith.constant 0 : i32
    return %arg1, %c0_i32 : i32, i32
  }
  func.func @transform_2(%arg0: i32, %arg1: i32) -> (i32, i32) {
    %c0_i32 = arith.constant 0 : i32
    %c0_i32_0 = arith.constant 0 : i32
    return %arg0, %c0_i32 : i32, i32
  }
  func.func @transform_3(%arg0: i32, %arg1: i32) -> (i32, i32) {
    %c0_i32 = arith.constant 0 : i32
    %c0_i32_0 = arith.constant 0 : i32
    %c0_i32_1 = arith.constant 0 : i32
    return %c0_i32, %c0_i32_0 : i32, i32
  }
  func.func @transform_4(%arg0: i32, %arg1: i32) -> (i32, i32) {
    %c0_i32 = arith.constant 0 : i32
    %c0_i32_0 = arith.constant 0 : i32
    %c0_i32_1 = arith.constant 0 : i32
    return %c0_i32, %c0_i32_0 : i32, i32
  }
  func.func @transform_5(%arg0: i32, %arg1: i32) -> (i32, i32) {
    %c0_i32 = arith.constant 0 : i32
    %c0_i32_0 = arith.constant 0 : i32
    return %arg0, %c0_i32 : i32, i32
  }
}

module attributes {stable_mosaic.version = 11 : i64} {
  func.func @_conv_mm_kernel(%arg0: i32, %arg1: i32, %arg2: memref<16x384xbf16, #tpu.memory_space<vmem>>, %arg3: memref<384x128xbf16, #tpu.memory_space<vmem>>, %arg4: memref<16x128xf32, #tpu.memory_space<vmem>>, %arg5: memref<16x128xf32, #tpu.memory_space<vmem>>, %arg6: memref<16x128xf32, #tpu.memory_space<vmem>>) attributes {dimension_semantics = [#tpu.dimension_semantics<parallel>, #tpu.dimension_semantics<arbitrary>], iteration_bounds = array<i64: 1, 3>, scalar_prefetch = 0 : i64, scratch_operands = 1 : i64, tpu.core_type = #tpu.core_type<tc>, window_params = [{transform_indices = @transform_0, window_bounds = array<i64: 16, 384>}, {transform_indices = @transform_1, window_bounds = array<i64: 384, 128>}, {transform_indices = @transform_2, window_bounds = array<i64: 16, 128>}, {transform_indices = @transform_3, window_bounds = array<i64: 16, 128>}]} {
    %c0_i32 = arith.constant 0 : i32
    %0 = arith.cmpi eq, %arg1, %c0_i32 : i32
    %1 = arith.extui %0 : i1 to i32
    %c0_i32_0 = arith.constant 0 : i32
    %2 = arith.cmpi ne, %1, %c0_i32_0 : i32
    scf.if %2 {
      %cst_9 = arith.constant 0.000000e+00 : f32
      %12 = vector.broadcast %cst_9 : f32 to vector<16x128xf32>
      %c0_10 = arith.constant 0 : index
      %c0_11 = arith.constant 0 : index
      %13 = vector.load %arg6[%c0_10, %c0_11] : memref<16x128xf32, #tpu.memory_space<vmem>>, vector<16x128xf32>
      tpu.vector_store %arg6[%c0_10, %c0_11], %12 {strides = array<i32>} : memref<16x128xf32, #tpu.memory_space<vmem>>, vector<16x128xf32>,
    } else {
    }
    %c0 = arith.constant 0 : index
    %c0_1 = arith.constant 0 : index
    %3 = vector.load %arg6[%c0, %c0_1] : memref<16x128xf32, #tpu.memory_space<vmem>>, vector<16x128xf32>
    %c0_2 = arith.constant 0 : index
    %c0_3 = arith.constant 0 : index
    %4 = vector.load %arg2[%c0_2, %c0_3] : memref<16x384xbf16, #tpu.memory_space<vmem>>, vector<16x384xbf16>
    %c0_4 = arith.constant 0 : index
    %c0_5 = arith.constant 0 : index
    %5 = vector.load %arg3[%c0_4, %c0_5] : memref<384x128xbf16, #tpu.memory_space<vmem>>, vector<384x128xbf16>
    %cst = arith.constant dense<0.000000e+00> : vector<16x128xf32>
    %6 = tpu.matmul %4, %5, %cst {dimension_numbers = #tpu.dot_dimension_numbers<[1], [0], [0], [1], [0, 0, 1, 1], [], []>} : vector<16x384xbf16>, vector<384x128xbf16>, vector<16x128xf32> -> vector<16x128xf32>
    %7 = arith.addf %3, %6 : vector<16x128xf32>
    %c0_6 = arith.constant 0 : index
    %c0_7 = arith.constant 0 : index
    %8 = vector.load %arg6[%c0_6, %c0_7] : memref<16x128xf32, #tpu.memory_space<vmem>>, vector<16x128xf32>
    tpu.vector_store %arg6[%c0_6, %c0_7], %7 {strides = array<i32>} : memref<16x128xf32, #tpu.memory_space<vmem>>, vector<16x128xf32>,
    %c2_i32 = arith.constant 2 : i32
    %9 = arith.cmpi eq, %arg1, %c2_i32 : i32
    %10 = arith.extui %9 : i1 to i32
    %c0_i32_8 = arith.constant 0 : i32
    %11 = arith.cmpi ne, %10, %c0_i32_8 : i32
    scf.if %11 {
      %c0_9 = arith.constant 0 : index
      %c0_10 = arith.constant 0 : index
      %12 = vector.load %arg6[%c0_9, %c0_10] : memref<16x128xf32, #tpu.memory_space<vmem>>, vector<16x128xf32>
      %c0_11 = arith.constant 0 : index
      %c0_12 = arith.constant 0 : index
      %13 = vector.load %arg4[%c0_11, %c0_12] : memref<16x128xf32, #tpu.memory_space<vmem>>, vector<16x128xf32>
      %14 = arith.addf %12, %13 : vector<16x128xf32>
      %c0_13 = arith.constant 0 : index
      %c0_14 = arith.constant 0 : index
      %15 = vector.load %arg5[%c0_13, %c0_14] : memref<16x128xf32, #tpu.memory_space<vmem>>, vector<16x128xf32>
      tpu.vector_store %arg5[%c0_13, %c0_14], %14 {strides = array<i32>} : memref<16x128xf32, #tpu.memory_space<vmem>>, vector<16x128xf32>,
    } else {
    }
    return
  }
  func.func @transform_0(%arg0: i32, %arg1: i32) -> (i32, i32) {
    %c0_i32 = arith.constant 0 : i32
    return %arg0, %arg1 : i32, i32
  }
  func.func @transform_1(%arg0: i32, %arg1: i32) -> (i32, i32) {
    %c0_i32 = arith.constant 0 : i32
    %c0_i32_0 = arith.constant 0 : i32
    return %arg1, %c0_i32 : i32, i32
  }
  func.func @transform_2(%arg0: i32, %arg1: i32) -> (i32, i32) {
    %c0_i32 = arith.constant 0 : i32
    %c0_i32_0 = arith.constant 0 : i32
    return %arg0, %c0_i32 : i32, i32
  }
  func.func @transform_3(%arg0: i32, %arg1: i32) -> (i32, i32) {
    %c0_i32 = arith.constant 0 : i32
    %c0_i32_0 = arith.constant 0 : i32
    return %arg0, %c0_i32 : i32, i32
  }
}

module attributes {stable_mosaic.version = 11 : i64} {
  func.func @_conv_mm_kernel(%arg0: i32, %arg1: i32, %arg2: memref<16x64xbf16, #tpu.memory_space<vmem>>, %arg3: memref<64x128xbf16, #tpu.memory_space<vmem>>, %arg4: memref<16x128xf32, #tpu.memory_space<vmem>>, %arg5: memref<16x128xf32, #tpu.memory_space<vmem>>) attributes {dimension_semantics = [#tpu.dimension_semantics<parallel>, #tpu.dimension_semantics<arbitrary>], iteration_bounds = array<i64: 1, 1>, scalar_prefetch = 0 : i64, scratch_operands = 1 : i64, tpu.core_type = #tpu.core_type<tc>, window_params = [{transform_indices = @transform_0, window_bounds = array<i64: 16, 64>}, {transform_indices = @transform_1, window_bounds = array<i64: 64, 128>}, {transform_indices = @transform_2, window_bounds = array<i64: 16, 128>}]} {
    %c0_i32 = arith.constant 0 : i32
    %0 = arith.cmpi eq, %arg1, %c0_i32 : i32
    %1 = arith.extui %0 : i1 to i32
    %c0_i32_0 = arith.constant 0 : i32
    %2 = arith.cmpi ne, %1, %c0_i32_0 : i32
    scf.if %2 {
      %cst_10 = arith.constant 0.000000e+00 : f32
      %12 = vector.broadcast %cst_10 : f32 to vector<16x128xf32>
      %c0_11 = arith.constant 0 : index
      %c0_12 = arith.constant 0 : index
      %13 = vector.load %arg5[%c0_11, %c0_12] : memref<16x128xf32, #tpu.memory_space<vmem>>, vector<16x128xf32>
      tpu.vector_store %arg5[%c0_11, %c0_12], %12 {strides = array<i32>} : memref<16x128xf32, #tpu.memory_space<vmem>>, vector<16x128xf32>,
    } else {
    }
    %c0 = arith.constant 0 : index
    %c0_1 = arith.constant 0 : index
    %3 = vector.load %arg5[%c0, %c0_1] : memref<16x128xf32, #tpu.memory_space<vmem>>, vector<16x128xf32>
    %c0_2 = arith.constant 0 : index
    %c0_3 = arith.constant 0 : index
    %4 = vector.load %arg2[%c0_2, %c0_3] : memref<16x64xbf16, #tpu.memory_space<vmem>>, vector<16x64xbf16>
    %c0_4 = arith.constant 0 : index
    %c0_5 = arith.constant 0 : index
    %5 = vector.load %arg3[%c0_4, %c0_5] : memref<64x128xbf16, #tpu.memory_space<vmem>>, vector<64x128xbf16>
    %cst = arith.constant dense<0.000000e+00> : vector<16x128xf32>
    %6 = tpu.matmul %4, %5, %cst {dimension_numbers = #tpu.dot_dimension_numbers<[1], [0], [0], [1], [0, 0, 1, 1], [], []>} : vector<16x64xbf16>, vector<64x128xbf16>, vector<16x128xf32> -> vector<16x128xf32>
    %7 = arith.addf %3, %6 : vector<16x128xf32>
    %c0_6 = arith.constant 0 : index
    %c0_7 = arith.constant 0 : index
    %8 = vector.load %arg5[%c0_6, %c0_7] : memref<16x128xf32, #tpu.memory_space<vmem>>, vector<16x128xf32>
    tpu.vector_store %arg5[%c0_6, %c0_7], %7 {strides = array<i32>} : memref<16x128xf32, #tpu.memory_space<vmem>>, vector<16x128xf32>,
    %c0_i32_8 = arith.constant 0 : i32
    %9 = arith.cmpi eq, %arg1, %c0_i32_8 : i32
    %10 = arith.extui %9 : i1 to i32
    %c0_i32_9 = arith.constant 0 : i32
    %11 = arith.cmpi ne, %10, %c0_i32_9 : i32
    scf.if %11 {
      %c0_10 = arith.constant 0 : index
      %c0_11 = arith.constant 0 : index
      %12 = vector.load %arg5[%c0_10, %c0_11] : memref<16x128xf32, #tpu.memory_space<vmem>>, vector<16x128xf32>
      %c0_12 = arith.constant 0 : index
      %c0_13 = arith.constant 0 : index
      %13 = vector.load %arg4[%c0_12, %c0_13] : memref<16x128xf32, #tpu.memory_space<vmem>>, vector<16x128xf32>
      tpu.vector_store %arg4[%c0_12, %c0_13], %12 {strides = array<i32>} : memref<16x128xf32, #tpu.memory_space<vmem>>, vector<16x128xf32>,
    } else {
    }
    return
  }
  func.func @transform_0(%arg0: i32, %arg1: i32) -> (i32, i32) {
    %c0_i32 = arith.constant 0 : i32
    return %arg0, %arg1 : i32, i32
  }
  func.func @transform_1(%arg0: i32, %arg1: i32) -> (i32, i32) {
    %c0_i32 = arith.constant 0 : i32
    %c0_i32_0 = arith.constant 0 : i32
    return %arg1, %c0_i32 : i32, i32
  }
  func.func @transform_2(%arg0: i32, %arg1: i32) -> (i32, i32) {
    %c0_i32 = arith.constant 0 : i32
    %c0_i32_0 = arith.constant 0 : i32
    return %arg0, %c0_i32 : i32, i32
  }
}

module attributes {stable_mosaic.version = 11 : i64} {
  func.func @_conv_mm_kernel(%arg0: i32, %arg1: i32, %arg2: memref<16x384xbf16, #tpu.memory_space<vmem>>, %arg3: memref<384x128xbf16, #tpu.memory_space<vmem>>, %arg4: memref<1x128xf32, #tpu.memory_space<vmem>>, %arg5: memref<1x128xf32, #tpu.memory_space<vmem>>, %arg6: memref<16x128xf32, #tpu.memory_space<vmem>>, %arg7: memref<16x128xf32, #tpu.memory_space<vmem>>) attributes {dimension_semantics = [#tpu.dimension_semantics<parallel>, #tpu.dimension_semantics<arbitrary>], iteration_bounds = array<i64: 1, 3>, scalar_prefetch = 0 : i64, scratch_operands = 1 : i64, tpu.core_type = #tpu.core_type<tc>, window_params = [{transform_indices = @transform_0, window_bounds = array<i64: 16, 384>}, {transform_indices = @transform_1, window_bounds = array<i64: 384, 128>}, {pipeline_mode = #tpu.pipeline_mode<synchronous>, transform_indices = @transform_2, window_bounds = array<i64: 1, 128>}, {pipeline_mode = #tpu.pipeline_mode<synchronous>, transform_indices = @transform_3, window_bounds = array<i64: 1, 128>}, {transform_indices = @transform_4, window_bounds = array<i64: 16, 128>}]} {
    %c0_i32 = arith.constant 0 : i32
    %0 = arith.cmpi eq, %arg1, %c0_i32 : i32
    %1 = arith.extui %0 : i1 to i32
    %c0_i32_0 = arith.constant 0 : i32
    %2 = arith.cmpi ne, %1, %c0_i32_0 : i32
    scf.if %2 {
      %cst_9 = arith.constant 0.000000e+00 : f32
      %12 = vector.broadcast %cst_9 : f32 to vector<16x128xf32>
      %c0_10 = arith.constant 0 : index
      %c0_11 = arith.constant 0 : index
      %13 = vector.load %arg7[%c0_10, %c0_11] : memref<16x128xf32, #tpu.memory_space<vmem>>, vector<16x128xf32>
      tpu.vector_store %arg7[%c0_10, %c0_11], %12 {strides = array<i32>} : memref<16x128xf32, #tpu.memory_space<vmem>>, vector<16x128xf32>,
    } else {
    }
    %c0 = arith.constant 0 : index
    %c0_1 = arith.constant 0 : index
    %3 = vector.load %arg7[%c0, %c0_1] : memref<16x128xf32, #tpu.memory_space<vmem>>, vector<16x128xf32>
    %c0_2 = arith.constant 0 : index
    %c0_3 = arith.constant 0 : index
    %4 = vector.load %arg2[%c0_2, %c0_3] : memref<16x384xbf16, #tpu.memory_space<vmem>>, vector<16x384xbf16>
    %c0_4 = arith.constant 0 : index
    %c0_5 = arith.constant 0 : index
    %5 = vector.load %arg3[%c0_4, %c0_5] : memref<384x128xbf16, #tpu.memory_space<vmem>>, vector<384x128xbf16>
    %cst = arith.constant dense<0.000000e+00> : vector<16x128xf32>
    %6 = tpu.matmul %4, %5, %cst {dimension_numbers = #tpu.dot_dimension_numbers<[1], [0], [0], [1], [0, 0, 1, 1], [], []>} : vector<16x384xbf16>, vector<384x128xbf16>, vector<16x128xf32> -> vector<16x128xf32>
    %7 = arith.addf %3, %6 : vector<16x128xf32>
    %c0_6 = arith.constant 0 : index
    %c0_7 = arith.constant 0 : index
    %8 = vector.load %arg7[%c0_6, %c0_7] : memref<16x128xf32, #tpu.memory_space<vmem>>, vector<16x128xf32>
    tpu.vector_store %arg7[%c0_6, %c0_7], %7 {strides = array<i32>} : memref<16x128xf32, #tpu.memory_space<vmem>>, vector<16x128xf32>,
    %c2_i32 = arith.constant 2 : i32
    %9 = arith.cmpi eq, %arg1, %c2_i32 : i32
    %10 = arith.extui %9 : i1 to i32
    %c0_i32_8 = arith.constant 0 : i32
    %11 = arith.cmpi ne, %10, %c0_i32_8 : i32
    scf.if %11 {
      %c0_9 = arith.constant 0 : index
      %c0_10 = arith.constant 0 : index
      %12 = vector.load %arg7[%c0_9, %c0_10] : memref<16x128xf32, #tpu.memory_space<vmem>>, vector<16x128xf32>
      %c0_11 = arith.constant 0 : index
      %c0_12 = arith.constant 0 : index
      %13 = vector.load %arg4[%c0_11, %c0_12] : memref<1x128xf32, #tpu.memory_space<vmem>>, vector<1x128xf32>
      %14 = vector.broadcast %13 : vector<1x128xf32> to vector<16x128xf32>
      %15 = arith.mulf %12, %14 : vector<16x128xf32>
      %c0_13 = arith.constant 0 : index
      %c0_14 = arith.constant 0 : index
      %16 = vector.load %arg5[%c0_13, %c0_14] : memref<1x128xf32, #tpu.memory_space<vmem>>, vector<1x128xf32>
      %17 = vector.broadcast %16 : vector<1x128xf32> to vector<16x128xf32>
      %18 = arith.addf %15, %17 : vector<16x128xf32>
      %cst_15 = arith.constant 0.000000e+00 : f32
      %19 = vector.broadcast %cst_15 : f32 to vector<16x128xf32>
      %20 = arith.maximumf %18, %19 : vector<16x128xf32>
      %c0_16 = arith.constant 0 : index
      %c0_17 = arith.constant 0 : index
      %21 = vector.load %arg6[%c0_16, %c0_17] : memref<16x128xf32, #tpu.memory_space<vmem>>, vector<16x128xf32>
      tpu.vector_store %arg6[%c0_16, %c0_17], %20 {strides = array<i32>} : memref<16x128xf32, #tpu.memory_space<vmem>>, vector<16x128xf32>,
    } else {
    }
    return
  }
  func.func @transform_0(%arg0: i32, %arg1: i32) -> (i32, i32) {
    %c0_i32 = arith.constant 0 : i32
    return %arg0, %arg1 : i32, i32
  }
  func.func @transform_1(%arg0: i32, %arg1: i32) -> (i32, i32) {
    %c0_i32 = arith.constant 0 : i32
    %c0_i32_0 = arith.constant 0 : i32
    return %arg1, %c0_i32 : i32, i32
  }
  func.func @transform_2(%arg0: i32, %arg1: i32) -> (i32, i32) {
    %c0_i32 = arith.constant 0 : i32
    %c0_i32_0 = arith.constant 0 : i32
    %c0_i32_1 = arith.constant 0 : i32
    return %c0_i32, %c0_i32_0 : i32, i32
  }
  func.func @transform_3(%arg0: i32, %arg1: i32) -> (i32, i32) {
    %c0_i32 = arith.constant 0 : i32
    %c0_i32_0 = arith.constant 0 : i32
    %c0_i32_1 = arith.constant 0 : i32
    return %c0_i32, %c0_i32_0 : i32, i32
  }
  func.func @transform_4(%arg0: i32, %arg1: i32) -> (i32, i32) {
    %c0_i32 = arith.constant 0 : i32
    %c0_i32_0 = arith.constant 0 : i32
    return %arg0, %c0_i32 : i32, i32
  }
}

</mosaic_0001>

<bundles_post_ra>
// kernel: wideresnet_forward.16
= control target key start
LH: loop header
LB: loop body
LE: loop exit
PB: predicated region body
PF: predicated region fallthrough
CT: control target
= control target key end

     0   :  { %vm76_vm0 = vcmask 261120   ;;  %s288_s1 = inlined_call_operand.vmem [shape: bf16[32,128], index: 1, kind: input, shape index: {}]   ;;  %s289_s0 = inlined_call_operand.vmem [shape: bf16[64,32], index: 0, kind: input, shape index: {}]   ;;  %s290_s2 = inlined_call_operand.vmem [shape: f32[64,128], index: 2, kind: output, shape index: {}]  }
   0x1   :  { %v225_v0 = vld [vmem:[%s288_s1] sm:$0xff]   ;;  %v226_v1 = vld [vmem:[%s288_s1 + $0x8] sm:$0xff]   ;;  %v228_v3 = vld [vmem:[%s289_s0 + $0x10] sm:$0xff]  }
   0x2   :  { %209 = vmatprep.subr.bf16.mxu0 %v225_v0  ;;  %221 = vmatprep.subr.bf16.mxu1 %v225_v0  ;;  %v227_v2 = vld [vmem:[%s289_s0] sm:$0xff]   ;;  %v229_v4 = vld [vmem:[%s289_s0 + $0x8] sm:$0xff]   ;;  %v230_v5 = vld [vmem:[%s289_s0 + $0x18] sm:$0xff]  }
   0x3   :  { %210 = vmatpush3.bf16.msra.mxu0 %v225_v0  ;;  %223 = vmatpush3.bf16.msra.mxu1 %v225_v0 }
   0x4   :  { %211 = vmatprep.subr.bf16.mxu0 %v226_v1  ;;  %222 = vmatprep.subr.bf16.mxu1 %v226_v1 }
   0x5   :  { %213 = vmatprep.mubr.msk.bf16.mxu0 %vm76_vm0, %v227_v2  ;;  %217 = vmatprep.mubr.msk.bf16.mxu1 %vm76_vm0, %v228_v3 }
   0x7   :  { %212 = vmatpush3.bf16.msra.mxu0 %v226_v1  ;;  %224 = vmatpush3.bf16.msra.mxu1 %v226_v1 }
   0xa   :  { %214 = vmatmul.mubr.msk.bf16.vlgmr.msra.gmra.mrb[0].mxu0 %vm76_vm0, %v229_v4  ;;  %218 = vmatmul.mubr.msk.bf16.vlgmr.msra.gmra.mrb[0].mxu1 %vm76_vm0, %v230_v5 }
  0xdd   :  { %v215_v6 = vpop.f32.mrb[0].mxu0  ;;  %v219_v7 = vpop.f32.mrb[0].mxu1 }
  0xde   :  { %183 = vst [vmem:[%s290_s2 + $0x10] sm:$0xff] %v215_v6  ;;  %187 = vst [vmem:[%s290_s2 + $0x30] sm:$0xff] %v219_v7  ;;  %v123_v8 = vpop.f32.mrb[1].mxu0  ;;  %v139_v9 = vpop.f32.mrb[1].mxu1 }
  0xdf   :  { %181 = vst [vmem:[%s290_s2] sm:$0xff] %v123_v8  ;;  %185 = vst [vmem:[%s290_s2 + $0x20] sm:$0xff] %v139_v9  ;;  %v216_v10 = vpop.f32.mrb[2].mxu0  ;;  %v220_v11 = vpop.f32.mrb[2].mxu1 }
  0xe0   :  { %184 = vst [vmem:[%s290_s2 + $0x18] sm:$0xff] %v216_v10  ;;  %188 = vst [vmem:[%s290_s2 + $0x38] sm:$0xff] %v220_v11  ;;  %v126_v12 = vpop.f32.mrb[3].mxu0  ;;  %v142_v13 = vpop.f32.mrb[3].mxu1 }
  0xe1   :  { %182 = vst [vmem:[%s290_s2 + $0x8] sm:$0xff] %v126_v12  ;;  %186 = vst [vmem:[%s290_s2 + $0x28] sm:$0xff] %v142_v13 }

// kernel: wideresnet_forward.17
= control target key start
LH: loop header
LB: loop body
LE: loop exit
PB: predicated region body
PF: predicated region fallthrough
CT: control target
= control target key end

     0   :  { %v280_v0 = vmov 0   ;;  %vm124_vm0 = vcmask 130048   ;;  %s363_s1 = inlined_call_operand.vmem [shape: bf16[144,128], index: 1, kind: input, shape index: {}]   ;;  %s364_s0 = inlined_call_operand.vmem [shape: bf16[32,144], index: 0, kind: input, shape index: {}]   ;;  %s365_s2 = inlined_call_operand.vmem [shape: f32[1,128], index: 2, kind: input, shape index: {}]   ;;  %s366_s3 = inlined_call_operand.vmem [shape: f32[1,128], index: 3, kind: input, shape index: {}]   ;;  %s367_s4 = inlined_call_operand.vmem [shape: f32[32,128], index: 4, kind: output, shape index: {}]  }
   0x1   :  { %131 = vmatprep.subr.bf16.mxu0 %v280_v0  ;;  %246 = vmatprep.subr.bf16.mxu1 %v280_v0  ;;  %v265_v1 = vld [vmem:[%s363_s1] sm:$0xff]   ;;  %v266_v2 = vld [vmem:[%s363_s1 + $0x8] sm:$0xff]   ;;  %v267_v3 = vld [vmem:[%s363_s1 + $0x10] sm:$0xff]  }
   0x2   :  { %132 = vmatpush1.bf16.msra.mxu0 %v265_v1  ;;  %255 = vmatpush1.bf16.msra.mxu1 %v265_v1  ;;  %v268_v4 = vld [vmem:[%s363_s1 + $0x18] sm:$0xff]   ;;  %v276_v5 = vld [vmem:[%s364_s0 + $0x4] ss:$8 sps:$4 sm:$0xff]   ;;  %v271_v9 = vld [vmem:[%s363_s1 + $0x30] sm:$0xff]  }
   0x3   :  { %133 = vmatprep.subr.bf16.mxu0 %v280_v0  ;;  %247 = vmatprep.subr.bf16.mxu1 %v280_v0  ;;  %v279_v6 = vld [vmem:[%s364_s0 + $0x14] ss:$8 sps:$4 sm:$0xff]   ;;  %v269_v7 = vld [vmem:[%s363_s1 + $0x20] sm:$0xff]   ;;  %v270_v8 = vld [vmem:[%s363_s1 + $0x28] sm:$0xff]  }
   0x4   :  { %242 = vmatprep.mubr.msk.bf16.mxu0 %vm124_vm0, %v276_v5  ;;  %243 = vmatprep.mubr.msk.bf16.mxu1 %vm124_vm0, %v279_v6  ;;  %v272_v10 = vld [vmem:[%s363_s1 + $0x38] sm:$0xff]   ;;  %v273_v11 = vld [vmem:[%s363_s1 + $0x40] sm:$0xff]  }
   0x5   :  { %v274_v12 = vld [vmem:[%s364_s0] ss:$8 sps:$4 sm:$0xff]   ;;  %v277_v13 = vld [vmem:[%s364_s0 + $0x10] ss:$8 sps:$4 sm:$0xff]  }
   0x6   :  { %134 = vmatpush1.bf16.msra.mxu0 %v266_v2  ;;  %256 = vmatpush1.bf16.msra.mxu1 %v266_v2  ;;  %v244_v14 = vld [vmem:[%s365_s2] ss:$0 sm:$0xff] }
   0x7   :  { %135 = vmatprep.subr.bf16.mxu0 %v280_v0  ;;  %248 = vmatprep.subr.bf16.mxu1 %v280_v0  ;;  %v245_v16 = vld [vmem:[%s366_s3] ss:$0 sm:$0xff] }
   0xa   :  { %136 = vmatpush1.bf16.msra.mxu0 %v267_v3  ;;  %257 = vmatpush1.bf16.msra.mxu1 %v267_v3 }
   0xb   :  { %137 = vmatprep.subr.bf16.mxu0 %v280_v0  ;;  %249 = vmatprep.subr.bf16.mxu1 %v280_v0 }
   0xe   :  { %138 = vmatpush1.bf16.msra.mxu0 %v268_v4  ;;  %258 = vmatpush1.bf16.msra.mxu1 %v268_v4 }
   0xf   :  { %139 = vmatprep.subr.bf16.mxu0 %v280_v0  ;;  %250 = vmatprep.subr.bf16.mxu1 %v280_v0 }
  0x12   :  { %140 = vmatpush1.bf16.msra.mxu0 %v269_v7  ;;  %259 = vmatpush1.bf16.msra.mxu1 %v269_v7 }
  0x13   :  { %141 = vmatprep.subr.bf16.mxu0 %v280_v0  ;;  %251 = vmatprep.subr.bf16.mxu1 %v280_v0 }
  0x16   :  { %142 = vmatpush1.bf16.msra.mxu0 %v270_v8  ;;  %260 = vmatpush1.bf16.msra.mxu1 %v270_v8 }
  0x17   :  { %143 = vmatprep.subr.bf16.mxu0 %v280_v0  ;;  %252 = vmatprep.subr.bf16.mxu1 %v280_v0 }
  0x1a   :  { %144 = vmatpush1.bf16.msra.mxu0 %v271_v9  ;;  %261 = vmatpush1.bf16.msra.mxu1 %v271_v9 }
  0x1b   :  { %145 = vmatprep.subr.bf16.mxu0 %v280_v0  ;;  %253 = vmatprep.subr.bf16.mxu1 %v280_v0 }
  0x1e   :  { %146 = vmatpush1.bf16.msra.mxu0 %v272_v10  ;;  %262 = vmatpush1.bf16.msra.mxu1 %v272_v10 }
  0x1f   :  { %147 = vmatprep.subr.bf16.mxu0 %v280_v0  ;;  %254 = vmatprep.subr.bf16.mxu1 %v280_v0 }
  0x22   :  { %148 = vmatpush1.bf16.msra.mxu0 %v273_v11  ;;  %263 = vmatpush1.bf16.msra.mxu1 %v273_v11 }
  0x25   :  { %164 = vmatmul.mubr.bf16.vlgmr.msra.gmra.mrb[0].mxu0 %v274_v12  ;;  %172 = vmatmul.mubr.bf16.vlgmr.msra.gmra.mrb[0].mxu1 %v277_v13 }
  0xf8   :  { %v165_v15 = vpop.f32.mrb[0].mxu0  ;;  %v173_v17 = vpop.f32.mrb[0].mxu1 }
  0xf9   :  { %v202_v18 = vmul.f32 %v244_v14, %v165_v15  ;;  %v204_v19 = vmul.f32 %v244_v14, %v173_v17  ;;  %v167_v20 = vpop.f32.mrb[1].mxu0  ;;  %v175_v21 = vpop.f32.mrb[1].mxu1 }
  0xfa   :  { %v168_v22 = vpop.f32.mrb[2].mxu0  ;;  %v176_v23 = vpop.f32.mrb[2].mxu1 }
  0xfb   :  { %v213_v24 = vadd.f32 %v245_v16, %v202_v18  ;;  %v215_v25 = vadd.f32 %v245_v16, %v204_v19  ;;  %v203_v26 = vmul.f32 %v244_v14, %v168_v22  ;;  %v205_v27 = vmul.f32 %v244_v14, %v176_v23  ;;  %v170_v28 = vpop.f32.mrb[3].mxu0  ;;  %v178_v29 = vpop.f32.mrb[3].mxu1 }
  0xfd   :  { %v217_v30 = vmax.f32 %v213_v24, 0.0  ;;  %v219_v31 = vmax.f32 %v215_v25, 0.0  ;;  %v214_v32 = vadd.f32 %v245_v16, %v203_v26  ;;  %v216_v33 = vadd.f32 %v245_v16, %v205_v27 }
  0xff   :  { %221 = vst [vmem:[%s367_s4] sm:$0xff] %v217_v30  ;;  %223 = vst [vmem:[%s367_s4 + $0x10] sm:$0xff] %v219_v31  ;;  %v218_v34 = vmax.f32 %v214_v32, 0.0  ;;  %v220_v35 = vmax.f32 %v216_v33, 0.0 }
 0x101   :  { %222 = vst [vmem:[%s367_s4 + $0x8] sm:$0xff] %v218_v34  ;;  %224 = vst [vmem:[%s367_s4 + $0x18] sm:$0xff] %v220_v35 }

// kernel: wideresnet_forward.19
= control target key start
LH: loop header
LB: loop body
LE: loop exit
PB: predicated region body
PF: predicated region fallthrough
CT: control target
= control target key end

     0   :  { %vm209_vm0 = vcmask 261120   ;;  %s553_s1 = inlined_call_operand.vmem [shape: bf16[288,128], index: 1, kind: input, shape index: {}]   ;;  %s554_s0 = inlined_call_operand.vmem [shape: bf16[32,288], index: 0, kind: input, shape index: {}]   ;;  %s555_s2 = inlined_call_operand.vmem [shape: f32[32,128], index: 2, kind: input, shape index: {}]   ;;  %s556_s3 = inlined_call_operand.vmem [shape: f32[32,128], index: 3, kind: output, shape index: {}]  }
   0x1   :  { %v411_v0 = vld [vmem:[%s553_s1 + $0x40] sm:$0xff]   ;;  %v413_v2 = vld [vmem:[%s553_s1 + $0x48] sm:$0xff]   ;;  %v415_v4 = vld [vmem:[%s553_s1 + $0x50] sm:$0xff]  }
   0x2   :  { %v412_v1 = vld [vmem:[%s553_s1] sm:$0xff]   ;;  %371 = vmatprep.subr.bf16.mxu0 %v411_v0  ;;  %v414_v3 = vld [vmem:[%s553_s1 + $0x8] sm:$0xff]   ;;  %v416_v5 = vld [vmem:[%s553_s1 + $0x10] sm:$0xff]  }
   0x3   :  { %372 = vmatpush3.bf16.msra.mxu0 %v412_v1  ;;  %v417_v6 = vld [vmem:[%s553_s1 + $0x58] sm:$0xff]   ;;  %v419_v8 = vld [vmem:[%s553_s1 + $0x60] sm:$0xff]   ;;  %v421_v11 = vld [vmem:[%s553_s1 + $0x68] sm:$0xff]  }
   0x4   :  { %373 = vmatprep.subr.bf16.mxu0 %v413_v2  ;;  %v418_v7 = vld [vmem:[%s553_s1 + $0x18] sm:$0xff]   ;;  %v425_v9 = vld [vmem:[%s553_s1 + $0x80] sm:$0xff]   ;;  %v422_v12 = vld [vmem:[%s553_s1 + $0x28] sm:$0xff]  }
   0x5   :  { %v420_v10 = vld [vmem:[%s553_s1 + $0x20] sm:$0xff]   ;;  %403 = vmatprep.subr.bf16.mxu1 %v425_v9  ;;  %v428_v13 = vld [vmem:[%s553_s1 + $0x88] sm:$0xff]   ;;  %v423_v14 = vld [vmem:[%s553_s1 + $0x70] sm:$0xff]  }
   0x6   :  { %404 = vmatpush3.bf16.msra.mxu1 %v425_v9  ;;  %v431_v15 = vld [vmem:[%s554_s0 + $0x4] ss:$12 sps:$4 sm:$0xff]   ;;  %v432_v16 = vld [vmem:[%s554_s0 + $0x8] ss:$12 sps:$4 sm:$0xff]   ;;  %v433_v17 = vld [vmem:[%s554_s0 + $0x20] ss:$12 sps:$4 sm:$0xff]  }
   0x7   :  { %374 = vmatpush3.bf16.msra.mxu0 %v414_v3  ;;  %405 = vmatprep.subr.bf16.mxu1 %v428_v13  ;;  %v424_v18 = vld [vmem:[%s553_s1 + $0x30] sm:$0xff]   ;;  %v426_v19 = vld [vmem:[%s553_s1 + $0x78] sm:$0xff]   ;;  %v429_v21 = vld [vmem:[%s554_s0] ss:$12 sps:$4 sm:$0xff]  }
   0x8   :  { %375 = vmatprep.subr.bf16.mxu0 %v415_v4  ;;  %248 = vmatprep.mubr.bf16.mxu0 %v431_v15  ;;  %v427_v20 = vld [vmem:[%s553_s1 + $0x38] sm:$0xff]   ;;  %v329_v33 = vld [vmem:[%s555_s2] sm:$0xff]  ;;  %v330_v36 = vld [vmem:[%s555_s2 + $0x8] sm:$0xff] }
   0x9   :  { %407 = vmatprep.mubr.msk.bf16.mxu1 %vm209_vm0, %v432_v16  ;;  %v434_v22 = vld [vmem:[%s554_s0 + $0x1c] ss:$12 sps:$4 sm:$0xff]   ;;  %v436_v23 = vld [vmem:[%s554_s0 + $0x18] ss:$12 sps:$4 sm:$0xff]   ;;  %v331_v44 = vld [vmem:[%s555_s2 + $0x10] sm:$0xff] }
   0xa   :  { %406 = vmatpush3.bf16.msra.mxu1 %v428_v13  ;;  %v332_v48 = vld [vmem:[%s555_s2 + $0x18] sm:$0xff] }
   0xb   :  { %376 = vmatpush3.bf16.msra.mxu0 %v416_v5 }
   0xc   :  { %377 = vmatprep.subr.bf16.mxu0 %v417_v6 }
   0xd   :  { %408 = vmatmul.mubr.msk.bf16.vlgmr.msra.gmra.mrb[0].mxu1 %vm209_vm0, %v433_v17 }
   0xf   :  { %378 = vmatpush3.bf16.msra.mxu0 %v418_v7 }
  0x10   :  { %379 = vmatprep.subr.bf16.mxu0 %v419_v8 }
  0x13   :  { %380 = vmatpush3.bf16.msra.mxu0 %v420_v10 }
  0x14   :  { %381 = vmatprep.subr.bf16.mxu0 %v421_v11 }
  0x17   :  { %382 = vmatpush3.bf16.msra.mxu0 %v422_v12 }
  0x18   :  { %383 = vmatprep.subr.bf16.mxu0 %v423_v14 }
  0x1b   :  { %384 = vmatpush3.bf16.msra.mxu0 %v424_v18 }
  0x1c   :  { %385 = vmatprep.subr.bf16.mxu0 %v426_v19 }
  0x1f   :  { %386 = vmatpush3.bf16.msra.mxu0 %v427_v20 }
  0x22   :  { %249 = vmatmul.mubr.bf16.vlgmr.msra.gmra.mrb[0].mxu0 %v429_v21 }
  0x23   :  { %256 = vmatprep.mubr.bf16.mxu0 %v434_v22 }
  0x2a   :  { %257 = vmatmul.mubr.bf16.gmra.mrb[4].mxu0 %v436_v23 }
  0xe0   :  { %v409_v24 = vpop.f32.mrb[0].mxu1 }
  0xe1   :  { %v299_v25 = vpop.f32.mrb[1].mxu1 }
  0xe2   :  { %v410_v26 = vpop.f32.mrb[2].mxu1 }
  0xe3   :  { %v302_v27 = vpop.f32.mrb[3].mxu1 }
  0xf5   :  { %v387_v28 = vpop.f32.mrb[0].mxu0 }
  0xf6   :  { %v388_v29 = vpop.f32.mrb[1].mxu0 }
  0xf7   :  { %v389_v30 = vadd.f32 %v388_v29, %v387_v28  ;;  %v390_v31 = vpop.f32.mrb[2].mxu0 }
  0xf8   :  { %v391_v32 = vpop.f32.mrb[3].mxu0 }
  0xf9   :  { %v392_v34 = vadd.f32 %v391_v32, %v390_v31  ;;  %v300_v35 = vadd.f32 %v389_v30, %v299_v25 }
  0xfb   :  { %v333_v37 = vadd.f32 %v329_v33, %v300_v35  ;;  %v303_v38 = vadd.f32 %v392_v34, %v302_v27 }
  0xfd   :  { %337 = vst [vmem:[%s556_s3] sm:$0xff] %v333_v37  ;;  %v334_v39 = vadd.f32 %v330_v36, %v303_v38  ;;  %v393_v40 = vpop.f32.mrb[4].mxu0 }
  0xfe   :  { %v394_v41 = vpop.f32.mrb[5].mxu0 }
  0xff   :  { %338 = vst [vmem:[%s556_s3 + $0x8] sm:$0xff] %v334_v39  ;;  %v395_v42 = vadd.f32 %v394_v41, %v393_v40  ;;  %v396_v43 = vpop.f32.mrb[6].mxu0 }
 0x100   :  { %v397_v45 = vpop.f32.mrb[7].mxu0 }
 0x101   :  { %v308_v46 = vadd.f32 %v409_v24, %v395_v42  ;;  %v398_v47 = vadd.f32 %v397_v45, %v396_v43 }
 0x103   :  { %v335_v49 = vadd.f32 %v331_v44, %v308_v46  ;;  %v311_v50 = vadd.f32 %v410_v26, %v398_v47 }
 0x105   :  { %339 = vst [vmem:[%s556_s3 + $0x10] sm:$0xff] %v335_v49  ;;  %v336_v51 = vadd.f32 %v332_v48, %v311_v50 }
 0x107   :  { %340 = vst [vmem:[%s556_s3 + $0x18] sm:$0xff] %v336_v51 }

// kernel: wideresnet_forward.18
= control target key start
LH: loop header
LB: loop body
LE: loop exit
PB: predicated region body
PF: predicated region fallthrough
CT: control target
= control target key end

     0   :  { %vm46_vm0 = vcmask 130048   ;;  %s178_s1 = inlined_call_operand.vmem [shape: bf16[16,128], index: 1, kind: input, shape index: {}]   ;;  %s179_s0 = inlined_call_operand.vmem [shape: bf16[32,16], index: 0, kind: input, shape index: {}]   ;;  %s180_s2 = inlined_call_operand.vmem [shape: f32[32,128], index: 2, kind: output, shape index: {}]  }
   0x1   :  { %v139_v0 = vld [vmem:[%s178_s1] sm:$0xff]   ;;  %v141_v2 = vld [vmem:[%s179_s0 + $0x8] sm:$0xff]  }
   0x2   :  { %v140_v1 = vld [vmem:[%s179_s0] sm:$0xff]   ;;  %133 = vmatprep.subr.bf16.mxu0 %v139_v0 }
   0x3   :  { %134 = vmatpush3.bf16.msra.mxu0 %v139_v0  ;;  %135 = vmatprep.mubr.msk.bf16.mxu0 %vm46_vm0, %v140_v1 }
   0x6   :  { %136 = vmatmul.mubr.msk.bf16.vlgmr.msra.gmra.mrb[0].mxu0 %vm46_vm0, %v141_v2 }
  0xd9   :  { %v137_v3 = vpop.f32.mrb[0].mxu0 }
  0xda   :  { %119 = vst [vmem:[%s180_s2 + $0x10] sm:$0xff] %v137_v3  ;;  %v87_v4 = vpop.f32.mrb[1].mxu0 }
  0xdb   :  { %117 = vst [vmem:[%s180_s2] sm:$0xff] %v87_v4  ;;  %v138_v5 = vpop.f32.mrb[2].mxu0 }
  0xdc   :  { %120 = vst [vmem:[%s180_s2 + $0x18] sm:$0xff] %v138_v5  ;;  %v90_v6 = vpop.f32.mrb[3].mxu0 }
  0xdd   :  { %118 = vst [vmem:[%s180_s2 + $0x8] sm:$0xff] %v90_v6 }

// kernel: wideresnet_forward.20
= control target key start
LH: loop header
LB: loop body
LE: loop exit
PB: predicated region body
PF: predicated region fallthrough
CT: control target
= control target key end

     0   :  { %vm212_vm0 = vcmask 261120   ;;  %s575_s1 = inlined_call_operand.vmem [shape: bf16[288,128], index: 1, kind: input, shape index: {}]   ;;  %s576_s0 = inlined_call_operand.vmem [shape: bf16[32,288], index: 0, kind: input, shape index: {}]   ;;  %s577_s2 = inlined_call_operand.vmem [shape: f32[1,128], index: 2, kind: input, shape index: {}]   ;;  %s578_s3 = inlined_call_operand.vmem [shape: f32[1,128], index: 3, kind: input, shape index: {}]   ;;  %s579_s4 = inlined_call_operand.vmem [shape: f32[32,128], index: 4, kind: output, shape index: {}]  }
   0x1   :  { %v434_v0 = vld [vmem:[%s575_s1 + $0x40] sm:$0xff]   ;;  %v436_v2 = vld [vmem:[%s575_s1 + $0x48] sm:$0xff]   ;;  %v438_v4 = vld [vmem:[%s575_s1 + $0x50] sm:$0xff]  }
   0x2   :  { %v435_v1 = vld [vmem:[%s575_s1] sm:$0xff]   ;;  %394 = vmatprep.subr.bf16.mxu0 %v434_v0  ;;  %v437_v3 = vld [vmem:[%s575_s1 + $0x8] sm:$0xff]   ;;  %v439_v5 = vld [vmem:[%s575_s1 + $0x10] sm:$0xff]  }
   0x3   :  { %395 = vmatpush3.bf16.msra.mxu0 %v435_v1  ;;  %v440_v6 = vld [vmem:[%s575_s1 + $0x58] sm:$0xff]   ;;  %v442_v8 = vld [vmem:[%s575_s1 + $0x60] sm:$0xff]   ;;  %v444_v11 = vld [vmem:[%s575_s1 + $0x68] sm:$0xff]  }
   0x4   :  { %396 = vmatprep.subr.bf16.mxu0 %v436_v2  ;;  %v441_v7 = vld [vmem:[%s575_s1 + $0x18] sm:$0xff]   ;;  %v448_v9 = vld [vmem:[%s575_s1 + $0x80] sm:$0xff]   ;;  %v445_v12 = vld [vmem:[%s575_s1 + $0x28] sm:$0xff]  }
   0x5   :  { %v443_v10 = vld [vmem:[%s575_s1 + $0x20] sm:$0xff]   ;;  %426 = vmatprep.subr.bf16.mxu1 %v448_v9  ;;  %v451_v13 = vld [vmem:[%s575_s1 + $0x88] sm:$0xff]   ;;  %v446_v14 = vld [vmem:[%s575_s1 + $0x70] sm:$0xff]  }
   0x6   :  { %427 = vmatpush3.bf16.msra.mxu1 %v448_v9  ;;  %v454_v15 = vld [vmem:[%s576_s0 + $0x4] ss:$12 sps:$4 sm:$0xff]   ;;  %v455_v16 = vld [vmem:[%s576_s0 + $0x8] ss:$12 sps:$4 sm:$0xff]   ;;  %v456_v17 = vld [vmem:[%s576_s0 + $0x20] ss:$12 sps:$4 sm:$0xff]  }
   0x7   :  { %397 = vmatpush3.bf16.msra.mxu0 %v437_v3  ;;  %428 = vmatprep.subr.bf16.mxu1 %v451_v13  ;;  %v447_v18 = vld [vmem:[%s575_s1 + $0x30] sm:$0xff]   ;;  %v449_v19 = vld [vmem:[%s575_s1 + $0x78] sm:$0xff]   ;;  %v452_v21 = vld [vmem:[%s576_s0] ss:$12 sps:$4 sm:$0xff]  }
   0x8   :  { %398 = vmatprep.subr.bf16.mxu0 %v438_v4  ;;  %251 = vmatprep.mubr.bf16.mxu0 %v454_v15  ;;  %v450_v20 = vld [vmem:[%s575_s1 + $0x38] sm:$0xff]   ;;  %v392_v33 = vld [vmem:[%s577_s2] ss:$0 sm:$0xff] }
   0x9   :  { %430 = vmatprep.mubr.msk.bf16.mxu1 %vm212_vm0, %v455_v16  ;;  %v457_v22 = vld [vmem:[%s576_s0 + $0x1c] ss:$12 sps:$4 sm:$0xff]   ;;  %v459_v23 = vld [vmem:[%s576_s0 + $0x18] ss:$12 sps:$4 sm:$0xff]   ;;  %v393_v36 = vld [vmem:[%s578_s3] ss:$0 sm:$0xff] }
   0xa   :  { %429 = vmatpush3.bf16.msra.mxu1 %v451_v13 }
   0xb   :  { %399 = vmatpush3.bf16.msra.mxu0 %v439_v5 }
   0xc   :  { %400 = vmatprep.subr.bf16.mxu0 %v440_v6 }
   0xd   :  { %431 = vmatmul.mubr.msk.bf16.vlgmr.msra.gmra.mrb[0].mxu1 %vm212_vm0, %v456_v17 }
   0xf   :  { %401 = vmatpush3.bf16.msra.mxu0 %v441_v7 }
  0x10   :  { %402 = vmatprep.subr.bf16.mxu0 %v442_v8 }
  0x13   :  { %403 = vmatpush3.bf16.msra.mxu0 %v443_v10 }
  0x14   :  { %404 = vmatprep.subr.bf16.mxu0 %v444_v11 }
  0x17   :  { %405 = vmatpush3.bf16.msra.mxu0 %v445_v12 }
  0x18   :  { %406 = vmatprep.subr.bf16.mxu0 %v446_v14 }
  0x1b   :  { %407 = vmatpush3.bf16.msra.mxu0 %v447_v18 }
  0x1c   :  { %408 = vmatprep.subr.bf16.mxu0 %v449_v19 }
  0x1f   :  { %409 = vmatpush3.bf16.msra.mxu0 %v450_v20 }
  0x22   :  { %252 = vmatmul.mubr.bf16.vlgmr.msra.gmra.mrb[0].mxu0 %v452_v21 }
  0x23   :  { %259 = vmatprep.mubr.bf16.mxu0 %v457_v22 }
  0x2a   :  { %260 = vmatmul.mubr.bf16.gmra.mrb[4].mxu0 %v459_v23 }
  0xe0   :  { %v432_v24 = vpop.f32.mrb[0].mxu1 }
  0xe1   :  { %v302_v25 = vpop.f32.mrb[1].mxu1 }
  0xe2   :  { %v433_v26 = vpop.f32.mrb[2].mxu1 }
  0xe3   :  { %v305_v27 = vpop.f32.mrb[3].mxu1 }
  0xf5   :  { %v410_v28 = vpop.f32.mrb[0].mxu0 }
  0xf6   :  { %v411_v29 = vpop.f32.mrb[1].mxu0 }
  0xf7   :  { %v412_v30 = vadd.f32 %v411_v29, %v410_v28  ;;  %v413_v31 = vpop.f32.mrb[2].mxu0 }
  0xf8   :  { %v414_v32 = vpop.f32.mrb[3].mxu0 }
  0xf9   :  { %v415_v34 = vadd.f32 %v414_v32, %v413_v31  ;;  %v303_v35 = vadd.f32 %v412_v30, %v302_v25 }
  0xfb   :  { %v339_v37 = vmul.f32 %v392_v33, %v303_v35  ;;  %v306_v38 = vadd.f32 %v415_v34, %v305_v27 }
  0xfd   :  { %v350_v39 = vadd.f32 %v393_v36, %v339_v37  ;;  %v340_v40 = vmul.f32 %v392_v33, %v306_v38  ;;  %v416_v41 = vpop.f32.mrb[4].mxu0 }
  0xfe   :  { %v417_v42 = vpop.f32.mrb[5].mxu0 }
  0xff   :  { %v354_v43 = vmax.f32 %v350_v39, 0.0  ;;  %v351_v44 = vadd.f32 %v393_v36, %v340_v40  ;;  %v418_v45 = vadd.f32 %v417_v42, %v416_v41  ;;  %v419_v46 = vpop.f32.mrb[6].mxu0 }
 0x100   :  { %v420_v47 = vpop.f32.mrb[7].mxu0 }
 0x101   :  { %358 = vst [vmem:[%s579_s4] sm:$0xff] %v354_v43  ;;  %v355_v48 = vmax.f32 %v351_v44, 0.0  ;;  %v311_v49 = vadd.f32 %v432_v24, %v418_v45  ;;  %v421_v50 = vadd.f32 %v420_v47, %v419_v46 }
 0x103   :  { %359 = vst [vmem:[%s579_s4 + $0x8] sm:$0xff] %v355_v48  ;;  %v341_v51 = vmul.f32 %v392_v33, %v311_v49  ;;  %v314_v52 = vadd.f32 %v433_v26, %v421_v50 }
 0x105   :  { %v352_v53 = vadd.f32 %v393_v36, %v341_v51  ;;  %v342_v54 = vmul.f32 %v392_v33, %v314_v52 }
 0x107   :  { %v356_v55 = vmax.f32 %v352_v53, 0.0  ;;  %v353_v56 = vadd.f32 %v393_v36, %v342_v54 }
 0x109   :  { %360 = vst [vmem:[%s579_s4 + $0x10] sm:$0xff] %v356_v55  ;;  %v357_v57 = vmax.f32 %v353_v56, 0.0 }
 0x10b   :  { %361 = vst [vmem:[%s579_s4 + $0x18] sm:$0xff] %v357_v57 }

// kernel: wideresnet_forward.24
= control target key start
LH: loop header
LB: loop body
LE: loop exit
PB: predicated region body
PF: predicated region fallthrough
CT: control target
= control target key end

     0   :  { %v636_v34 = vmov 0.0   ;;  %vm637_vm0 = vmmov 0   ;;  %vm342_vm1 = vcmask 523264   ;;  %s793_s1 = inlined_call_operand.vmem [shape: bf16[576,128], index: 1, kind: input, shape index: {}]   ;;  %s794_s0 = inlined_call_operand.vmem [shape: bf16[16,576], index: 0, kind: input, shape index: {}]   ;;  %s795_s2 = inlined_call_operand.vmem [shape: f32[16,128], index: 2, kind: input, shape index: {}]   ;;  %s796_s3 = inlined_call_operand.vmem [shape: f32[16,128], index: 3, kind: output, shape index: {}]  }
   0x1   :  { %v593_v0 = vld [vmem:[%s793_s1 + $0x40] sm:$0xff]   ;;  %v597_v4 = vld [vmem:[%s793_s1 + $0x48] sm:$0xff]   ;;  %v601_v8 = vld [vmem:[%s793_s1 + $0x50] sm:$0xff]  }
   0x2   :  { %v594_v1 = vld [vmem:[%s793_s1 + $0xc0] sm:$0xff]   ;;  %530 = vmatprep.subr.bf16.mxu0 %v593_v0  ;;  %v598_v5 = vld [vmem:[%s793_s1 + $0xc8] sm:$0xff]   ;;  %v602_v9 = vld [vmem:[%s793_s1 + $0xd0] sm:$0xff]  }
   0x3   :  { %v595_v2 = vld [vmem:[%s793_s1] sm:$0xff]   ;;  %552 = vmatprep.subr.bf16.mxu1 %v594_v1  ;;  %v599_v6 = vld [vmem:[%s793_s1 + $0x8] sm:$0xff]   ;;  %v603_v10 = vld [vmem:[%s793_s1 + $0x10] sm:$0xff]  }
   0x4   :  { %v596_v3 = vld [vmem:[%s793_s1 + $0x80] sm:$0xff]   ;;  %531 = vmatpush3.bf16.msra.mxu0 %v595_v2  ;;  %v600_v7 = vld [vmem:[%s793_s1 + $0x88] sm:$0xff]   ;;  %v604_v11 = vld [vmem:[%s793_s1 + $0x90] sm:$0xff]  }
   0x5   :  { %553 = vmatpush3.bf16.msra.mxu1 %v596_v3  ;;  %532 = vmatprep.subr.bf16.mxu0 %v597_v4  ;;  %v605_v12 = vld [vmem:[%s793_s1 + $0x58] sm:$0xff]   ;;  %v609_v16 = vld [vmem:[%s793_s1 + $0x60] sm:$0xff]   ;;  %v613_v20 = vld [vmem:[%s793_s1 + $0x68] sm:$0xff]  }
   0x6   :  { %554 = vmatprep.subr.bf16.mxu1 %v598_v5  ;;  %v606_v13 = vld [vmem:[%s793_s1 + $0xd8] sm:$0xff]   ;;  %v610_v17 = vld [vmem:[%s793_s1 + $0xe0] sm:$0xff]   ;;  %v614_v21 = vld [vmem:[%s793_s1 + $0xe8] sm:$0xff]  }
   0x7   :  { %v607_v14 = vld [vmem:[%s793_s1 + $0x18] sm:$0xff]   ;;  %v611_v18 = vld [vmem:[%s793_s1 + $0x20] sm:$0xff]   ;;  %v615_v22 = vld [vmem:[%s793_s1 + $0x28] sm:$0xff]  }
   0x8   :  { %533 = vmatpush3.bf16.msra.mxu0 %v599_v6  ;;  %v608_v15 = vld [vmem:[%s793_s1 + $0x98] sm:$0xff]   ;;  %v612_v19 = vld [vmem:[%s793_s1 + $0xa0] sm:$0xff]   ;;  %v616_v23 = vld [vmem:[%s793_s1 + $0xa8] sm:$0xff]  }
   0x9   :  { %555 = vmatpush3.bf16.msra.mxu1 %v600_v7  ;;  %534 = vmatprep.subr.bf16.mxu0 %v601_v8  ;;  %v617_v24 = vld [vmem:[%s793_s1 + $0x70] sm:$0xff]   ;;  %v621_v28 = vld [vmem:[%s793_s1 + $0x78] sm:$0xff]   ;;  %v630_v36 = vld [vmem:[%s794_s0 + $0xc] ss:$20 sps:$4 sm:$0xff]  }
   0xa   :  { %556 = vmatprep.subr.bf16.mxu1 %v602_v9  ;;  %v618_v25 = vld [vmem:[%s793_s1 + $0xf0] sm:$0xff]   ;;  %v622_v29 = vld [vmem:[%s793_s1 + $0xf8] sm:$0xff]   ;;  %v631_v37 = vld [vmem:[%s793_s1 + $0x100] sm:$0xff]   ;;  %419 = vmatprep.mubr.bf16.mxu1 %v630_v36 }
   0xb   :  { %v619_v26 = vld [vmem:[%s793_s1 + $0x30] sm:$0xff]   ;;  %v623_v30 = vld [vmem:[%s793_s1 + $0x38] sm:$0xff]   ;;  %v632_v38 = vld [vmem:[%s793_s1 + $0x108] sm:$0xff]  }
   0xc   :  { %535 = vmatpush3.bf16.msra.mxu0 %v603_v10  ;;  %v620_v27 = vld [vmem:[%s793_s1 + $0xb0] sm:$0xff]   ;;  %v624_v31 = vld [vmem:[%s793_s1 + $0xb8] sm:$0xff]   ;;  %v478_v57 = vld [vmem:[%s795_s2] sm:$0xff] }
   0xd   :  { %557 = vmatpush3.bf16.msra.mxu1 %v604_v11  ;;  %536 = vmatprep.subr.bf16.mxu0 %v605_v12  ;;  %v625_v32 = vld [vmem:[%s794_s0] ss:$20 sps:$4 sm:$0xff]   ;;  %v627_v33 = vld [vmem:[%s794_s0 + $0x4] ss:$20 sps:$4 sm:$0xff]   ;;  %v628_v35 = vld [vmem:[%s794_s0 + $0x8] ss:$20 sps:$4 sm:$0xff]  }
   0xe   :  { %558 = vmatprep.subr.bf16.mxu1 %v606_v13  ;;  %378 = vmatprep.mubr.bf16.mxu0 %v627_v33  ;;  %v633_v39 = vld [vmem:[%s793_s1 + $0x110] sm:$0xff]   ;;  %v634_v40 = vld [vmem:[%s793_s1 + $0x118] sm:$0xff]   ;;  %v479_v61 = vld [vmem:[%s795_s2 + $0x8] sm:$0xff] }
   0xf   :  { %v635_v41 = vld [vmem:[%s794_s0 + $0x10] ss:$20 sps:$4 sm:$0xff]  }
  0x10   :  { %537 = vmatpush3.bf16.msra.mxu0 %v607_v14 }
  0x11   :  { %559 = vmatpush3.bf16.msra.mxu1 %v608_v15  ;;  %538 = vmatprep.subr.bf16.mxu0 %v609_v16 }
  0x12   :  { %560 = vmatprep.subr.bf16.mxu1 %v610_v17 }
  0x14   :  { %539 = vmatpush3.bf16.msra.mxu0 %v611_v18 }
  0x15   :  { %561 = vmatpush3.bf16.msra.mxu1 %v612_v19  ;;  %540 = vmatprep.subr.bf16.mxu0 %v613_v20 }
  0x16   :  { %562 = vmatprep.subr.bf16.mxu1 %v614_v21 }
  0x18   :  { %541 = vmatpush3.bf16.msra.mxu0 %v615_v22 }
  0x19   :  { %563 = vmatpush3.bf16.msra.mxu1 %v616_v23  ;;  %542 = vmatprep.subr.bf16.mxu0 %v617_v24 }
  0x1a   :  { %564 = vmatprep.subr.bf16.mxu1 %v618_v25 }
  0x1c   :  { %543 = vmatpush3.bf16.msra.mxu0 %v619_v26 }
  0x1d   :  { %565 = vmatpush3.bf16.msra.mxu1 %v620_v27  ;;  %544 = vmatprep.subr.bf16.mxu0 %v621_v28 }
  0x1e   :  { %566 = vmatprep.subr.bf16.mxu1 %v622_v29 }
  0x20   :  { %545 = vmatpush3.bf16.msra.mxu0 %v623_v30 }
  0x21   :  { %567 = vmatpush3.bf16.msra.mxu1 %v624_v31  ;;  %579 = vmatprep.subr.bf16.mxu0 %v636_v34 }
  0x23   :  { %379 = vmatmul.mubr.bf16.vlgmr.msra.gmra.mrb[0].mxu0 %v625_v32 }
  0x24   :  { %420 = vmatmul.mubr.bf16.vlgmr.msra.gmra.mrb[0].mxu1 %v628_v35  ;;  %580 = vmatpush3.bf16.msra.mxu0 %v631_v37 }
  0x25   :  { %581 = vmatprep.subr.bf16.mxu0 %v636_v34  ;;  %587 = vmatprep.mubr.msk.bf16.mxu0 %vm637_vm0, %v636_v34 }
  0x28   :  { %582 = vmatpush3.bf16.msra.mxu0 %v632_v38 }
  0x29   :  { %583 = vmatprep.subr.bf16.mxu0 %v636_v34 }
  0x2c   :  { %584 = vmatpush3.bf16.msra.mxu0 %v633_v39 }
  0x2d   :  { %585 = vmatprep.subr.bf16.mxu0 %v636_v34 }
  0x30   :  { %586 = vmatpush3.bf16.msra.mxu0 %v634_v40 }
  0x33   :  { %588 = vmatmul.mubr.msk.bf16.vlgmr.msra.gmra.mrb[4].mxu0 %vm342_vm1, %v635_v41 }
  0xf6   :  { %v546_v42 = vpop.f32.mrb[0].mxu0 }
  0xf7   :  { %v568_v43 = vpop.f32.mrb[0].mxu1  ;;  %v547_v44 = vpop.f32.mrb[1].mxu0 }
  0xf8   :  { %v548_v45 = vadd.f32 %v547_v44, %v546_v42  ;;  %v569_v46 = vpop.f32.mrb[1].mxu1  ;;  %v549_v47 = vpop.f32.mrb[2].mxu0 }
  0xf9   :  { %v570_v48 = vadd.f32 %v569_v46, %v568_v43  ;;  %v571_v49 = vpop.f32.mrb[2].mxu1  ;;  %v550_v50 = vpop.f32.mrb[3].mxu0 }
  0xfa   :  { %v551_v51 = vadd.f32 %v550_v50, %v549_v47  ;;  %v572_v52 = vpop.f32.mrb[3].mxu1 }
  0xfb   :  { %v573_v53 = vadd.f32 %v572_v52, %v571_v49  ;;  %v422_v54 = vadd.f32 %v570_v48, %v548_v45 }
  0xfd   :  { %v425_v55 = vadd.f32 %v573_v53, %v551_v51 }
 0x106   :  { %v462_v56 = vpop.f32.mrb[4].mxu0 }
 0x107   :  { %v463_v58 = vadd.f32 %v462_v56, %v422_v54  ;;  %v589_v59 = vpop.f32.mrb[5].mxu0 }
 0x108   :  { %v465_v60 = vpop.f32.mrb[6].mxu0 }
 0x109   :  { %v480_v62 = vadd.f32 %v478_v57, %v463_v58  ;;  %v466_v63 = vadd.f32 %v465_v60, %v425_v55  ;;  %v590_v0 = vpop.f32.mrb[7].mxu0 }
 0x10b   :  { %482 = vst [vmem:[%s796_s3] sm:$0xff] %v480_v62  ;;  %v481_v1 = vadd.f32 %v479_v61, %v466_v63 }
 0x10d   :  { %483 = vst [vmem:[%s796_s3 + $0x8] sm:$0xff] %v481_v1 }

// kernel: wideresnet_forward.23
= control target key start
LH: loop header
LB: loop body
LE: loop exit
PB: predicated region body
PF: predicated region fallthrough
CT: control target
= control target key end

     0   :  { %v123_v0 = vmov 0.0   ;;  %vm124_vm0 = vmmov 0   ;;  %vm43_vm1 = vcmask 261120   ;;  %s155_s1 = inlined_call_operand.vmem [shape: bf16[32,128], index: 1, kind: input, shape index: {}]   ;;  %s156_s0 = inlined_call_operand.vmem [shape: bf16[16,32], index: 0, kind: input, shape index: {}]   ;;  %s157_s2 = inlined_call_operand.vmem [shape: f32[16,128], index: 2, kind: output, shape index: {}]  }
   0x1   :  { %110 = vmatprep.subr.bf16.mxu0 %v123_v0  ;;  %v120_v1 = vld [vmem:[%s155_s1] sm:$0xff]   ;;  %114 = vmatprep.mubr.msk.bf16.mxu0 %vm124_vm0, %v123_v0  ;;  %v121_v2 = vld [vmem:[%s155_s1 + $0x8] sm:$0xff]  }
   0x2   :  { %111 = vmatpush3.bf16.msra.mxu0 %v120_v1  ;;  %v122_v3 = vld [vmem:[%s156_s0] sm:$0xff]  }
   0x3   :  { %112 = vmatprep.subr.bf16.mxu0 %v123_v0 }
   0x6   :  { %113 = vmatpush3.bf16.msra.mxu0 %v121_v2 }
   0x9   :  { %115 = vmatmul.mubr.msk.bf16.vlgmr.msra.gmra.mrb[0].mxu0 %vm43_vm1, %v122_v3 }
  0xdc   :  { %v81_v4 = vpop.f32.mrb[0].mxu0 }
  0xdd   :  { %97 = vst [vmem:[%s157_s2] sm:$0xff] %v81_v4  ;;  %v116_v5 = vpop.f32.mrb[1].mxu0 }
  0xde   :  { %v84_v6 = vpop.f32.mrb[2].mxu0 }
  0xdf   :  { %98 = vst [vmem:[%s157_s2 + $0x8] sm:$0xff] %v84_v6  ;;  %v117_v7 = vpop.f32.mrb[3].mxu0 }

// kernel: wideresnet_forward.22
= control target key start
LH: loop header
LB: loop body
LE: loop exit
PB: predicated region body
PF: predicated region fallthrough
CT: control target
= control target key end

     0   :  { %v391_v1 = vmov 0.0   ;;  %vm392_vm0 = vmmov 0   ;;  %vm189_vm1 = vcmask 261120   ;;  %s493_s1 = inlined_call_operand.vmem [shape: bf16[288,128], index: 1, kind: input, shape index: {}]   ;;  %s494_s0 = inlined_call_operand.vmem [shape: bf16[16,288], index: 0, kind: input, shape index: {}]   ;;  %s495_s2 = inlined_call_operand.vmem [shape: f32[1,128], index: 2, kind: input, shape index: {}]   ;;  %s496_s3 = inlined_call_operand.vmem [shape: f32[1,128], index: 3, kind: input, shape index: {}]   ;;  %s497_s4 = inlined_call_operand.vmem [shape: f32[16,128], index: 4, kind: output, shape index: {}]  }
   0x1   :  { %v369_v0 = vld [vmem:[%s493_s1 + $0x40] sm:$0xff]   ;;  %359 = vmatprep.subr.bf16.mxu1 %v391_v1  ;;  %363 = vmatprep.mubr.msk.bf16.mxu1 %vm392_vm0, %v391_v1  ;;  %v371_v3 = vld [vmem:[%s493_s1 + $0x48] sm:$0xff]   ;;  %v373_v5 = vld [vmem:[%s493_s1 + $0x50] sm:$0xff]  }
   0x2   :  { %v370_v2 = vld [vmem:[%s493_s1] sm:$0xff]   ;;  %334 = vmatprep.subr.bf16.mxu0 %v369_v0  ;;  %v372_v4 = vld [vmem:[%s493_s1 + $0x8] sm:$0xff]   ;;  %v374_v6 = vld [vmem:[%s493_s1 + $0x10] sm:$0xff]  }
   0x3   :  { %335 = vmatpush3.bf16.msra.mxu0 %v370_v2  ;;  %v375_v7 = vld [vmem:[%s493_s1 + $0x58] sm:$0xff]   ;;  %v377_v9 = vld [vmem:[%s493_s1 + $0x60] sm:$0xff]   ;;  %v379_v12 = vld [vmem:[%s493_s1 + $0x68] sm:$0xff]  }
   0x4   :  { %336 = vmatprep.subr.bf16.mxu0 %v371_v3  ;;  %v376_v8 = vld [vmem:[%s493_s1 + $0x18] sm:$0xff]   ;;  %v383_v10 = vld [vmem:[%s493_s1 + $0x80] sm:$0xff]   ;;  %v386_v13 = vld [vmem:[%s493_s1 + $0x88] sm:$0xff]  }
   0x5   :  { %v378_v11 = vld [vmem:[%s493_s1 + $0x20] sm:$0xff]   ;;  %360 = vmatpush3.bf16.msra.mxu1 %v383_v10  ;;  %v380_v14 = vld [vmem:[%s493_s1 + $0x28] sm:$0xff]   ;;  %v381_v16 = vld [vmem:[%s493_s1 + $0x70] sm:$0xff]  }
   0x6   :  { %361 = vmatprep.subr.bf16.mxu1 %v391_v1  ;;  %v389_v15 = vld [vmem:[%s494_s0 + $0x4] ss:$12 sps:$4 sm:$0xff]   ;;  %v390_v17 = vld [vmem:[%s494_s0 + $0x8] ss:$12 sps:$4 sm:$0xff]   ;;  %v384_v19 = vld [vmem:[%s493_s1 + $0x78] sm:$0xff]  }
   0x7   :  { %337 = vmatpush3.bf16.msra.mxu0 %v372_v4  ;;  %225 = vmatprep.mubr.bf16.mxu0 %v389_v15  ;;  %v382_v18 = vld [vmem:[%s493_s1 + $0x30] sm:$0xff]   ;;  %v385_v20 = vld [vmem:[%s493_s1 + $0x38] sm:$0xff]   ;;  %v387_v21 = vld [vmem:[%s494_s0] ss:$12 sps:$4 sm:$0xff]  }
   0x8   :  { %338 = vmatprep.subr.bf16.mxu0 %v373_v5  ;;  %v332_v30 = vld [vmem:[%s495_s2] ss:$0 sm:$0xff] }
   0x9   :  { %362 = vmatpush3.bf16.msra.mxu1 %v386_v13  ;;  %v333_v34 = vld [vmem:[%s496_s3] ss:$0 sm:$0xff] }
   0xb   :  { %339 = vmatpush3.bf16.msra.mxu0 %v374_v6 }
   0xc   :  { %340 = vmatprep.subr.bf16.mxu0 %v375_v7  ;;  %364 = vmatmul.mubr.msk.bf16.vlgmr.msra.gmra.mrb[0].mxu1 %vm189_vm1, %v390_v17 }
   0xf   :  { %341 = vmatpush3.bf16.msra.mxu0 %v376_v8 }
  0x10   :  { %342 = vmatprep.subr.bf16.mxu0 %v377_v9 }
  0x13   :  { %343 = vmatpush3.bf16.msra.mxu0 %v378_v11 }
  0x14   :  { %344 = vmatprep.subr.bf16.mxu0 %v379_v12 }
  0x17   :  { %345 = vmatpush3.bf16.msra.mxu0 %v380_v14 }
  0x18   :  { %346 = vmatprep.subr.bf16.mxu0 %v381_v16 }
  0x1b   :  { %347 = vmatpush3.bf16.msra.mxu0 %v382_v18 }
  0x1c   :  { %348 = vmatprep.subr.bf16.mxu0 %v384_v19 }
  0x1f   :  { %349 = vmatpush3.bf16.msra.mxu0 %v385_v20 }
  0x22   :  { %226 = vmatmul.mubr.bf16.vlgmr.msra.gmra.mrb[0].mxu0 %v387_v21 }
  0xdf   :  { %v268_v22 = vpop.f32.mrb[0].mxu1 }
  0xe0   :  { %v365_v23 = vpop.f32.mrb[1].mxu1 }
  0xe1   :  { %v271_v24 = vpop.f32.mrb[2].mxu1 }
  0xe2   :  { %v366_v25 = vpop.f32.mrb[3].mxu1 }
  0xf5   :  { %v350_v26 = vpop.f32.mrb[0].mxu0 }
  0xf6   :  { %v351_v27 = vpop.f32.mrb[1].mxu0 }
  0xf7   :  { %v352_v28 = vadd.f32 %v351_v27, %v350_v26  ;;  %v353_v29 = vpop.f32.mrb[2].mxu0 }
  0xf8   :  { %v354_v31 = vpop.f32.mrb[3].mxu0 }
  0xf9   :  { %v269_v32 = vadd.f32 %v352_v28, %v268_v22  ;;  %v355_v33 = vadd.f32 %v354_v31, %v353_v29 }
  0xfb   :  { %v291_v35 = vmul.f32 %v332_v30, %v269_v32  ;;  %v272_v36 = vadd.f32 %v355_v33, %v271_v24 }
  0xfd   :  { %v300_v37 = vadd.f32 %v333_v34, %v291_v35  ;;  %v292_v38 = vmul.f32 %v332_v30, %v272_v36 }
  0xff   :  { %v302_v39 = vmax.f32 %v300_v37, 0.0  ;;  %v301_v40 = vadd.f32 %v333_v34, %v292_v38 }
 0x101   :  { %304 = vst [vmem:[%s497_s4] sm:$0xff] %v302_v39  ;;  %v303_v41 = vmax.f32 %v301_v40, 0.0 }
 0x103   :  { %305 = vst [vmem:[%s497_s4 + $0x8] sm:$0xff] %v303_v41 }

// kernel: wideresnet_forward.25
= control target key start
LH: loop header
LB: loop body
LE: loop exit
PB: predicated region body
PF: predicated region fallthrough
CT: control target
= control target key end

     0   :  { %v657_v34 = vmov 0.0   ;;  %vm658_vm0 = vmmov 0   ;;  %vm345_vm1 = vcmask 523264   ;;  %s819_s1 = inlined_call_operand.vmem [shape: bf16[576,128], index: 1, kind: input, shape index: {}]   ;;  %s820_s0 = inlined_call_operand.vmem [shape: bf16[16,576], index: 0, kind: input, shape index: {}]   ;;  %s821_s2 = inlined_call_operand.vmem [shape: f32[1,128], index: 2, kind: input, shape index: {}]   ;;  %s822_s3 = inlined_call_operand.vmem [shape: f32[1,128], index: 3, kind: input, shape index: {}]   ;;  %s823_s4 = inlined_call_operand.vmem [shape: f32[16,128], index: 4, kind: output, shape index: {}]  }
   0x1   :  { %v614_v0 = vld [vmem:[%s819_s1 + $0x40] sm:$0xff]   ;;  %v618_v4 = vld [vmem:[%s819_s1 + $0x48] sm:$0xff]   ;;  %v622_v8 = vld [vmem:[%s819_s1 + $0x50] sm:$0xff]  }
   0x2   :  { %v615_v1 = vld [vmem:[%s819_s1 + $0xc0] sm:$0xff]   ;;  %551 = vmatprep.subr.bf16.mxu0 %v614_v0  ;;  %v619_v5 = vld [vmem:[%s819_s1 + $0xc8] sm:$0xff]   ;;  %v623_v9 = vld [vmem:[%s819_s1 + $0xd0] sm:$0xff]  }
   0x3   :  { %v616_v2 = vld [vmem:[%s819_s1] sm:$0xff]   ;;  %573 = vmatprep.subr.bf16.mxu1 %v615_v1  ;;  %v620_v6 = vld [vmem:[%s819_s1 + $0x8] sm:$0xff]   ;;  %v624_v10 = vld [vmem:[%s819_s1 + $0x10] sm:$0xff]  }
   0x4   :  { %v617_v3 = vld [vmem:[%s819_s1 + $0x80] sm:$0xff]   ;;  %552 = vmatpush3.bf16.msra.mxu0 %v616_v2  ;;  %v621_v7 = vld [vmem:[%s819_s1 + $0x88] sm:$0xff]   ;;  %v625_v11 = vld [vmem:[%s819_s1 + $0x90] sm:$0xff]  }
   0x5   :  { %574 = vmatpush3.bf16.msra.mxu1 %v617_v3  ;;  %553 = vmatprep.subr.bf16.mxu0 %v618_v4  ;;  %v626_v12 = vld [vmem:[%s819_s1 + $0x58] sm:$0xff]   ;;  %v630_v16 = vld [vmem:[%s819_s1 + $0x60] sm:$0xff]   ;;  %v634_v20 = vld [vmem:[%s819_s1 + $0x68] sm:$0xff]  }
   0x6   :  { %575 = vmatprep.subr.bf16.mxu1 %v619_v5  ;;  %v627_v13 = vld [vmem:[%s819_s1 + $0xd8] sm:$0xff]   ;;  %v631_v17 = vld [vmem:[%s819_s1 + $0xe0] sm:$0xff]   ;;  %v635_v21 = vld [vmem:[%s819_s1 + $0xe8] sm:$0xff]  }
   0x7   :  { %v628_v14 = vld [vmem:[%s819_s1 + $0x18] sm:$0xff]   ;;  %v632_v18 = vld [vmem:[%s819_s1 + $0x20] sm:$0xff]   ;;  %v636_v22 = vld [vmem:[%s819_s1 + $0x28] sm:$0xff]  }
   0x8   :  { %554 = vmatpush3.bf16.msra.mxu0 %v620_v6  ;;  %v629_v15 = vld [vmem:[%s819_s1 + $0x98] sm:$0xff]   ;;  %v633_v19 = vld [vmem:[%s819_s1 + $0xa0] sm:$0xff]   ;;  %v637_v23 = vld [vmem:[%s819_s1 + $0xa8] sm:$0xff]  }
   0x9   :  { %576 = vmatpush3.bf16.msra.mxu1 %v621_v7  ;;  %555 = vmatprep.subr.bf16.mxu0 %v622_v8  ;;  %v638_v24 = vld [vmem:[%s819_s1 + $0x70] sm:$0xff]   ;;  %v642_v28 = vld [vmem:[%s819_s1 + $0x78] sm:$0xff]   ;;  %v651_v36 = vld [vmem:[%s820_s0 + $0xc] ss:$20 sps:$4 sm:$0xff]  }
   0xa   :  { %577 = vmatprep.subr.bf16.mxu1 %v623_v9  ;;  %v639_v25 = vld [vmem:[%s819_s1 + $0xf0] sm:$0xff]   ;;  %v643_v29 = vld [vmem:[%s819_s1 + $0xf8] sm:$0xff]   ;;  %v652_v37 = vld [vmem:[%s819_s1 + $0x100] sm:$0xff]   ;;  %422 = vmatprep.mubr.bf16.mxu1 %v651_v36 }
   0xb   :  { %v640_v26 = vld [vmem:[%s819_s1 + $0x30] sm:$0xff]   ;;  %v644_v30 = vld [vmem:[%s819_s1 + $0x38] sm:$0xff]   ;;  %v653_v38 = vld [vmem:[%s819_s1 + $0x108] sm:$0xff]  }
   0xc   :  { %556 = vmatpush3.bf16.msra.mxu0 %v624_v10  ;;  %v641_v27 = vld [vmem:[%s819_s1 + $0xb0] sm:$0xff]   ;;  %v645_v31 = vld [vmem:[%s819_s1 + $0xb8] sm:$0xff]   ;;  %v549_v57 = vld [vmem:[%s821_s2] ss:$0 sm:$0xff] }
   0xd   :  { %578 = vmatpush3.bf16.msra.mxu1 %v625_v11  ;;  %557 = vmatprep.subr.bf16.mxu0 %v626_v12  ;;  %v646_v32 = vld [vmem:[%s820_s0] ss:$20 sps:$4 sm:$0xff]   ;;  %v648_v33 = vld [vmem:[%s820_s0 + $0x4] ss:$20 sps:$4 sm:$0xff]   ;;  %v649_v35 = vld [vmem:[%s820_s0 + $0x8] ss:$20 sps:$4 sm:$0xff]  }
   0xe   :  { %579 = vmatprep.subr.bf16.mxu1 %v627_v13  ;;  %381 = vmatprep.mubr.bf16.mxu0 %v648_v33  ;;  %v654_v39 = vld [vmem:[%s819_s1 + $0x110] sm:$0xff]   ;;  %v655_v40 = vld [vmem:[%s819_s1 + $0x118] sm:$0xff]   ;;  %v550_v60 = vld [vmem:[%s822_s3] ss:$0 sm:$0xff] }
   0xf   :  { %v656_v41 = vld [vmem:[%s820_s0 + $0x10] ss:$20 sps:$4 sm:$0xff]  }
  0x10   :  { %558 = vmatpush3.bf16.msra.mxu0 %v628_v14 }
  0x11   :  { %580 = vmatpush3.bf16.msra.mxu1 %v629_v15  ;;  %559 = vmatprep.subr.bf16.mxu0 %v630_v16 }
  0x12   :  { %581 = vmatprep.subr.bf16.mxu1 %v631_v17 }
  0x14   :  { %560 = vmatpush3.bf16.msra.mxu0 %v632_v18 }
  0x15   :  { %582 = vmatpush3.bf16.msra.mxu1 %v633_v19  ;;  %561 = vmatprep.subr.bf16.mxu0 %v634_v20 }
  0x16   :  { %583 = vmatprep.subr.bf16.mxu1 %v635_v21 }
  0x18   :  { %562 = vmatpush3.bf16.msra.mxu0 %v636_v22 }
  0x19   :  { %584 = vmatpush3.bf16.msra.mxu1 %v637_v23  ;;  %563 = vmatprep.subr.bf16.mxu0 %v638_v24 }
  0x1a   :  { %585 = vmatprep.subr.bf16.mxu1 %v639_v25 }
  0x1c   :  { %564 = vmatpush3.bf16.msra.mxu0 %v640_v26 }
  0x1d   :  { %586 = vmatpush3.bf16.msra.mxu1 %v641_v27  ;;  %565 = vmatprep.subr.bf16.mxu0 %v642_v28 }
  0x1e   :  { %587 = vmatprep.subr.bf16.mxu1 %v643_v29 }
  0x20   :  { %566 = vmatpush3.bf16.msra.mxu0 %v644_v30 }
  0x21   :  { %588 = vmatpush3.bf16.msra.mxu1 %v645_v31  ;;  %600 = vmatprep.subr.bf16.mxu0 %v657_v34 }
  0x23   :  { %382 = vmatmul.mubr.bf16.vlgmr.msra.gmra.mrb[0].mxu0 %v646_v32 }
  0x24   :  { %423 = vmatmul.mubr.bf16.vlgmr.msra.gmra.mrb[0].mxu1 %v649_v35  ;;  %601 = vmatpush3.bf16.msra.mxu0 %v652_v37 }
  0x25   :  { %602 = vmatprep.subr.bf16.mxu0 %v657_v34  ;;  %608 = vmatprep.mubr.msk.bf16.mxu0 %vm658_vm0, %v657_v34 }
  0x28   :  { %603 = vmatpush3.bf16.msra.mxu0 %v653_v38 }
  0x29   :  { %604 = vmatprep.subr.bf16.mxu0 %v657_v34 }
  0x2c   :  { %605 = vmatpush3.bf16.msra.mxu0 %v654_v39 }
  0x2d   :  { %606 = vmatprep.subr.bf16.mxu0 %v657_v34 }
  0x30   :  { %607 = vmatpush3.bf16.msra.mxu0 %v655_v40 }
  0x33   :  { %609 = vmatmul.mubr.msk.bf16.vlgmr.msra.gmra.mrb[4].mxu0 %vm345_vm1, %v656_v41 }
  0xf6   :  { %v567_v42 = vpop.f32.mrb[0].mxu0 }
  0xf7   :  { %v589_v43 = vpop.f32.mrb[0].mxu1  ;;  %v568_v44 = vpop.f32.mrb[1].mxu0 }
  0xf8   :  { %v569_v45 = vadd.f32 %v568_v44, %v567_v42  ;;  %v590_v46 = vpop.f32.mrb[1].mxu1  ;;  %v570_v47 = vpop.f32.mrb[2].mxu0 }
  0xf9   :  { %v591_v48 = vadd.f32 %v590_v46, %v589_v43  ;;  %v592_v49 = vpop.f32.mrb[2].mxu1  ;;  %v571_v50 = vpop.f32.mrb[3].mxu0 }
  0xfa   :  { %v572_v51 = vadd.f32 %v571_v50, %v570_v47  ;;  %v593_v52 = vpop.f32.mrb[3].mxu1 }
  0xfb   :  { %v594_v53 = vadd.f32 %v593_v52, %v592_v49  ;;  %v425_v54 = vadd.f32 %v591_v48, %v569_v45 }
  0xfd   :  { %v428_v55 = vadd.f32 %v594_v53, %v572_v51 }
 0x106   :  { %v465_v56 = vpop.f32.mrb[4].mxu0 }
 0x107   :  { %v466_v58 = vadd.f32 %v465_v56, %v425_v54  ;;  %v610_v59 = vpop.f32.mrb[5].mxu0 }
 0x108   :  { %v468_v61 = vpop.f32.mrb[6].mxu0 }
 0x109   :  { %v488_v62 = vmul.f32 %v549_v57, %v466_v58  ;;  %v469_v63 = vadd.f32 %v468_v61, %v428_v55  ;;  %v611_v0 = vpop.f32.mrb[7].mxu0 }
 0x10b   :  { %v497_v1 = vadd.f32 %v550_v60, %v488_v62  ;;  %v489_v2 = vmul.f32 %v549_v57, %v469_v63 }
 0x10d   :  { %v499_v3 = vmax.f32 %v497_v1, 0.0  ;;  %v498_v4 = vadd.f32 %v550_v60, %v489_v2 }
 0x10f   :  { %501 = vst [vmem:[%s823_s4] sm:$0xff] %v499_v3  ;;  %v500_v5 = vmax.f32 %v498_v4, 0.0 }
 0x111   :  { %502 = vst [vmem:[%s823_s4 + $0x8] sm:$0xff] %v500_v5 }

// kernel: wideresnet_forward.28
= control target key start
LH: loop header
LB: loop body
LE: loop exit
PB: predicated region body
PF: predicated region fallthrough
CT: control target
= control target key end

     0   :  { %v149_v0 = vmov 0.0   ;;  %vm150_vm0 = vmmov 0   ;;  %vm59_vm1 = vcmask 523264   ;;  %s187_s1 = inlined_call_operand.vmem [shape: bf16[64,128], index: 1, kind: input, shape index: {}]   ;;  %s188_s0 = inlined_call_operand.vmem [shape: bf16[16,64], index: 0, kind: input, shape index: {}]   ;;  %s189_s2 = inlined_call_operand.vmem [shape: f32[16,128], index: 2, kind: output, shape index: {}]  }
   0x1   :  { %130 = vmatprep.subr.bf16.mxu0 %v149_v0  ;;  %v144_v1 = vld [vmem:[%s187_s1] sm:$0xff]   ;;  %138 = vmatprep.mubr.msk.bf16.mxu0 %vm150_vm0, %v149_v0  ;;  %v145_v2 = vld [vmem:[%s187_s1 + $0x8] sm:$0xff]   ;;  %v146_v3 = vld [vmem:[%s187_s1 + $0x10] sm:$0xff]  }
   0x2   :  { %131 = vmatpush3.bf16.msra.mxu0 %v144_v1  ;;  %v147_v4 = vld [vmem:[%s187_s1 + $0x18] sm:$0xff]   ;;  %v148_v5 = vld [vmem:[%s188_s0] sm:$0xff]  }
   0x3   :  { %132 = vmatprep.subr.bf16.mxu0 %v149_v0 }
   0x6   :  { %133 = vmatpush3.bf16.msra.mxu0 %v145_v2 }
   0x7   :  { %134 = vmatprep.subr.bf16.mxu0 %v149_v0 }
   0xa   :  { %135 = vmatpush3.bf16.msra.mxu0 %v146_v3 }
   0xb   :  { %136 = vmatprep.subr.bf16.mxu0 %v149_v0 }
   0xe   :  { %137 = vmatpush3.bf16.msra.mxu0 %v147_v4 }
  0x11   :  { %139 = vmatmul.mubr.msk.bf16.vlgmr.msra.gmra.mrb[0].mxu0 %vm59_vm1, %v148_v5 }
  0xe4   :  { %v97_v6 = vpop.f32.mrb[0].mxu0 }
  0xe5   :  { %113 = vst [vmem:[%s189_s2] sm:$0xff] %v97_v6  ;;  %v140_v7 = vpop.f32.mrb[1].mxu0 }
  0xe6   :  { %v100_v8 = vpop.f32.mrb[2].mxu0 }
  0xe7   :  { %114 = vst [vmem:[%s189_s2 + $0x8] sm:$0xff] %v100_v8  ;;  %v141_v9 = vpop.f32.mrb[3].mxu0 }

// kernel: wideresnet_forward.31
= control target key start
LH: loop header
LB: loop body
LE: loop exit
PB: predicated region body
PF: predicated region fallthrough
CT: control target
= control target key end

     0   :  { %s1009_s18 = smov 0   ;;  %s1011_s19 = smov 0   ;;  %s1125_s0 = inlined_call_operand.vmem [shape: bf16[16,1152], index: 0, kind: input, shape index: {}]   ;;  %s1126_s1 = inlined_call_operand.vmem [shape: bf16[1152,128], index: 1, kind: input, shape index: {}]   ;;  %s1127_s2 = inlined_call_operand.vmem [shape: f32[16,128], index: 2, kind: input, shape index: {}]   ;;  %s1128_s3 = inlined_call_operand.vmem [shape: f32[1,128], index: 3, kind: input, shape index: {}]   ;;  %s1129_s4 = inlined_call_operand.vmem [shape: f32[1,128], index: 4, kind: input, shape index: {}]   ;;  %s1130_s5 = inlined_call_operand.vmem [shape: f32[16,128], index: 5, kind: output, shape index: {}]  }
   0x1   :  { %s1013_s20 = smov 0   ;;  %s1015_s21 = smov 0  }
   0x2   :  { %s1017_s22 = smov 0  }
   0x3 LB: > { %s24_s23 = sadd.s32 1, %s970_s21  ;;  %p43_p1 = scmp.ne.s32.totalorder %s962_s19, %s958_s18  ;;  %s974_s22 = sphi %s1017_s22, %s15_s22   ;;  %s970_s21 = sphi %s1015_s21, %s1134_s21   ;;  %s966_s20 = sphi %s1013_s20, %s1133_s20   ;;  %s962_s19 = sphi %s1011_s19, %s1132_s19   ;;  %s958_s18 = sphi %s1009_s18, %s1131_s18  }
   0x4   : > { %p25_p0 = scmp.ge.s32.totalorder %s24_s23, 3  ;;  %p44_p2 = scmp.eq.s32.totalorder %s974_s22, 0 }
   0x5   : > { %s36_s25 = sadd.s32 1, %s962_s19  ;;  %p768_p5 = scmp.ge.s32.totalorder %s974_s22, 3 }
   0x6   : > { %s1136_s23 = smov (%p25_p0, %s24_s23), 0  ;;  %p45_p3 = por %p44_p2, %p43_p1 }
   0x7   : > { %s32_s24 = ssub.s32 %s970_s21, %s1136_s23  ;;  %204 = sbr.rel (%p768_p5) target bundleno = 21 (0x15), region = 28 }
   0x8   : > { %p34_p4 = scmp.eq.s32.totalorder %s32_s24, 0 }
   0xa   : > { %s1044_s26 = scalar_select %p34_p4, %s962_s19, %s36_s25  }
   0xe   : > { %207 = sbr.rel (!%p45_p3) target bundleno = 21 (0x15), region = 32  ;;  %s209_s27 = sand.u32 (%p45_p3), 1, %s962_s19  }
   0xf   : > { %s811_s28 = smul.u32 (%p45_p3), 12, %s970_s21 }
  0x10   : > { %s863_s29 = smul.u32 (%p45_p3), 24, %s209_s27 }
  0x11   : > { %s217_s7 = scalar_lea.vmem (%p45_p3), %s1125_s0, %s811_s28 }
  0x12   : > { %v232_v0 = vld [vmem:[%s217_s7] sm:$0xff] (%p45_p3)  ;;  %v770_v2 = vld [vmem:[%s217_s7 + $0x8] sm:$0xf] (%p45_p3)  ;;  %s211_s8 = scalar_lea.vmem (%p45_p3), [#allocation3], %s863_s29  ;;  %v772_v3 = vld [vmem:[%s217_s7 + $0x2c] sm:$0xf] (%p45_p3) }
  0x13   : > { %v234_v1 = vld [vmem:[%s217_s7 + $0x24] sm:$0xff] (%p45_p3)  ;;  %233 = vst [vmem:[%s211_s8] sm:$0xff] (%p45_p3), %v232_v0  ;;  %771 = vst [vmem:[%s211_s8 + $0x8] sm:$0xf] (%p45_p3), %v770_v2 }
  0x14   : > { %235 = vst [vmem:[%s211_s8 + $0xc] sm:$0xff] (%p45_p3), %v234_v1  ;;  %773 = vst [vmem:[%s211_s8 + $0x14] sm:$0xf] (%p45_p3), %v772_v3 }
  0x15 PF: > { %p774_p6 = scmp.ge.s32.totalorder %s974_s22, 1  ;;  %p260_p7 = scmp.lt.s32.totalorder %s974_s22, 4 }
  0x17   : > { %p261_p8 = pnand %p774_p6, %p260_p7 }
  0x18   : > { %s267_s9 = sand.u32 (!%p261_p8), 1, %s958_s18   ;;  %s306_s10 = smul.u32 (!%p261_p8), 48, %s966_s20 }
  0x19   : > { %264 = sbr.rel (%p261_p8) target bundleno = 310 (0x136), region = 62  ;;  %p776_p10 = scmp.ne.s32.totalorder (!%p261_p8), %s966_s20, 0 }
  0x1a   : > { %s864_s11 = smul.u32 (!%p261_p8), 24, %s267_s9  ;;  %p307_p9 = scmp.lt.s32.totalorder (!%p261_p8), %s306_s10, 143 }
  0x1c   : > { %s1061_s16 = scalar_lea.vmem (!%p261_p8), [#allocation3], %s864_s11 }
  0x20   : > { %s1138_s10 = smov (!%p307_p9, %s306_s10), 143  ;;  %328 = sbr.rel (%p776_p10) target bundleno = 39 (0x27), region = 70 }
  0x21   : > { %s775_s12 = sshll.u32 %s1138_s10, 2  ;;  %v976_v4 = vmov (!%p776_p10), 0.0  }
  0x22   : > { %s1059_s15 = scalar_lea.vmem %s1126_s1, %s775_s12  ;;  %329 = vst [vmem:[#allocation2] sm:$0xff] (!%p776_p10), %v976_v4  ;;  %330 = vst [vmem:[#allocation2 + $0x8] sm:$0xff] (!%p776_p10), %v976_v4 }
  0x27 PF: > { %v908_v5 = vld [vmem:[%s1059_s15 + $0x40] sm:$0xff]   ;;  %v977_v6 = vmov 0.0   ;;  %vm978_vm0 = vmmov 0   ;;  %v911_v9 = vld [vmem:[%s1059_s15 + $0x48] sm:$0xff]   ;;  %v914_v12 = vld [vmem:[%s1059_s15 + $0x50] sm:$0xff]   ;;  %p804_p11 = scmp.ne.s32.totalorder %s966_s20, 2 }
  0x28   : > { %843 = vmatprep.subr.bf16.mxu1 %v977_v6  ;;  %v909_v7 = vld [vmem:[%s1059_s15] sm:$0xff]   ;;  %812 = vmatprep.subr.bf16.mxu0 %v908_v5  ;;  %v912_v10 = vld [vmem:[%s1059_s15 + $0x8] sm:$0xff]   ;;  %v915_v13 = vld [vmem:[%s1059_s15 + $0x10] sm:$0xff]  }
  0x29   : > { %v910_v8 = vld [vmem:[%s1059_s15 + $0x80] sm:$0xff]   ;;  %859 = vmatprep.mubr.msk.bf16.mxu1 %vm978_vm0, %v977_v6  ;;  %813 = vmatpush3.bf16.msra.mxu0 %v909_v7  ;;  %v913_v11 = vld [vmem:[%s1059_s15 + $0x88] sm:$0xff]   ;;  %v916_v14 = vld [vmem:[%s1059_s15 + $0x90] sm:$0xff]  }
  0x2a   : > { %844 = vmatpush3.bf16.msra.mxu1 %v910_v8  ;;  %814 = vmatprep.subr.bf16.mxu0 %v911_v9  ;;  %v917_v15 = vld [vmem:[%s1059_s15 + $0x58] sm:$0xff]   ;;  %v920_v18 = vld [vmem:[%s1059_s15 + $0x60] sm:$0xff]   ;;  %v923_v21 = vld [vmem:[%s1059_s15 + $0x68] sm:$0xff]  }
  0x2b   : > { %845 = vmatprep.subr.bf16.mxu1 %v977_v6  ;;  %v918_v16 = vld [vmem:[%s1059_s15 + $0x18] sm:$0xff]   ;;  %v921_v19 = vld [vmem:[%s1059_s15 + $0x20] sm:$0xff]   ;;  %v924_v22 = vld [vmem:[%s1059_s15 + $0x28] sm:$0xff]  }
  0x2c   : > { %v919_v17 = vld [vmem:[%s1059_s15 + $0x98] sm:$0xff]   ;;  %v922_v20 = vld [vmem:[%s1059_s15 + $0xa0] sm:$0xff]   ;;  %v925_v23 = vld [vmem:[%s1059_s15 + $0xa8] sm:$0xff]  }
  0x2d   : > { %815 = vmatpush3.bf16.msra.mxu0 %v912_v10  ;;  %v926_v24 = vld [vmem:[%s1059_s15 + $0x70] sm:$0xff]   ;;  %v929_v27 = vld [vmem:[%s1059_s15 + $0x78] sm:$0xff]   ;;  %v331_v39 = vld [vmem:[#allocation2] sm:$0xff] }
  0x2e   : > { %846 = vmatpush3.bf16.msra.mxu1 %v913_v11  ;;  %816 = vmatprep.subr.bf16.mxu0 %v914_v12  ;;  %v927_v25 = vld [vmem:[%s1059_s15 + $0x30] sm:$0xff]   ;;  %v930_v29 = vld [vmem:[%s1059_s15 + $0x38] sm:$0xff]   ;;  %v332_v45 = vld [vmem:[#allocation2 + $0x8] sm:$0xff] }
  0x2f   : > { %847 = vmatprep.subr.bf16.mxu1 %v977_v6  ;;  %v928_v26 = vld [vmem:[%s1059_s15 + $0xb0] sm:$0xff]   ;;  %v931_v30 = vld [vmem:[%s1059_s15 + $0xb8] sm:$0xff]   ;;  %v637_v50 = vld [vmem:[%s1127_s2] sm:$0xff] (!%p804_p11) }
  0x30   : > { %v934_v28 = vld [vmem:[%s1061_s16 + $0x4] ss:$12 sps:$4 sm:$0xff]   ;;  %v932_v31 = vld [vmem:[%s1061_s16] ss:$12 sps:$4 sm:$0xff]   ;;  %v935_v32 = vld [vmem:[%s1061_s16 + $0x8] ss:$12 sps:$4 sm:$0xff]  }
  0x31   : > { %817 = vmatpush3.bf16.msra.mxu0 %v915_v13  ;;  %577 = vmatprep.mubr.bf16.mxu0 %v934_v28  ;;  %v805_v51 = vld [vmem:[%s1128_s3] ss:$0 sm:$0xff] (!%p804_p11)  ;;  %v638_v54 = vld [vmem:[%s1127_s2 + $0x8] sm:$0xff] (!%p804_p11) }
  0x32   : > { %848 = vmatpush3.bf16.msra.mxu1 %v916_v14  ;;  %818 = vmatprep.subr.bf16.mxu0 %v917_v15  ;;  %v806_v55 = vld [vmem:[%s1129_s4] ss:$0 sm:$0xff] (!%p804_p11) }
  0x33   : > { %849 = vmatprep.subr.bf16.mxu1 %v977_v6 }
  0x35   : > { %819 = vmatpush3.bf16.msra.mxu0 %v918_v16 }
  0x36   : > { %850 = vmatpush3.bf16.msra.mxu1 %v919_v17  ;;  %820 = vmatprep.subr.bf16.mxu0 %v920_v18 }
  0x37   : > { %851 = vmatprep.subr.bf16.mxu1 %v977_v6 }
  0x39   : > { %821 = vmatpush3.bf16.msra.mxu0 %v921_v19 }
  0x3a   : > { %852 = vmatpush3.bf16.msra.mxu1 %v922_v20  ;;  %822 = vmatprep.subr.bf16.mxu0 %v923_v21 }
  0x3b   : > { %853 = vmatprep.subr.bf16.mxu1 %v977_v6 }
  0x3d   : > { %823 = vmatpush3.bf16.msra.mxu0 %v924_v22 }
  0x3e   : > { %854 = vmatpush3.bf16.msra.mxu1 %v925_v23  ;;  %824 = vmatprep.subr.bf16.mxu0 %v926_v24 }
  0x3f   : > { %855 = vmatprep.subr.bf16.mxu1 %v977_v6 }
  0x41   : > { %825 = vmatpush3.bf16.msra.mxu0 %v927_v25 }
  0x42   : > { %856 = vmatpush3.bf16.msra.mxu1 %v928_v26  ;;  %826 = vmatprep.subr.bf16.mxu0 %v929_v27 }
  0x43   : > { %857 = vmatprep.subr.bf16.mxu1 %v977_v6 }
  0x45   : > { %827 = vmatpush3.bf16.msra.mxu0 %v930_v29 }
  0x46   : > { %858 = vmatpush3.bf16.msra.mxu1 %v931_v30 }
  0x48   : > { %578 = vmatmul.mubr.bf16.vlgmr.msra.gmra.mrb[0].mxu0 %v932_v31 }
  0x49   : > { %860 = vmatmul.mubr.bf16.vlgmr.msra.gmra.mrb[0].mxu1 %v935_v32 }
 0x11b   : > { %v828_v33 = vpop.f32.mrb[0].mxu0 }
 0x11c   : > { %v620_v34 = vpop.f32.mrb[0].mxu1  ;;  %v829_v35 = vpop.f32.mrb[1].mxu0 }
 0x11d   : > { %v830_v36 = vadd.f32 %v829_v35, %v828_v33  ;;  %v861_v37 = vpop.f32.mrb[1].mxu1  ;;  %v831_v38 = vpop.f32.mrb[2].mxu0 }
 0x11e   : > { %v623_v40 = vpop.f32.mrb[2].mxu1  ;;  %v832_v41 = vpop.f32.mrb[3].mxu0 }
 0x11f   : > { %v621_v42 = vadd.f32 %v830_v36, %v620_v34  ;;  %v833_v43 = vadd.f32 %v832_v41, %v831_v38  ;;  %v862_v44 = vpop.f32.mrb[3].mxu1  ;;  %634 = sbr.rel (%p804_p11) target bundleno = 310 (0x136), region = 74 }
 0x121   : > { %v627_v46 = vadd.f32 %v621_v42, %v331_v39  ;;  %v624_v47 = vadd.f32 %v833_v43, %v623_v40 }
 0x123   : > { %629 = vst [vmem:[#allocation2] sm:$0xff] %v627_v46  ;;  %v628_v48 = vadd.f32 %v624_v47, %v332_v45 }
 0x125   : > { %630 = vst [vmem:[#allocation2 + $0x8] sm:$0xff] %v628_v48 }
 0x12a   : > { %v635_v49 = vld [vmem:[#allocation2] sm:$0xff] }
 0x12b   : > { %v639_v52 = vadd.f32 %v637_v50, %v635_v49 }
 0x12c   : > { %v636_v53 = vld [vmem:[#allocation2 + $0x8] sm:$0xff] }
 0x12d   : > { %v640_v56 = vadd.f32 %v638_v54, %v636_v53  ;;  %v648_v57 = vmul.f32 %v805_v51, %v639_v52 }
 0x12f   : > { %v649_v58 = vmul.f32 %v805_v51, %v640_v56  ;;  %v657_v59 = vadd.f32 %v806_v55, %v648_v57 }
 0x131   : > { %v658_v60 = vadd.f32 %v806_v55, %v649_v58  ;;  %v659_v61 = vmax.f32 %v657_v59, 0.0 }
 0x133   : > { %v660_v62 = vmax.f32 %v658_v60, 0.0  ;;  %661 = vst [vmem:[%s1130_s5] sm:$0xff] %v659_v61 }
 0x135   : > { %662 = vst [vmem:[%s1130_s5 + $0x8] sm:$0xff] %v660_v62 }
 0x136 PF: > { %s15_s22 = sadd.s32 1, %s974_s22   ;;  %s1131_s18 = smov %s962_s19 }
 0x137   : > { %p12_p12 = scmp.ge.s32.totalorder %s15_s22, 5   ;;  %s1132_s19 = smov %s1044_s26 }
 0x138   : > { %s1133_s20 = smov %s970_s21  ;;  %s1134_s21 = smov %s1136_s23 }
 0x139   :  { %14 = sbr.rel (!%p12_p12) target bundleno = 3 (0x3), region = 121 }

// kernel: wideresnet_forward.30
= control target key start
LH: loop header
LB: loop body
LE: loop exit
PB: predicated region body
PF: predicated region fallthrough
CT: control target
= control target key end

     0   :  { %s935_s15 = smov 0   ;;  %s937_s16 = smov 0   ;;  %s1045_s0 = inlined_call_operand.vmem [shape: bf16[16,1152], index: 0, kind: input, shape index: {}]   ;;  %s1046_s1 = inlined_call_operand.vmem [shape: bf16[1152,128], index: 1, kind: input, shape index: {}]   ;;  %s1047_s2 = inlined_call_operand.vmem [shape: f32[1,128], index: 2, kind: input, shape index: {}]   ;;  %s1048_s3 = inlined_call_operand.vmem [shape: f32[1,128], index: 3, kind: input, shape index: {}]   ;;  %s1049_s4 = inlined_call_operand.vmem [shape: f32[16,128], index: 4, kind: output, shape index: {}]  }
   0x1   :  { %s939_s17 = smov 0   ;;  %s941_s18 = smov 0  }
   0x2   :  { %s943_s19 = smov 0  }
   0x3 LB: > { %s23_s20 = sadd.s32 1, %s901_s18  ;;  %p42_p1 = scmp.ne.s32.totalorder %s893_s16, %s889_s15  ;;  %s905_s19 = sphi %s943_s19, %s14_s19   ;;  %s901_s18 = sphi %s941_s18, %s1053_s18   ;;  %s897_s17 = sphi %s939_s17, %s1052_s17   ;;  %s893_s16 = sphi %s937_s16, %s1051_s16   ;;  %s889_s15 = sphi %s935_s15, %s1050_s15  }
   0x4   : > { %p24_p0 = scmp.ge.s32.totalorder %s23_s20, 3  ;;  %p43_p2 = scmp.eq.s32.totalorder %s905_s19, 0 }
   0x5   : > { %s35_s22 = sadd.s32 1, %s893_s16  ;;  %p699_p5 = scmp.ge.s32.totalorder %s905_s19, 3 }
   0x6   : > { %s1055_s20 = smov (%p24_p0, %s23_s20), 0  ;;  %p44_p3 = por %p43_p2, %p42_p1 }
   0x7   : > { %s31_s21 = ssub.s32 %s901_s18, %s1055_s20  ;;  %168 = sbr.rel (%p699_p5) target bundleno = 21 (0x15), region = 24 }
   0x8   : > { %p33_p4 = scmp.eq.s32.totalorder %s31_s21, 0 }
   0xa   : > { %s970_s23 = scalar_select %p33_p4, %s893_s16, %s35_s22  }
   0xe   : > { %171 = sbr.rel (!%p44_p3) target bundleno = 21 (0x15), region = 28  ;;  %s173_s24 = sand.u32 (%p44_p3), 1, %s893_s16  }
   0xf   : > { %s742_s25 = smul.u32 (%p44_p3), 12, %s901_s18 }
  0x10   : > { %s794_s26 = smul.u32 (%p44_p3), 24, %s173_s24 }
  0x11   : > { %s181_s29 = scalar_lea.vmem (%p44_p3), %s1045_s0, %s742_s25 }
  0x12   : > { %v196_v0 = vld [vmem:[%s181_s29] sm:$0xff] (%p44_p3)  ;;  %v701_v2 = vld [vmem:[%s181_s29 + $0x8] sm:$0xf] (%p44_p3)  ;;  %s175_s30 = scalar_lea.vmem (%p44_p3), [#allocation3], %s794_s26  ;;  %v703_v3 = vld [vmem:[%s181_s29 + $0x2c] sm:$0xf] (%p44_p3) }
  0x13   : > { %v198_v1 = vld [vmem:[%s181_s29 + $0x24] sm:$0xff] (%p44_p3)  ;;  %197 = vst [vmem:[%s175_s30] sm:$0xff] (%p44_p3), %v196_v0  ;;  %702 = vst [vmem:[%s175_s30 + $0x8] sm:$0xf] (%p44_p3), %v701_v2 }
  0x14   : > { %199 = vst [vmem:[%s175_s30 + $0xc] sm:$0xff] (%p44_p3), %v198_v1  ;;  %704 = vst [vmem:[%s175_s30 + $0x14] sm:$0xf] (%p44_p3), %v703_v3 }
  0x15 PF: > { %p705_p6 = scmp.ge.s32.totalorder %s905_s19, 1  ;;  %p224_p7 = scmp.lt.s32.totalorder %s905_s19, 4 }
  0x17   : > { %p225_p8 = pnand %p705_p6, %p224_p7 }
  0x18   : > { %s231_s5 = sand.u32 (!%p225_p8), 1, %s889_s15   ;;  %s263_s6 = smul.u32 (!%p225_p8), 48, %s897_s17 }
  0x19   : > { %228 = sbr.rel (%p225_p8) target bundleno = 308 (0x134), region = 58  ;;  %p707_p10 = scmp.ne.s32.totalorder (!%p225_p8), %s897_s17, 0 }
  0x1a   : > { %s795_s7 = smul.u32 (!%p225_p8), 24, %s231_s5  ;;  %p264_p9 = scmp.lt.s32.totalorder (!%p225_p8), %s263_s6, 143 }
  0x1c   : > { %s987_s12 = scalar_lea.vmem (!%p225_p8), [#allocation3], %s795_s7 }
  0x20   : > { %s1057_s6 = smov (!%p264_p9, %s263_s6), 143  ;;  %279 = sbr.rel (%p707_p10) target bundleno = 39 (0x27), region = 66 }
  0x21   : > { %s706_s8 = sshll.u32 %s1057_s6, 2  ;;  %v907_v4 = vmov (!%p707_p10), 0.0  }
  0x22   : > { %s985_s11 = scalar_lea.vmem %s1046_s1, %s706_s8  ;;  %280 = vst [vmem:[#allocation2] sm:$0xff] (!%p707_p10), %v907_v4  ;;  %281 = vst [vmem:[#allocation2 + $0x8] sm:$0xff] (!%p707_p10), %v907_v4 }
  0x27 PF: > { %v839_v5 = vld [vmem:[%s985_s11 + $0x40] sm:$0xff]   ;;  %v908_v6 = vmov 0.0   ;;  %vm909_vm0 = vmmov 0   ;;  %v842_v9 = vld [vmem:[%s985_s11 + $0x48] sm:$0xff]   ;;  %v845_v12 = vld [vmem:[%s985_s11 + $0x50] sm:$0xff]   ;;  %p735_p11 = scmp.ne.s32.totalorder %s897_s17, 2 }
  0x28   : > { %774 = vmatprep.subr.bf16.mxu1 %v908_v6  ;;  %v840_v7 = vld [vmem:[%s985_s11] sm:$0xff]   ;;  %743 = vmatprep.subr.bf16.mxu0 %v839_v5  ;;  %v843_v10 = vld [vmem:[%s985_s11 + $0x8] sm:$0xff]   ;;  %v846_v13 = vld [vmem:[%s985_s11 + $0x10] sm:$0xff]  }
  0x29   : > { %v841_v8 = vld [vmem:[%s985_s11 + $0x80] sm:$0xff]   ;;  %790 = vmatprep.mubr.msk.bf16.mxu1 %vm909_vm0, %v908_v6  ;;  %744 = vmatpush3.bf16.msra.mxu0 %v840_v7  ;;  %v844_v11 = vld [vmem:[%s985_s11 + $0x88] sm:$0xff]   ;;  %v847_v14 = vld [vmem:[%s985_s11 + $0x90] sm:$0xff]  }
  0x2a   : > { %775 = vmatpush3.bf16.msra.mxu1 %v841_v8  ;;  %745 = vmatprep.subr.bf16.mxu0 %v842_v9  ;;  %v848_v15 = vld [vmem:[%s985_s11 + $0x58] sm:$0xff]   ;;  %v851_v18 = vld [vmem:[%s985_s11 + $0x60] sm:$0xff]   ;;  %v854_v21 = vld [vmem:[%s985_s11 + $0x68] sm:$0xff]  }
  0x2b   : > { %776 = vmatprep.subr.bf16.mxu1 %v908_v6  ;;  %v849_v16 = vld [vmem:[%s985_s11 + $0x18] sm:$0xff]   ;;  %v852_v19 = vld [vmem:[%s985_s11 + $0x20] sm:$0xff]   ;;  %v855_v22 = vld [vmem:[%s985_s11 + $0x28] sm:$0xff]  }
  0x2c   : > { %v850_v17 = vld [vmem:[%s985_s11 + $0x98] sm:$0xff]   ;;  %v853_v20 = vld [vmem:[%s985_s11 + $0xa0] sm:$0xff]   ;;  %v856_v23 = vld [vmem:[%s985_s11 + $0xa8] sm:$0xff]  }
  0x2d   : > { %746 = vmatpush3.bf16.msra.mxu0 %v843_v10  ;;  %v857_v24 = vld [vmem:[%s985_s11 + $0x70] sm:$0xff]   ;;  %v860_v27 = vld [vmem:[%s985_s11 + $0x78] sm:$0xff]   ;;  %v282_v39 = vld [vmem:[#allocation2] sm:$0xff] }
  0x2e   : > { %777 = vmatpush3.bf16.msra.mxu1 %v844_v11  ;;  %747 = vmatprep.subr.bf16.mxu0 %v845_v12  ;;  %v858_v25 = vld [vmem:[%s985_s11 + $0x30] sm:$0xff]   ;;  %v861_v29 = vld [vmem:[%s985_s11 + $0x38] sm:$0xff]   ;;  %v283_v45 = vld [vmem:[#allocation2 + $0x8] sm:$0xff] }
  0x2f   : > { %778 = vmatprep.subr.bf16.mxu1 %v908_v6  ;;  %v859_v26 = vld [vmem:[%s985_s11 + $0xb0] sm:$0xff]   ;;  %v862_v30 = vld [vmem:[%s985_s11 + $0xb8] sm:$0xff]   ;;  %v736_v50 = vld [vmem:[%s1047_s2] ss:$0 sm:$0xff] (!%p735_p11) }
  0x30   : > { %v865_v28 = vld [vmem:[%s987_s12 + $0x4] ss:$12 sps:$4 sm:$0xff]   ;;  %v863_v31 = vld [vmem:[%s987_s12] ss:$12 sps:$4 sm:$0xff]   ;;  %v866_v32 = vld [vmem:[%s987_s12 + $0x8] ss:$12 sps:$4 sm:$0xff]  }
  0x31   : > { %748 = vmatpush3.bf16.msra.mxu0 %v846_v13  ;;  %528 = vmatprep.mubr.bf16.mxu0 %v865_v28  ;;  %v737_v51 = vld [vmem:[%s1048_s3] ss:$0 sm:$0xff] (!%p735_p11) }
  0x32   : > { %779 = vmatpush3.bf16.msra.mxu1 %v847_v14  ;;  %749 = vmatprep.subr.bf16.mxu0 %v848_v15 }
  0x33   : > { %780 = vmatprep.subr.bf16.mxu1 %v908_v6 }
  0x35   : > { %750 = vmatpush3.bf16.msra.mxu0 %v849_v16 }
  0x36   : > { %781 = vmatpush3.bf16.msra.mxu1 %v850_v17  ;;  %751 = vmatprep.subr.bf16.mxu0 %v851_v18 }
  0x37   : > { %782 = vmatprep.subr.bf16.mxu1 %v908_v6 }
  0x39   : > { %752 = vmatpush3.bf16.msra.mxu0 %v852_v19 }
  0x3a   : > { %783 = vmatpush3.bf16.msra.mxu1 %v853_v20  ;;  %753 = vmatprep.subr.bf16.mxu0 %v854_v21 }
  0x3b   : > { %784 = vmatprep.subr.bf16.mxu1 %v908_v6 }
  0x3d   : > { %754 = vmatpush3.bf16.msra.mxu0 %v855_v22 }
  0x3e   : > { %785 = vmatpush3.bf16.msra.mxu1 %v856_v23  ;;  %755 = vmatprep.subr.bf16.mxu0 %v857_v24 }
  0x3f   : > { %786 = vmatprep.subr.bf16.mxu1 %v908_v6 }
  0x41   : > { %756 = vmatpush3.bf16.msra.mxu0 %v858_v25 }
  0x42   : > { %787 = vmatpush3.bf16.msra.mxu1 %v859_v26  ;;  %757 = vmatprep.subr.bf16.mxu0 %v860_v27 }
  0x43   : > { %788 = vmatprep.subr.bf16.mxu1 %v908_v6 }
  0x45   : > { %758 = vmatpush3.bf16.msra.mxu0 %v861_v29 }
  0x46   : > { %789 = vmatpush3.bf16.msra.mxu1 %v862_v30 }
  0x48   : > { %529 = vmatmul.mubr.bf16.vlgmr.msra.gmra.mrb[0].mxu0 %v863_v31 }
  0x49   : > { %791 = vmatmul.mubr.bf16.vlgmr.msra.gmra.mrb[0].mxu1 %v866_v32 }
 0x11b   : > { %v759_v33 = vpop.f32.mrb[0].mxu0 }
 0x11c   : > { %v571_v34 = vpop.f32.mrb[0].mxu1  ;;  %v760_v35 = vpop.f32.mrb[1].mxu0 }
 0x11d   : > { %v761_v36 = vadd.f32 %v760_v35, %v759_v33  ;;  %v792_v37 = vpop.f32.mrb[1].mxu1  ;;  %v762_v38 = vpop.f32.mrb[2].mxu0 }
 0x11e   : > { %v574_v40 = vpop.f32.mrb[2].mxu1  ;;  %v763_v41 = vpop.f32.mrb[3].mxu0 }
 0x11f   : > { %v572_v42 = vadd.f32 %v761_v36, %v571_v34  ;;  %v764_v43 = vadd.f32 %v763_v41, %v762_v38  ;;  %v793_v44 = vpop.f32.mrb[3].mxu1  ;;  %585 = sbr.rel (%p735_p11) target bundleno = 308 (0x134), region = 70 }
 0x121   : > { %v578_v46 = vadd.f32 %v572_v42, %v282_v39  ;;  %v575_v47 = vadd.f32 %v764_v43, %v574_v40 }
 0x123   : > { %580 = vst [vmem:[#allocation2] sm:$0xff] %v578_v46  ;;  %v579_v48 = vadd.f32 %v575_v47, %v283_v45 }
 0x125   : > { %581 = vst [vmem:[#allocation2 + $0x8] sm:$0xff] %v579_v48 }
 0x12a   : > { %v586_v49 = vld [vmem:[#allocation2] sm:$0xff] }
 0x12b   : > { %v595_v52 = vmul.f32 %v736_v50, %v586_v49 }
 0x12c   : > { %v587_v53 = vld [vmem:[#allocation2 + $0x8] sm:$0xff] }
 0x12d   : > { %v596_v54 = vmul.f32 %v736_v50, %v587_v53  ;;  %v604_v55 = vadd.f32 %v737_v51, %v595_v52 }
 0x12f   : > { %v605_v56 = vadd.f32 %v737_v51, %v596_v54  ;;  %v606_v57 = vmax.f32 %v604_v55, 0.0 }
 0x131   : > { %v607_v58 = vmax.f32 %v605_v56, 0.0  ;;  %608 = vst [vmem:[%s1049_s4] sm:$0xff] %v606_v57 }
 0x133   : > { %609 = vst [vmem:[%s1049_s4 + $0x8] sm:$0xff] %v607_v58 }
 0x134 PF: > { %s14_s19 = sadd.s32 1, %s905_s19   ;;  %s1050_s15 = smov %s893_s16 }
 0x135   : > { %p11_p12 = scmp.ge.s32.totalorder %s14_s19, 5   ;;  %s1051_s16 = smov %s970_s23 }
 0x136   : > { %s1052_s17 = smov %s901_s18  ;;  %s1053_s18 = smov %s1055_s20 }
 0x137   :  { %13 = sbr.rel (!%p11_p12) target bundleno = 3 (0x3), region = 114 }

// kernel: wideresnet_forward.29
= control target key start
LH: loop header
LB: loop body
LE: loop exit
PB: predicated region body
PF: predicated region fallthrough
CT: control target
= control target key end

     0   :  { %s923_s12 = smov 0   ;;  %s925_s13 = smov 0   ;;  %s1033_s0 = inlined_call_operand.vmem [shape: bf16[16,1152], index: 0, kind: input, shape index: {}]   ;;  %s1034_s1 = inlined_call_operand.vmem [shape: bf16[1152,128], index: 1, kind: input, shape index: {}]   ;;  %s1035_s2 = inlined_call_operand.vmem [shape: f32[16,128], index: 2, kind: input, shape index: {}]   ;;  %s1036_s3 = inlined_call_operand.vmem [shape: f32[16,128], index: 3, kind: output, shape index: {}]  }
   0x1   :  { %s927_s14 = smov 0   ;;  %s929_s15 = smov 0  }
   0x2   :  { %s931_s16 = smov 0  }
   0x3 LB: > { %s22_s17 = sadd.s32 1, %s894_s15  ;;  %p41_p1 = scmp.ne.s32.totalorder %s886_s13, %s882_s12  ;;  %s898_s16 = sphi %s931_s16, %s13_s16   ;;  %s894_s15 = sphi %s929_s15, %s1040_s15   ;;  %s890_s14 = sphi %s927_s14, %s1039_s14   ;;  %s886_s13 = sphi %s925_s13, %s1038_s13   ;;  %s882_s12 = sphi %s923_s12, %s1037_s12  }
   0x4   : > { %p23_p0 = scmp.ge.s32.totalorder %s22_s17, 3  ;;  %p42_p2 = scmp.eq.s32.totalorder %s898_s16, 0 }
   0x5   : > { %s34_s19 = sadd.s32 1, %s886_s13  ;;  %p694_p5 = scmp.ge.s32.totalorder %s898_s16, 3 }
   0x6   : > { %s1042_s17 = smov (%p23_p0, %s22_s17), 0  ;;  %p43_p3 = por %p42_p2, %p41_p1 }
   0x7   : > { %s30_s18 = ssub.s32 %s894_s15, %s1042_s17  ;;  %154 = sbr.rel (%p694_p5) target bundleno = 21 (0x15), region = 20 }
   0x8   : > { %p32_p4 = scmp.eq.s32.totalorder %s30_s18, 0 }
   0xa   : > { %s958_s20 = scalar_select %p32_p4, %s886_s13, %s34_s19  }
   0xe   : > { %157 = sbr.rel (!%p43_p3) target bundleno = 21 (0x15), region = 24  ;;  %s159_s21 = sand.u32 (%p43_p3), 1, %s886_s13  }
   0xf   : > { %s735_s22 = smul.u32 (%p43_p3), 12, %s894_s15 }
  0x10   : > { %s787_s23 = smul.u32 (%p43_p3), 24, %s159_s21 }
  0x11   : > { %s167_s26 = scalar_lea.vmem (%p43_p3), %s1033_s0, %s735_s22 }
  0x12   : > { %v182_v0 = vld [vmem:[%s167_s26] sm:$0xff] (%p43_p3)  ;;  %v696_v2 = vld [vmem:[%s167_s26 + $0x8] sm:$0xf] (%p43_p3)  ;;  %s161_s27 = scalar_lea.vmem (%p43_p3), [#allocation3], %s787_s23  ;;  %v698_v3 = vld [vmem:[%s167_s26 + $0x2c] sm:$0xf] (%p43_p3) }
  0x13   : > { %v184_v1 = vld [vmem:[%s167_s26 + $0x24] sm:$0xff] (%p43_p3)  ;;  %183 = vst [vmem:[%s161_s27] sm:$0xff] (%p43_p3), %v182_v0  ;;  %697 = vst [vmem:[%s161_s27 + $0x8] sm:$0xf] (%p43_p3), %v696_v2 }
  0x14   : > { %185 = vst [vmem:[%s161_s27 + $0xc] sm:$0xff] (%p43_p3), %v184_v1  ;;  %699 = vst [vmem:[%s161_s27 + $0x14] sm:$0xf] (%p43_p3), %v698_v3 }
  0x15 PF: > { %p700_p6 = scmp.ge.s32.totalorder %s898_s16, 1  ;;  %p210_p7 = scmp.lt.s32.totalorder %s898_s16, 4 }
  0x17   : > { %p211_p8 = pnand %p700_p6, %p210_p7 }
  0x18   : > { %s217_s28 = sand.u32 (!%p211_p8), 1, %s882_s12   ;;  %s252_s29 = smul.u32 (!%p211_p8), 48, %s890_s14 }
  0x19   : > { %214 = sbr.rel (%p211_p8) target bundleno = 304 (0x130), region = 54  ;;  %p702_p10 = scmp.ne.s32.totalorder (!%p211_p8), %s890_s14, 0 }
  0x1a   : > { %s788_s30 = smul.u32 (!%p211_p8), 24, %s217_s28  ;;  %p253_p9 = scmp.lt.s32.totalorder (!%p211_p8), %s252_s29, 143 }
  0x1c   : > { %s975_s8 = scalar_lea.vmem (!%p211_p8), [#allocation3], %s788_s30 }
  0x20   : > { %s1044_s29 = smov (!%p253_p9, %s252_s29), 143  ;;  %274 = sbr.rel (%p702_p10) target bundleno = 39 (0x27), region = 62 }
  0x21   : > { %s701_s4 = sshll.u32 %s1044_s29, 2  ;;  %v900_v4 = vmov (!%p702_p10), 0.0  }
  0x22   : > { %s973_s7 = scalar_lea.vmem %s1034_s1, %s701_s4  ;;  %275 = vst [vmem:[#allocation2] sm:$0xff] (!%p702_p10), %v900_v4  ;;  %276 = vst [vmem:[#allocation2 + $0x8] sm:$0xff] (!%p702_p10), %v900_v4 }
  0x27 PF: > { %v832_v5 = vld [vmem:[%s973_s7 + $0x40] sm:$0xff]   ;;  %v901_v6 = vmov 0.0   ;;  %vm902_vm0 = vmmov 0   ;;  %v835_v9 = vld [vmem:[%s973_s7 + $0x48] sm:$0xff]   ;;  %v838_v12 = vld [vmem:[%s973_s7 + $0x50] sm:$0xff]   ;;  %p730_p11 = scmp.ne.s32.totalorder %s890_s14, 2 }
  0x28   : > { %767 = vmatprep.subr.bf16.mxu1 %v901_v6  ;;  %v833_v7 = vld [vmem:[%s973_s7] sm:$0xff]   ;;  %736 = vmatprep.subr.bf16.mxu0 %v832_v5  ;;  %v836_v10 = vld [vmem:[%s973_s7 + $0x8] sm:$0xff]   ;;  %v839_v13 = vld [vmem:[%s973_s7 + $0x10] sm:$0xff]  }
  0x29   : > { %v834_v8 = vld [vmem:[%s973_s7 + $0x80] sm:$0xff]   ;;  %783 = vmatprep.mubr.msk.bf16.mxu1 %vm902_vm0, %v901_v6  ;;  %737 = vmatpush3.bf16.msra.mxu0 %v833_v7  ;;  %v837_v11 = vld [vmem:[%s973_s7 + $0x88] sm:$0xff]   ;;  %v840_v14 = vld [vmem:[%s973_s7 + $0x90] sm:$0xff]  }
  0x2a   : > { %768 = vmatpush3.bf16.msra.mxu1 %v834_v8  ;;  %738 = vmatprep.subr.bf16.mxu0 %v835_v9  ;;  %v841_v15 = vld [vmem:[%s973_s7 + $0x58] sm:$0xff]   ;;  %v844_v18 = vld [vmem:[%s973_s7 + $0x60] sm:$0xff]   ;;  %v847_v21 = vld [vmem:[%s973_s7 + $0x68] sm:$0xff]  }
  0x2b   : > { %769 = vmatprep.subr.bf16.mxu1 %v901_v6  ;;  %v842_v16 = vld [vmem:[%s973_s7 + $0x18] sm:$0xff]   ;;  %v845_v19 = vld [vmem:[%s973_s7 + $0x20] sm:$0xff]   ;;  %v848_v22 = vld [vmem:[%s973_s7 + $0x28] sm:$0xff]  }
  0x2c   : > { %v843_v17 = vld [vmem:[%s973_s7 + $0x98] sm:$0xff]   ;;  %v846_v20 = vld [vmem:[%s973_s7 + $0xa0] sm:$0xff]   ;;  %v849_v23 = vld [vmem:[%s973_s7 + $0xa8] sm:$0xff]  }
  0x2d   : > { %739 = vmatpush3.bf16.msra.mxu0 %v836_v10  ;;  %v850_v24 = vld [vmem:[%s973_s7 + $0x70] sm:$0xff]   ;;  %v853_v27 = vld [vmem:[%s973_s7 + $0x78] sm:$0xff]   ;;  %v277_v39 = vld [vmem:[#allocation2] sm:$0xff] }
  0x2e   : > { %770 = vmatpush3.bf16.msra.mxu1 %v837_v11  ;;  %740 = vmatprep.subr.bf16.mxu0 %v838_v12  ;;  %v851_v25 = vld [vmem:[%s973_s7 + $0x30] sm:$0xff]   ;;  %v854_v29 = vld [vmem:[%s973_s7 + $0x38] sm:$0xff]   ;;  %v278_v45 = vld [vmem:[#allocation2 + $0x8] sm:$0xff] }
  0x2f   : > { %771 = vmatprep.subr.bf16.mxu1 %v901_v6  ;;  %v852_v26 = vld [vmem:[%s973_s7 + $0xb0] sm:$0xff]   ;;  %v855_v30 = vld [vmem:[%s973_s7 + $0xb8] sm:$0xff]   ;;  %v583_v50 = vld [vmem:[%s1035_s2] sm:$0xff] (!%p730_p11) }
  0x30   : > { %v858_v28 = vld [vmem:[%s975_s8 + $0x4] ss:$12 sps:$4 sm:$0xff]   ;;  %v856_v31 = vld [vmem:[%s975_s8] ss:$12 sps:$4 sm:$0xff]   ;;  %v859_v32 = vld [vmem:[%s975_s8 + $0x8] ss:$12 sps:$4 sm:$0xff]  }
  0x31   : > { %741 = vmatpush3.bf16.msra.mxu0 %v839_v13  ;;  %523 = vmatprep.mubr.bf16.mxu0 %v858_v28  ;;  %v584_v53 = vld [vmem:[%s1035_s2 + $0x8] sm:$0xff] (!%p730_p11) }
  0x32   : > { %772 = vmatpush3.bf16.msra.mxu1 %v840_v14  ;;  %742 = vmatprep.subr.bf16.mxu0 %v841_v15 }
  0x33   : > { %773 = vmatprep.subr.bf16.mxu1 %v901_v6 }
  0x35   : > { %743 = vmatpush3.bf16.msra.mxu0 %v842_v16 }
  0x36   : > { %774 = vmatpush3.bf16.msra.mxu1 %v843_v17  ;;  %744 = vmatprep.subr.bf16.mxu0 %v844_v18 }
  0x37   : > { %775 = vmatprep.subr.bf16.mxu1 %v901_v6 }
  0x39   : > { %745 = vmatpush3.bf16.msra.mxu0 %v845_v19 }
  0x3a   : > { %776 = vmatpush3.bf16.msra.mxu1 %v846_v20  ;;  %746 = vmatprep.subr.bf16.mxu0 %v847_v21 }
  0x3b   : > { %777 = vmatprep.subr.bf16.mxu1 %v901_v6 }
  0x3d   : > { %747 = vmatpush3.bf16.msra.mxu0 %v848_v22 }
  0x3e   : > { %778 = vmatpush3.bf16.msra.mxu1 %v849_v23  ;;  %748 = vmatprep.subr.bf16.mxu0 %v850_v24 }
  0x3f   : > { %779 = vmatprep.subr.bf16.mxu1 %v901_v6 }
  0x41   : > { %749 = vmatpush3.bf16.msra.mxu0 %v851_v25 }
  0x42   : > { %780 = vmatpush3.bf16.msra.mxu1 %v852_v26  ;;  %750 = vmatprep.subr.bf16.mxu0 %v853_v27 }
  0x43   : > { %781 = vmatprep.subr.bf16.mxu1 %v901_v6 }
  0x45   : > { %751 = vmatpush3.bf16.msra.mxu0 %v854_v29 }
  0x46   : > { %782 = vmatpush3.bf16.msra.mxu1 %v855_v30 }
  0x48   : > { %524 = vmatmul.mubr.bf16.vlgmr.msra.gmra.mrb[0].mxu0 %v856_v31 }
  0x49   : > { %784 = vmatmul.mubr.bf16.vlgmr.msra.gmra.mrb[0].mxu1 %v859_v32 }
 0x11b   : > { %v752_v33 = vpop.f32.mrb[0].mxu0 }
 0x11c   : > { %v566_v34 = vpop.f32.mrb[0].mxu1  ;;  %v753_v35 = vpop.f32.mrb[1].mxu0 }
 0x11d   : > { %v754_v36 = vadd.f32 %v753_v35, %v752_v33  ;;  %v785_v37 = vpop.f32.mrb[1].mxu1  ;;  %v755_v38 = vpop.f32.mrb[2].mxu0 }
 0x11e   : > { %v569_v40 = vpop.f32.mrb[2].mxu1  ;;  %v756_v41 = vpop.f32.mrb[3].mxu0 }
 0x11f   : > { %v567_v42 = vadd.f32 %v754_v36, %v566_v34  ;;  %v757_v43 = vadd.f32 %v756_v41, %v755_v38  ;;  %v786_v44 = vpop.f32.mrb[3].mxu1  ;;  %580 = sbr.rel (%p730_p11) target bundleno = 304 (0x130), region = 66 }
 0x121   : > { %v573_v46 = vadd.f32 %v567_v42, %v277_v39  ;;  %v570_v47 = vadd.f32 %v757_v43, %v569_v40 }
 0x123   : > { %575 = vst [vmem:[#allocation2] sm:$0xff] %v573_v46  ;;  %v574_v48 = vadd.f32 %v570_v47, %v278_v45 }
 0x125   : > { %576 = vst [vmem:[#allocation2 + $0x8] sm:$0xff] %v574_v48 }
 0x12a   : > { %v581_v49 = vld [vmem:[#allocation2] sm:$0xff] }
 0x12b   : > { %v585_v52 = vadd.f32 %v583_v50, %v581_v49 }
 0x12c   : > { %v582_v51 = vld [vmem:[#allocation2 + $0x8] sm:$0xff] }
 0x12d   : > { %v586_v54 = vadd.f32 %v584_v53, %v582_v51  ;;  %587 = vst [vmem:[%s1036_s3] sm:$0xff] %v585_v52 }
 0x12f   : > { %588 = vst [vmem:[%s1036_s3 + $0x8] sm:$0xff] %v586_v54 }
 0x130 PF: > { %s13_s16 = sadd.s32 1, %s898_s16   ;;  %s1037_s12 = smov %s886_s13 }
 0x131   : > { %p10_p12 = scmp.ge.s32.totalorder %s13_s16, 5   ;;  %s1038_s13 = smov %s958_s20 }
 0x132   : > { %s1039_s14 = smov %s894_s15  ;;  %s1040_s15 = smov %s1042_s17 }
 0x133   :  { %12 = sbr.rel (!%p10_p12) target bundleno = 3 (0x3), region = 113 }

</bundles_post_ra>
